<compile_context>
chip_gen: v5e
topology: v5e:2x2
jax: 0.10.0
libtpu: 0.0.40
codegen_flags: <defaults>
</compile_context>

<pallas_src>
import functools
import numpy as np
import jax
import jax.numpy as jnp
from jax import lax
from jax.experimental import pallas as pl
from jax.experimental.pallas import tpu as pltpu

INPUT_DIM = 28       # fixed by nn.LSTM(28, HIDDEN_DIM)
HIDDEN_DIM = 32      # small stand-in for the notebook's 300
NUM_CLASSES = 10
N_LAYERS = 1


def _round_up(n, m):
    return ((n + m - 1) // m) * m


def _device_flags():
    """Best-effort TPU generation detection; conservative defaults on failure."""
    try:
        kind = jax.devices()[0].device_kind.lower()
    except Exception:
        kind = ""
    is_v5e = ("v5e" in kind) or ("v5 lite" in kind) or ("v5litepod" in kind)
    is_v6 = "v6" in kind
    is_v7 = "v7" in kind
    return is_v5e, is_v6, is_v7


def _lstm_fc_kernel(x_ref,        # (T_tile, B_blk, I)   streamed time tile of x
                    len_ref,      # (B_blk, 1) int32     sequence lengths
                    wih_ref,      # (I, 4*Hp)            W_ih^T, gate-blocked, lane-padded
                    whh_ref,      # (Hp, 4*Hp)           W_hh^T, gate-blocked, lane-padded
                    b_ref,        # (1, 4*Hp)  f32       b_ih + b_hh, gate-blocked
                    wfc_ref,      # (Hp, Cp)             W_fc^T, lane-padded
                    bfc_ref,      # (1, Cp)    f32
                    out_ref,      # (B_blk, Cp)
                    hn_ref,       # (B_blk, Hp)
                    cn_ref,       # (B_blk, Hp)
                    h_sc,         # VMEM (B_blk, Hp) f32        persistent hidden state
                    c_sc,         # VMEM (B_blk, Hp) f32        persistent cell state
                    xw_sc,        # VMEM (T_tile, B_blk, 4*Hp)  tile input projection
                    *, t_max, t_tile, hp, act_dtype):
    t_idx = pl.program_id(1)
    n_t = pl.num_programs(1)
    b_blk = h_sc.shape[0]
    i_dim = x_ref.shape[2]
    f32 = jnp.float32

    # Reset recurrent state at the start of each batch block's time sweep.
    @pl.when(t_idx == 0)
    def _():
        h_sc[...] = jnp.zeros_like(h_sc)
        c_sc[...] = jnp.zeros_like(c_sc)

    # Stage 1: input projection for the whole time tile as ONE tall matmul
    # (hoisted out of the recurrence; bias broadcast happens once per tile).
    x_tile = x_ref[...].reshape(t_tile * b_blk, i_dim)
    xw = (jnp.dot(x_tile, wih_ref[...], preferred_element_type=f32)
          + b_ref[...])
    xw_sc[...] = xw.reshape(t_tile, b_blk, 4 * hp).astype(xw_sc.dtype)

    lens = len_ref[...]                       # (B_blk, 1) int32
    t_base = t_idx * t_tile

    # Stage 2: sequential recurrence.  Per-gate (Hp x Hp) matmuls keep the live
    # vreg set small; only the unavoidable h @ W_hh work stays on the serial path.
    def step(t_local, carry):
        h, c = carry
        h_mm = h.astype(whh_ref.dtype)
        xw_t = xw_sc[t_local]                 # (B_blk, 4*Hp)

        def pre(g):                           # pre-activation for gate g
            return (jnp.dot(h_mm, whh_ref[:, g * hp:(g + 1) * hp],
                            preferred_element_type=f32)
                    + xw_t[:, g * hp:(g + 1) * hp].astype(f32))

        # gate order matches PyTorch: i, f, g, o  (each block 128-lane aligned)
        i_g = jax.nn.sigmoid(pre(0).astype(act_dtype)).astype(f32)
        f_g = jax.nn.sigmoid(pre(1).astype(act_dtype)).astype(f32)
        g_g = jnp.tanh(pre(2).astype(act_dtype)).astype(f32)
        o_g = jax.nn.sigmoid(pre(3).astype(act_dtype)).astype(f32)
        c_new = f_g * c + i_g * g_g           # cell-state update kept in f32
        h_new = o_g * jnp.tanh(c_new.astype(act_dtype)).astype(f32)
        # packed-sequence semantics: freeze state once past this sequence's length
        m = (t_base + t_local) < lens         # (B_blk, 1) bool
        h = jnp.where(m, h_new, h)
        c = jnp.where(m, c_new, c)
        return h, c

    h, c = lax.fori_loop(0, t_tile, step, (h_sc[...], c_sc[...]),
                         unroll=min(t_tile, 8))
    h_sc[...] = h
    c_sc[...] = c

    # Finalize on the last time tile: h_n / c_n and the fc head on the padded
    # "last timestep" (zero for sequences shorter than max(lengths)).
    @pl.when(t_idx == n_t - 1)
    def _():
        hn_ref[...] = h
        cn_ref[...] = c
        x_last = jnp.where(lens == t_max, h, 0.0)
        out_ref[...] = (jnp.dot(x_last.astype(wfc_ref.dtype), wfc_ref[...],
                                preferred_element_type=f32)
                        + bfc_ref[...])


def _pad_gate_cols(w_t, h, hp):
    """(rows, 4H) -> (rows, 4*Hp): each gate block zero-padded to Hp lanes."""
    rows = w_t.shape[0]
    w = w_t.reshape(rows, 4, h)
    w = jnp.pad(w, ((0, 0), (0, 0), (0, hp - h)))
    return w.reshape(rows, 4 * hp)


def classifier_lstm_forward(x, lengths, params, *, t_tile=16, b_blk=None,
                            use_bf16=True, bf16_activations=None):
    """x: (B, T, INPUT_DIM) float32 (batch_first); lengths: host int array (B,)."""
    x = jnp.asarray(x, jnp.float32)
    B, _, I = x.shape
    lengths_np = np.asarray(lengths).astype(np.int32)
    # TODO(synk): bucket T_max to a small set of lengths in real serving to avoid
    # a fresh Mosaic compile for every distinct max sequence length.
    T_max = int(lengths_np.max())             # pad_packed_sequence pads to max(lengths)
    H = params["w_hh"].shape[1]
    C = params["w_fc"].shape[0]

    is_v5e, is_v6, is_v7 = _device_flags()
    if bf16_activations is None:
        # bf16 VPU/EUP exists only on v6e/v7x; keep f32 elementwise on v5e / unknown.
        bf16_activations = bool(use_bf16 and (is_v6 or is_v7))
    mm_dtype = jnp.bfloat16 if use_bf16 else jnp.float32
    act_dtype = jnp.bfloat16 if bf16_activations else jnp.float32
    xw_dtype = jnp.bfloat16 if bf16_activations else jnp.float32

    # Padded / aligned shapes.
    Hp = _round_up(H, 128)                    # lane-dense gates / hidden
    Cp = _round_up(C, 128)                    # lane-dense fc output
    Bp = _round_up(B, 8)                      # sublane multiple
    if b_blk is None:
        if is_v7 and Bp >= 16:
            # guarantee nb >= 2 so both v7x TensorCores get batch work
            b_blk = min(128, _round_up(-(-Bp // 2), 8))
        elif is_v6:
            b_blk = min(Bp, 256)              # fill the 2x256x256 MXU
        else:
            b_blk = min(Bp, 128)              # v5e: M=128 already fills the MXU
    B_blk = max(8, min(b_blk, Bp))
    Bp = _round_up(Bp, B_blk)
    nb = Bp // B_blk

    T_tile = max(1, min(int(t_tile), T_max))
    T_pad = _round_up(T_max, T_tile)
    nt = T_pad // T_tile

    # --- weights: gate-blocked + lane-padded (zero padding keeps padded state cols 0)
    w_ih = jnp.asarray(params["w_ih"], jnp.float32)          # (4H, I)
    w_hh = jnp.asarray(params["w_hh"], jnp.float32)          # (4H, H)
    b_all = (jnp.asarray(params["b_ih"], jnp.float32)
             + jnp.asarray(params["b_hh"], jnp.float32))     # (4H,)
    w_fc = jnp.asarray(params["w_fc"], jnp.float32)          # (C, H)
    b_fc = jnp.asarray(params["b_fc"], jnp.float32)          # (C,)

    wih_p = _pad_gate_cols(w_ih.T, H, Hp).astype(mm_dtype)                    # (I, 4Hp)
    whh_p = jnp.pad(_pad_gate_cols(w_hh.T, H, Hp),
                    ((0, Hp - H), (0, 0))).astype(mm_dtype)                   # (Hp, 4Hp)
    b_p = _pad_gate_cols(b_all[None, :], H, Hp)                               # (1, 4Hp) f32
    wfc_p = jnp.pad(w_fc.T, ((0, Hp - H), (0, Cp - C))).astype(mm_dtype)      # (Hp, Cp)
    bfc_p = jnp.pad(b_fc[None, :], ((0, 0), (0, Cp - C)))                     # (1, Cp)  f32

    # --- inputs: time-major, batch and time padded
    x_tm = jnp.transpose(x[:, :T_max, :], (1, 0, 2))                          # (T_max, B, I)
    x_tm = jnp.pad(x_tm, ((0, T_pad - T_max), (0, Bp - B), (0, 0))).astype(mm_dtype)
    len_p = np.zeros((Bp, 1), np.int32)
    len_p[:B, 0] = lengths_np
    len_p = jnp.asarray(len_p)

    # --- VMEM budget from actual buffer sizes (double-buffered I/O + scratch)
    def nbytes(shape, dtype):
        return int(np.prod(shape)) * jnp.dtype(dtype).itemsize

    vmem_need = (
        2 * nbytes((T_tile, B_blk, I), mm_dtype)
        + 2 * nbytes((B_blk, 1), jnp.int32)
        + 2 * (nbytes((I, 4 * Hp), mm_dtype) + nbytes((Hp, 4 * Hp), mm_dtype)
               + nbytes((1, 4 * Hp), jnp.float32)
               + nbytes((Hp, Cp), mm_dtype) + nbytes((1, Cp), jnp.float32))
        + 2 * (nbytes((B_blk, Cp), jnp.float32) + 2 * nbytes((B_blk, Hp), jnp.float32))
        + 2 * nbytes((B_blk, Hp), jnp.float32)
        + nbytes((T_tile, B_blk, 4 * Hp), xw_dtype)
    )
    vmem_cap = (48 if is_v7 else 96) * 1024 * 1024   # v7x has only 64 MiB physical/TC
    vmem_limit = int(min(max(2 * vmem_need, 32 * 1024 * 1024), vmem_cap))

    kernel = functools.partial(_lstm_fc_kernel, t_max=T_max, t_tile=T_tile,
                               hp=Hp, act_dtype=act_dtype)

    out_p, hn_p, cn_p = pl.pallas_call(
        kernel,
        out_shape=(
            jax.ShapeDtypeStruct((Bp, Cp), jnp.float32),
            jax.ShapeDtypeStruct((Bp, Hp), jnp.float32),
            jax.ShapeDtypeStruct((Bp, Hp), jnp.float32),
        ),
        grid=(nb, nt),
        in_specs=[
            pl.BlockSpec((T_tile, B_blk, I), lambda b, t: (t, b, 0)),   # x streamed in T
            pl.BlockSpec((B_blk, 1), lambda b, t: (b, 0)),              # lengths
            pl.BlockSpec((I, 4 * Hp), lambda b, t: (0, 0)),             # W_ih^T
            pl.BlockSpec((Hp, 4 * Hp), lambda b, t: (0, 0)),            # W_hh^T
            pl.BlockSpec((1, 4 * Hp), lambda b, t: (0, 0)),             # bias
            pl.BlockSpec((Hp, Cp), lambda b, t: (0, 0)),                # W_fc^T
            pl.BlockSpec((1, Cp), lambda b, t: (0, 0)),                 # b_fc
        ],
        out_specs=(
            pl.BlockSpec((B_blk, Cp), lambda b, t: (b, 0)),
            pl.BlockSpec((B_blk, Hp), lambda b, t: (b, 0)),
            pl.BlockSpec((B_blk, Hp), lambda b, t: (b, 0)),
        ),
        scratch_shapes=[
            pltpu.VMEM((B_blk, Hp), jnp.float32),               # h state
            pltpu.VMEM((B_blk, Hp), jnp.float32),               # c state
            pltpu.VMEM((T_tile, B_blk, 4 * Hp), xw_dtype),      # tile input projection
        ],
        compiler_params=pltpu.CompilerParams(
            dimension_semantics=("parallel", "arbitrary"),
            vmem_limit_bytes=vmem_limit,
        ),
    )(x_tm, len_p, wih_p, whh_p, b_p, wfc_p, bfc_p)

    out = out_p[:B, :C]
    h_n = hn_p[:B, :H]
    c_n = cn_p[:B, :H]
    # hidden1 = (h_n, c_n) with shape (num_layers, B, H) like PyTorch
    return out, (h_n[None, :, :], c_n[None, :, :])


def _init_params(key, input_dim, hidden_dim, num_classes):
    k = 1.0 / np.sqrt(hidden_dim)
    keys = jax.random.split(key, 6)
    u = lambda kk, shape, bound: jax.random.uniform(kk, shape, jnp.float32, -bound, bound)
    kf = 1.0 / np.sqrt(hidden_dim)
    return {
        "w_ih": u(keys[0], (4 * hidden_dim, input_dim), k),
        "w_hh": u(keys[1], (4 * hidden_dim, hidden_dim), k),
        "b_ih": u(keys[2], (4 * hidden_dim,), k),
        "b_hh": u(keys[3], (4 * hidden_dim,), k),
        "w_fc": u(keys[4], (num_classes, hidden_dim), kf),
        "b_fc": u(keys[5], (num_classes,), kf),
    }


def _reference_forward(x, lengths, params):
    """Pure-JAX f32 reference of the same forward pass (for the sanity check)."""
    lengths = np.asarray(lengths)
    T_max = int(lengths.max())
    B = x.shape[0]
    H = params["w_hh"].shape[1]
    wih_t = params["w_ih"].T
    whh_t = params["w_hh"].T
    b = params["b_ih"] + params["b_hh"]

    def step(carry, inp):
        h, c = carry
        x_t, m = inp
        gates = x_t @ wih_t + h @ whh_t + b
        i_g = jax.nn.sigmoid(gates[:, :H])
        f_g = jax.nn.sigmoid(gates[:, H:2 * H])
        g_g = jnp.tanh(gates[:, 2 * H:3 * H])
        o_g = jax.nn.sigmoid(gates[:, 3 * H:])
        c_new = f_g * c + i_g * g_g
        h_new = o_g * jnp.tanh(c_new)
        h = jnp.where(m > 0, h_new, h)
        c = jnp.where(m > 0, c_new, c)
        return (h, c), None

    x_tm = jnp.transpose(x[:, :T_max, :], (1, 0, 2))
    mask = jnp.asarray((np.arange(T_max)[:, None] < lengths[None, :])
                       .astype(np.float32)[:, :, None])
    (h, c), _ = lax.scan(step, (jnp.zeros((B, H)), jnp.zeros((B, H))), (x_tm, mask))
    last_mask = jnp.asarray((lengths == T_max).astype(np.float32)[:, None])
    x_last = h * last_mask
    out = x_last @ params["w_fc"].T + params["b_fc"]
    return out, (h[None], c[None])


if __name__ == "__main__":
    B, T = 2, 8
    key = jax.random.PRNGKey(0)
    k_x, k_p = jax.random.split(key)

    x = jax.random.normal(k_x, (B, T, INPUT_DIM), jnp.float32)
    lengths = np.array([T, T - 2], dtype=np.int64)      # variable lengths, max == T
    params = _init_params(k_p, INPUT_DIM, HIDDEN_DIM, NUM_CLASSES)

    ref_out, (ref_h, ref_c) = _reference_forward(x, lengths, params)

    # 1) strict numerics check with the f32 path
    out, (h_n, c_n) = classifier_lstm_forward(x, lengths, params, use_bf16=False)
    out = jax.block_until_ready(out)
    h_n = jax.block_until_ready(h_n)
    c_n = jax.block_until_ready(c_n)
    assert out.shape == (B, NUM_CLASSES)
    assert h_n.shape == (N_LAYERS, B, HIDDEN_DIM) and c_n.shape == (N_LAYERS, B, HIDDEN_DIM)
    np.testing.assert_allclose(np.asarray(out), np.asarray(ref_out), rtol=1e-3, atol=1e-3)
    np.testing.assert_allclose(np.asarray(h_n), np.asarray(ref_h), rtol=1e-3, atol=1e-3)
    np.testing.assert_allclose(np.asarray(c_n), np.asarray(ref_c), rtol=1e-3, atol=1e-3)

    # 2) default optimized path (bf16 MXU operands; bf16 gate activations on v6e/v7x)
    out_b, (h_b, c_b) = classifier_lstm_forward(x, lengths, params)
    out_b = jax.block_until_ready(out_b)
    h_b = jax.block_until_ready(h_b)
    c_b = jax.block_until_ready(c_b)
    np.testing.assert_allclose(np.asarray(out_b), np.asarray(ref_out), rtol=6e-2, atol=6e-2)
    np.testing.assert_allclose(np.asarray(h_b), np.asarray(ref_h), rtol=6e-2, atol=6e-2)
    np.testing.assert_allclose(np.asarray(c_b), np.asarray(ref_c), rtol=6e-2, atol=6e-2)

    print("KERNEL_OK")
</pallas_src>

<mosaic_0001>
module attributes {stable_mosaic.version = 11 : i64} {
  func.func @_lstm_fc_kernel(%arg0: i32, %arg1: i32, %arg2: memref<8x8x28xf32, #tpu.memory_space<vmem>>, %arg3: memref<8x1xi32, #tpu.memory_space<vmem>>, %arg4: memref<28x512xf32, #tpu.memory_space<vmem>>, %arg5: memref<128x512xf32, #tpu.memory_space<vmem>>, %arg6: memref<1x512xf32, #tpu.memory_space<vmem>>, %arg7: memref<128x128xf32, #tpu.memory_space<vmem>>, %arg8: memref<1x128xf32, #tpu.memory_space<vmem>>, %arg9: memref<8x128xf32, #tpu.memory_space<vmem>>, %arg10: memref<8x128xf32, #tpu.memory_space<vmem>>, %arg11: memref<8x128xf32, #tpu.memory_space<vmem>>, %arg12: memref<8x128xf32, #tpu.memory_space<vmem>>, %arg13: memref<8x128xf32, #tpu.memory_space<vmem>>, %arg14: memref<8x8x512xf32, #tpu.memory_space<vmem>>) attributes {dimension_semantics = [#tpu.dimension_semantics<parallel>, #tpu.dimension_semantics<arbitrary>], iteration_bounds = array<i64: 1, 1>, scalar_prefetch = 0 : i64, scratch_operands = 3 : i64, tpu.core_type = #tpu.core_type<tc>, window_params = [{transform_indices = @transform_0, window_bounds = array<i64: 8, 8, 28>}, {transform_indices = @transform_1, window_bounds = array<i64: 8, 1>}, {pipeline_mode = #tpu.pipeline_mode<synchronous>, transform_indices = @transform_2, window_bounds = array<i64: 28, 512>}, {pipeline_mode = #tpu.pipeline_mode<synchronous>, transform_indices = @transform_3, window_bounds = array<i64: 128, 512>}, {pipeline_mode = #tpu.pipeline_mode<synchronous>, transform_indices = @transform_4, window_bounds = array<i64: 1, 512>}, {pipeline_mode = #tpu.pipeline_mode<synchronous>, transform_indices = @transform_5, window_bounds = array<i64: 128, 128>}, {pipeline_mode = #tpu.pipeline_mode<synchronous>, transform_indices = @transform_6, window_bounds = array<i64: 1, 128>}, {transform_indices = @transform_7, window_bounds = array<i64: 8, 128>}, {transform_indices = @transform_8, window_bounds = array<i64: 8, 128>}, {transform_indices = @transform_9, window_bounds = array<i64: 8, 128>}]} {
    %c0_i32 = arith.constant 0 : i32
    %0 = arith.cmpi eq, %arg1, %c0_i32 : i32
    %1 = arith.extui %0 : i1 to i32
    %c0_i32_0 = arith.constant 0 : i32
    %2 = arith.cmpi ne, %1, %c0_i32_0 : i32
    scf.if %2 {
      %cst_157 = arith.constant 0.000000e+00 : f32
      %413 = vector.broadcast %cst_157 : f32 to vector<8x128xf32>
      %c0_158 = arith.constant 0 : index
      %c0_159 = arith.constant 0 : index
      %414 = vector.load %arg12[%c0_158, %c0_159] : memref<8x128xf32, #tpu.memory_space<vmem>>, vector<8x128xf32>
      tpu.vector_store %arg12[%c0_158, %c0_159], %413 {strides = array<i32>} : memref<8x128xf32, #tpu.memory_space<vmem>>, vector<8x128xf32>,
      %cst_160 = arith.constant 0.000000e+00 : f32
      %415 = vector.broadcast %cst_160 : f32 to vector<8x128xf32>
      %c0_161 = arith.constant 0 : index
      %c0_162 = arith.constant 0 : index
      %416 = vector.load %arg13[%c0_161, %c0_162] : memref<8x128xf32, #tpu.memory_space<vmem>>, vector<8x128xf32>
      tpu.vector_store %arg13[%c0_161, %c0_162], %415 {strides = array<i32>} : memref<8x128xf32, #tpu.memory_space<vmem>>, vector<8x128xf32>,
    } else {
    }
    %c0 = arith.constant 0 : index
    %c0_1 = arith.constant 0 : index
    %c0_2 = arith.constant 0 : index
    %3 = vector.load %arg2[%c0, %c0_1, %c0_2] : memref<8x8x28xf32, #tpu.memory_space<vmem>>, vector<8x8x28xf32>
    %4 = vector.shape_cast %3 : vector<8x8x28xf32> to vector<64x28xf32>
    %c0_3 = arith.constant 0 : index
    %c0_4 = arith.constant 0 : index
    %5 = vector.load %arg4[%c0_3, %c0_4] : memref<28x512xf32, #tpu.memory_space<vmem>>, vector<28x512xf32>
    %cst = arith.constant dense<0.000000e+00> : vector<64x512xf32>
    %6 = tpu.matmul %4, %5, %cst {dimension_numbers = #tpu.dot_dimension_numbers<[1], [0], [0], [1], [0, 0, 1, 1], [], []>} : vector<64x28xf32>, vector<28x512xf32>, vector<64x512xf32> -> vector<64x512xf32>
    %c0_5 = arith.constant 0 : index
    %c0_6 = arith.constant 0 : index
    %7 = vector.load %arg6[%c0_5, %c0_6] : memref<1x512xf32, #tpu.memory_space<vmem>>, vector<1x512xf32>
    %8 = vector.broadcast %7 : vector<1x512xf32> to vector<64x512xf32>
    %9 = arith.addf %6, %8 : vector<64x512xf32>
    %10 = vector.shape_cast %9 : vector<64x512xf32> to vector<8x8x512xf32>
    %c0_7 = arith.constant 0 : index
    %c0_8 = arith.constant 0 : index
    %c0_9 = arith.constant 0 : index
    %11 = vector.load %arg14[%c0_7, %c0_8, %c0_9] : memref<8x8x512xf32, #tpu.memory_space<vmem>>, vector<8x8x512xf32>
    tpu.vector_store %arg14[%c0_7, %c0_8, %c0_9], %10 {strides = array<i32>} : memref<8x8x512xf32, #tpu.memory_space<vmem>>, vector<8x8x512xf32>,
    %c0_10 = arith.constant 0 : index
    %c0_11 = arith.constant 0 : index
    %12 = vector.load %arg3[%c0_10, %c0_11] : memref<8x1xi32, #tpu.memory_space<vmem>>, vector<8x1xi32>
    %c8_i32 = arith.constant 8 : i32
    %13 = arith.muli %arg1, %c8_i32 : i32
    %c0_12 = arith.constant 0 : index
    %c0_13 = arith.constant 0 : index
    %14 = vector.load %arg12[%c0_12, %c0_13] : memref<8x128xf32, #tpu.memory_space<vmem>>, vector<8x128xf32>
    %c0_14 = arith.constant 0 : index
    %c0_15 = arith.constant 0 : index
    %15 = vector.load %arg13[%c0_14, %c0_15] : memref<8x128xf32, #tpu.memory_space<vmem>>, vector<8x128xf32>
    %c0_i32_16 = arith.constant 0 : i32
    %16 = arith.index_cast %c0_i32_16 : i32 to index
    %c0_17 = arith.constant 0 : index
    %c0_18 = arith.constant 0 : index
    %17 = vector.load %arg14[%16, %c0_17, %c0_18] : memref<8x8x512xf32, #tpu.memory_space<vmem>>, vector<1x8x512xf32>
    %18 = vector.shape_cast %17 : vector<1x8x512xf32> to vector<8x512xf32>
    %c0_19 = arith.constant 0 : index
    %c0_20 = arith.constant 0 : index
    %19 = vector.load %arg5[%c0_19, %c0_20] : memref<128x512xf32, #tpu.memory_space<vmem>>, vector<128x128xf32>
    %cst_21 = arith.constant dense<0.000000e+00> : vector<8x128xf32>
    %20 = tpu.matmul %14, %19, %cst_21 {dimension_numbers = #tpu.dot_dimension_numbers<[1], [0], [0], [1], [0, 0, 1, 1], [], []>} : vector<8x128xf32>, vector<128x128xf32>, vector<8x128xf32> -> vector<8x128xf32>
    %21 = vector.extract_strided_slice %18 {offsets = [0, 0], sizes = [8, 128], strides = [1, 1]} : vector<8x512xf32> to vector<8x128xf32>
    %22 = arith.addf %20, %21 : vector<8x128xf32>
    %23 = arith.negf %22 : vector<8x128xf32>
    %24 = math.exp %23 : vector<8x128xf32>
    %cst_22 = arith.constant 1.000000e+00 : f32
    %25 = vector.broadcast %cst_22 : f32 to vector<8x128xf32>
    %26 = arith.addf %25, %24 : vector<8x128xf32>
    %27 = arith.divf %25, %26 : vector<8x128xf32>
    %c0_23 = arith.constant 0 : index
    %c128 = arith.constant 128 : index
    %28 = vector.load %arg5[%c0_23, %c128] : memref<128x512xf32, #tpu.memory_space<vmem>>, vector<128x128xf32>
    %cst_24 = arith.constant dense<0.000000e+00> : vector<8x128xf32>
    %29 = tpu.matmul %14, %28, %cst_24 {dimension_numbers = #tpu.dot_dimension_numbers<[1], [0], [0], [1], [0, 0, 1, 1], [], []>} : vector<8x128xf32>, vector<128x128xf32>, vector<8x128xf32> -> vector<8x128xf32>
    %30 = vector.extract_strided_slice %18 {offsets = [0, 128], sizes = [8, 128], strides = [1, 1]} : vector<8x512xf32> to vector<8x128xf32>
    %31 = arith.addf %29, %30 : vector<8x128xf32>
    %32 = arith.negf %31 : vector<8x128xf32>
    %33 = math.exp %32 : vector<8x128xf32>
    %cst_25 = arith.constant 1.000000e+00 : f32
    %34 = vector.broadcast %cst_25 : f32 to vector<8x128xf32>
    %35 = arith.addf %34, %33 : vector<8x128xf32>
    %36 = arith.divf %34, %35 : vector<8x128xf32>
    %c0_26 = arith.constant 0 : index
    %c256 = arith.constant 256 : index
    %37 = vector.load %arg5[%c0_26, %c256] : memref<128x512xf32, #tpu.memory_space<vmem>>, vector<128x128xf32>
    %cst_27 = arith.constant dense<0.000000e+00> : vector<8x128xf32>
    %38 = tpu.matmul %14, %37, %cst_27 {dimension_numbers = #tpu.dot_dimension_numbers<[1], [0], [0], [1], [0, 0, 1, 1], [], []>} : vector<8x128xf32>, vector<128x128xf32>, vector<8x128xf32> -> vector<8x128xf32>
    %39 = vector.extract_strided_slice %18 {offsets = [0, 256], sizes = [8, 128], strides = [1, 1]} : vector<8x512xf32> to vector<8x128xf32>
    %40 = arith.addf %38, %39 : vector<8x128xf32>
    %41 = math.tanh %40 : vector<8x128xf32>
    %c0_28 = arith.constant 0 : index
    %c384 = arith.constant 384 : index
    %42 = vector.load %arg5[%c0_28, %c384] : memref<128x512xf32, #tpu.memory_space<vmem>>, vector<128x128xf32>
    %cst_29 = arith.constant dense<0.000000e+00> : vector<8x128xf32>
    %43 = tpu.matmul %14, %42, %cst_29 {dimension_numbers = #tpu.dot_dimension_numbers<[1], [0], [0], [1], [0, 0, 1, 1], [], []>} : vector<8x128xf32>, vector<128x128xf32>, vector<8x128xf32> -> vector<8x128xf32>
    %44 = vector.extract_strided_slice %18 {offsets = [0, 384], sizes = [8, 128], strides = [1, 1]} : vector<8x512xf32> to vector<8x128xf32>
    %45 = arith.addf %43, %44 : vector<8x128xf32>
    %46 = arith.negf %45 : vector<8x128xf32>
    %47 = math.exp %46 : vector<8x128xf32>
    %cst_30 = arith.constant 1.000000e+00 : f32
    %48 = vector.broadcast %cst_30 : f32 to vector<8x128xf32>
    %49 = arith.addf %48, %47 : vector<8x128xf32>
    %50 = arith.divf %48, %49 : vector<8x128xf32>
    %51 = arith.mulf %36, %15 : vector<8x128xf32>
    %52 = arith.mulf %27, %41 : vector<8x128xf32>
    %53 = arith.addf %51, %52 : vector<8x128xf32>
    %54 = math.tanh %53 : vector<8x128xf32>
    %55 = arith.mulf %50, %54 : vector<8x128xf32>
    %56 = arith.addi %13, %c0_i32_16 : i32
    %57 = vector.broadcast %56 : i32 to vector<8x1xi32>
    %58 = arith.cmpi slt, %57, %12 : vector<8x1xi32>
    %59 = vector.shape_cast %58 : vector<8x1xi1> to vector<8x1xi1>
    %60 = vector.broadcast %59 : vector<8x1xi1> to vector<8x128xi1>
    %61 = arith.select %60, %55, %14 : vector<8x128xi1>, vector<8x128xf32>
    %62 = vector.shape_cast %58 : vector<8x1xi1> to vector<8x1xi1>
    %63 = vector.broadcast %62 : vector<8x1xi1> to vector<8x128xi1>
    %64 = arith.select %63, %53, %15 : vector<8x128xi1>, vector<8x128xf32>
    %c1_i32 = arith.constant 1 : i32
    %65 = arith.index_cast %c1_i32 : i32 to index
    %c0_31 = arith.constant 0 : index
    %c0_32 = arith.constant 0 : index
    %66 = vector.load %arg14[%65, %c0_31, %c0_32] : memref<8x8x512xf32, #tpu.memory_space<vmem>>, vector<1x8x512xf32>
    %67 = vector.shape_cast %66 : vector<1x8x512xf32> to vector<8x512xf32>
    %c0_33 = arith.constant 0 : index
    %c0_34 = arith.constant 0 : index
    %68 = vector.load %arg5[%c0_33, %c0_34] : memref<128x512xf32, #tpu.memory_space<vmem>>, vector<128x128xf32>
    %cst_35 = arith.constant dense<0.000000e+00> : vector<8x128xf32>
    %69 = tpu.matmul %61, %68, %cst_35 {dimension_numbers = #tpu.dot_dimension_numbers<[1], [0], [0], [1], [0, 0, 1, 1], [], []>} : vector<8x128xf32>, vector<128x128xf32>, vector<8x128xf32> -> vector<8x128xf32>
    %70 = vector.extract_strided_slice %67 {offsets = [0, 0], sizes = [8, 128], strides = [1, 1]} : vector<8x512xf32> to vector<8x128xf32>
    %71 = arith.addf %69, %70 : vector<8x128xf32>
    %72 = arith.negf %71 : vector<8x128xf32>
    %73 = math.exp %72 : vector<8x128xf32>
    %cst_36 = arith.constant 1.000000e+00 : f32
    %74 = vector.broadcast %cst_36 : f32 to vector<8x128xf32>
    %75 = arith.addf %74, %73 : vector<8x128xf32>
    %76 = arith.divf %74, %75 : vector<8x128xf32>
    %c0_37 = arith.constant 0 : index
    %c128_38 = arith.constant 128 : index
    %77 = vector.load %arg5[%c0_37, %c128_38] : memref<128x512xf32, #tpu.memory_space<vmem>>, vector<128x128xf32>
    %cst_39 = arith.constant dense<0.000000e+00> : vector<8x128xf32>
    %78 = tpu.matmul %61, %77, %cst_39 {dimension_numbers = #tpu.dot_dimension_numbers<[1], [0], [0], [1], [0, 0, 1, 1], [], []>} : vector<8x128xf32>, vector<128x128xf32>, vector<8x128xf32> -> vector<8x128xf32>
    %79 = vector.extract_strided_slice %67 {offsets = [0, 128], sizes = [8, 128], strides = [1, 1]} : vector<8x512xf32> to vector<8x128xf32>
    %80 = arith.addf %78, %79 : vector<8x128xf32>
    %81 = arith.negf %80 : vector<8x128xf32>
    %82 = math.exp %81 : vector<8x128xf32>
    %cst_40 = arith.constant 1.000000e+00 : f32
    %83 = vector.broadcast %cst_40 : f32 to vector<8x128xf32>
    %84 = arith.addf %83, %82 : vector<8x128xf32>
    %85 = arith.divf %83, %84 : vector<8x128xf32>
    %c0_41 = arith.constant 0 : index
    %c256_42 = arith.constant 256 : index
    %86 = vector.load %arg5[%c0_41, %c256_42] : memref<128x512xf32, #tpu.memory_space<vmem>>, vector<128x128xf32>
    %cst_43 = arith.constant dense<0.000000e+00> : vector<8x128xf32>
    %87 = tpu.matmul %61, %86, %cst_43 {dimension_numbers = #tpu.dot_dimension_numbers<[1], [0], [0], [1], [0, 0, 1, 1], [], []>} : vector<8x128xf32>, vector<128x128xf32>, vector<8x128xf32> -> vector<8x128xf32>
    %88 = vector.extract_strided_slice %67 {offsets = [0, 256], sizes = [8, 128], strides = [1, 1]} : vector<8x512xf32> to vector<8x128xf32>
    %89 = arith.addf %87, %88 : vector<8x128xf32>
    %90 = math.tanh %89 : vector<8x128xf32>
    %c0_44 = arith.constant 0 : index
    %c384_45 = arith.constant 384 : index
    %91 = vector.load %arg5[%c0_44, %c384_45] : memref<128x512xf32, #tpu.memory_space<vmem>>, vector<128x128xf32>
    %cst_46 = arith.constant dense<0.000000e+00> : vector<8x128xf32>
    %92 = tpu.matmul %61, %91, %cst_46 {dimension_numbers = #tpu.dot_dimension_numbers<[1], [0], [0], [1], [0, 0, 1, 1], [], []>} : vector<8x128xf32>, vector<128x128xf32>, vector<8x128xf32> -> vector<8x128xf32>
    %93 = vector.extract_strided_slice %67 {offsets = [0, 384], sizes = [8, 128], strides = [1, 1]} : vector<8x512xf32> to vector<8x128xf32>
    %94 = arith.addf %92, %93 : vector<8x128xf32>
    %95 = arith.negf %94 : vector<8x128xf32>
    %96 = math.exp %95 : vector<8x128xf32>
    %cst_47 = arith.constant 1.000000e+00 : f32
    %97 = vector.broadcast %cst_47 : f32 to vector<8x128xf32>
    %98 = arith.addf %97, %96 : vector<8x128xf32>
    %99 = arith.divf %97, %98 : vector<8x128xf32>
    %100 = arith.mulf %85, %64 : vector<8x128xf32>
    %101 = arith.mulf %76, %90 : vector<8x128xf32>
    %102 = arith.addf %100, %101 : vector<8x128xf32>
    %103 = math.tanh %102 : vector<8x128xf32>
    %104 = arith.mulf %99, %103 : vector<8x128xf32>
    %105 = arith.addi %13, %c1_i32 : i32
    %106 = vector.broadcast %105 : i32 to vector<8x1xi32>
    %107 = arith.cmpi slt, %106, %12 : vector<8x1xi32>
    %108 = vector.shape_cast %107 : vector<8x1xi1> to vector<8x1xi1>
    %109 = vector.broadcast %108 : vector<8x1xi1> to vector<8x128xi1>
    %110 = arith.select %109, %104, %61 : vector<8x128xi1>, vector<8x128xf32>
    %111 = vector.shape_cast %107 : vector<8x1xi1> to vector<8x1xi1>
    %112 = vector.broadcast %111 : vector<8x1xi1> to vector<8x128xi1>
    %113 = arith.select %112, %102, %64 : vector<8x128xi1>, vector<8x128xf32>
    %c2_i32 = arith.constant 2 : i32
    %114 = arith.index_cast %c2_i32 : i32 to index
    %c0_48 = arith.constant 0 : index
    %c0_49 = arith.constant 0 : index
    %115 = vector.load %arg14[%114, %c0_48, %c0_49] : memref<8x8x512xf32, #tpu.memory_space<vmem>>, vector<1x8x512xf32>
    %116 = vector.shape_cast %115 : vector<1x8x512xf32> to vector<8x512xf32>
    %c0_50 = arith.constant 0 : index
    %c0_51 = arith.constant 0 : index
    %117 = vector.load %arg5[%c0_50, %c0_51] : memref<128x512xf32, #tpu.memory_space<vmem>>, vector<128x128xf32>
    %cst_52 = arith.constant dense<0.000000e+00> : vector<8x128xf32>
    %118 = tpu.matmul %110, %117, %cst_52 {dimension_numbers = #tpu.dot_dimension_numbers<[1], [0], [0], [1], [0, 0, 1, 1], [], []>} : vector<8x128xf32>, vector<128x128xf32>, vector<8x128xf32> -> vector<8x128xf32>
    %119 = vector.extract_strided_slice %116 {offsets = [0, 0], sizes = [8, 128], strides = [1, 1]} : vector<8x512xf32> to vector<8x128xf32>
    %120 = arith.addf %118, %119 : vector<8x128xf32>
    %121 = arith.negf %120 : vector<8x128xf32>
    %122 = math.exp %121 : vector<8x128xf32>
    %cst_53 = arith.constant 1.000000e+00 : f32
    %123 = vector.broadcast %cst_53 : f32 to vector<8x128xf32>
    %124 = arith.addf %123, %122 : vector<8x128xf32>
    %125 = arith.divf %123, %124 : vector<8x128xf32>
    %c0_54 = arith.constant 0 : index
    %c128_55 = arith.constant 128 : index
    %126 = vector.load %arg5[%c0_54, %c128_55] : memref<128x512xf32, #tpu.memory_space<vmem>>, vector<128x128xf32>
    %cst_56 = arith.constant dense<0.000000e+00> : vector<8x128xf32>
    %127 = tpu.matmul %110, %126, %cst_56 {dimension_numbers = #tpu.dot_dimension_numbers<[1], [0], [0], [1], [0, 0, 1, 1], [], []>} : vector<8x128xf32>, vector<128x128xf32>, vector<8x128xf32> -> vector<8x128xf32>
    %128 = vector.extract_strided_slice %116 {offsets = [0, 128], sizes = [8, 128], strides = [1, 1]} : vector<8x512xf32> to vector<8x128xf32>
    %129 = arith.addf %127, %128 : vector<8x128xf32>
    %130 = arith.negf %129 : vector<8x128xf32>
    %131 = math.exp %130 : vector<8x128xf32>
    %cst_57 = arith.constant 1.000000e+00 : f32
    %132 = vector.broadcast %cst_57 : f32 to vector<8x128xf32>
    %133 = arith.addf %132, %131 : vector<8x128xf32>
    %134 = arith.divf %132, %133 : vector<8x128xf32>
    %c0_58 = arith.constant 0 : index
    %c256_59 = arith.constant 256 : index
    %135 = vector.load %arg5[%c0_58, %c256_59] : memref<128x512xf32, #tpu.memory_space<vmem>>, vector<128x128xf32>
    %cst_60 = arith.constant dense<0.000000e+00> : vector<8x128xf32>
    %136 = tpu.matmul %110, %135, %cst_60 {dimension_numbers = #tpu.dot_dimension_numbers<[1], [0], [0], [1], [0, 0, 1, 1], [], []>} : vector<8x128xf32>, vector<128x128xf32>, vector<8x128xf32> -> vector<8x128xf32>
    %137 = vector.extract_strided_slice %116 {offsets = [0, 256], sizes = [8, 128], strides = [1, 1]} : vector<8x512xf32> to vector<8x128xf32>
    %138 = arith.addf %136, %137 : vector<8x128xf32>
    %139 = math.tanh %138 : vector<8x128xf32>
    %c0_61 = arith.constant 0 : index
    %c384_62 = arith.constant 384 : index
    %140 = vector.load %arg5[%c0_61, %c384_62] : memref<128x512xf32, #tpu.memory_space<vmem>>, vector<128x128xf32>
    %cst_63 = arith.constant dense<0.000000e+00> : vector<8x128xf32>
    %141 = tpu.matmul %110, %140, %cst_63 {dimension_numbers = #tpu.dot_dimension_numbers<[1], [0], [0], [1], [0, 0, 1, 1], [], []>} : vector<8x128xf32>, vector<128x128xf32>, vector<8x128xf32> -> vector<8x128xf32>
    %142 = vector.extract_strided_slice %116 {offsets = [0, 384], sizes = [8, 128], strides = [1, 1]} : vector<8x512xf32> to vector<8x128xf32>
    %143 = arith.addf %141, %142 : vector<8x128xf32>
    %144 = arith.negf %143 : vector<8x128xf32>
    %145 = math.exp %144 : vector<8x128xf32>
    %cst_64 = arith.constant 1.000000e+00 : f32
    %146 = vector.broadcast %cst_64 : f32 to vector<8x128xf32>
    %147 = arith.addf %146, %145 : vector<8x128xf32>
    %148 = arith.divf %146, %147 : vector<8x128xf32>
    %149 = arith.mulf %134, %113 : vector<8x128xf32>
    %150 = arith.mulf %125, %139 : vector<8x128xf32>
    %151 = arith.addf %149, %150 : vector<8x128xf32>
    %152 = math.tanh %151 : vector<8x128xf32>
    %153 = arith.mulf %148, %152 : vector<8x128xf32>
    %154 = arith.addi %13, %c2_i32 : i32
    %155 = vector.broadcast %154 : i32 to vector<8x1xi32>
    %156 = arith.cmpi slt, %155, %12 : vector<8x1xi32>
    %157 = vector.shape_cast %156 : vector<8x1xi1> to vector<8x1xi1>
    %158 = vector.broadcast %157 : vector<8x1xi1> to vector<8x128xi1>
    %159 = arith.select %158, %153, %110 : vector<8x128xi1>, vector<8x128xf32>
    %160 = vector.shape_cast %156 : vector<8x1xi1> to vector<8x1xi1>
    %161 = vector.broadcast %160 : vector<8x1xi1> to vector<8x128xi1>
    %162 = arith.select %161, %151, %113 : vector<8x128xi1>, vector<8x128xf32>
    %c3_i32 = arith.constant 3 : i32
    %163 = arith.index_cast %c3_i32 : i32 to index
    %c0_65 = arith.constant 0 : index
    %c0_66 = arith.constant 0 : index
    %164 = vector.load %arg14[%163, %c0_65, %c0_66] : memref<8x8x512xf32, #tpu.memory_space<vmem>>, vector<1x8x512xf32>
    %165 = vector.shape_cast %164 : vector<1x8x512xf32> to vector<8x512xf32>
    %c0_67 = arith.constant 0 : index
    %c0_68 = arith.constant 0 : index
    %166 = vector.load %arg5[%c0_67, %c0_68] : memref<128x512xf32, #tpu.memory_space<vmem>>, vector<128x128xf32>
    %cst_69 = arith.constant dense<0.000000e+00> : vector<8x128xf32>
    %167 = tpu.matmul %159, %166, %cst_69 {dimension_numbers = #tpu.dot_dimension_numbers<[1], [0], [0], [1], [0, 0, 1, 1], [], []>} : vector<8x128xf32>, vector<128x128xf32>, vector<8x128xf32> -> vector<8x128xf32>
    %168 = vector.extract_strided_slice %165 {offsets = [0, 0], sizes = [8, 128], strides = [1, 1]} : vector<8x512xf32> to vector<8x128xf32>
    %169 = arith.addf %167, %168 : vector<8x128xf32>
    %170 = arith.negf %169 : vector<8x128xf32>
    %171 = math.exp %170 : vector<8x128xf32>
    %cst_70 = arith.constant 1.000000e+00 : f32
    %172 = vector.broadcast %cst_70 : f32 to vector<8x128xf32>
    %173 = arith.addf %172, %171 : vector<8x128xf32>
    %174 = arith.divf %172, %173 : vector<8x128xf32>
    %c0_71 = arith.constant 0 : index
    %c128_72 = arith.constant 128 : index
    %175 = vector.load %arg5[%c0_71, %c128_72] : memref<128x512xf32, #tpu.memory_space<vmem>>, vector<128x128xf32>
    %cst_73 = arith.constant dense<0.000000e+00> : vector<8x128xf32>
    %176 = tpu.matmul %159, %175, %cst_73 {dimension_numbers = #tpu.dot_dimension_numbers<[1], [0], [0], [1], [0, 0, 1, 1], [], []>} : vector<8x128xf32>, vector<128x128xf32>, vector<8x128xf32> -> vector<8x128xf32>
    %177 = vector.extract_strided_slice %165 {offsets = [0, 128], sizes = [8, 128], strides = [1, 1]} : vector<8x512xf32> to vector<8x128xf32>
    %178 = arith.addf %176, %177 : vector<8x128xf32>
    %179 = arith.negf %178 : vector<8x128xf32>
    %180 = math.exp %179 : vector<8x128xf32>
    %cst_74 = arith.constant 1.000000e+00 : f32
    %181 = vector.broadcast %cst_74 : f32 to vector<8x128xf32>
    %182 = arith.addf %181, %180 : vector<8x128xf32>
    %183 = arith.divf %181, %182 : vector<8x128xf32>
    %c0_75 = arith.constant 0 : index
    %c256_76 = arith.constant 256 : index
    %184 = vector.load %arg5[%c0_75, %c256_76] : memref<128x512xf32, #tpu.memory_space<vmem>>, vector<128x128xf32>
    %cst_77 = arith.constant dense<0.000000e+00> : vector<8x128xf32>
    %185 = tpu.matmul %159, %184, %cst_77 {dimension_numbers = #tpu.dot_dimension_numbers<[1], [0], [0], [1], [0, 0, 1, 1], [], []>} : vector<8x128xf32>, vector<128x128xf32>, vector<8x128xf32> -> vector<8x128xf32>
    %186 = vector.extract_strided_slice %165 {offsets = [0, 256], sizes = [8, 128], strides = [1, 1]} : vector<8x512xf32> to vector<8x128xf32>
    %187 = arith.addf %185, %186 : vector<8x128xf32>
    %188 = math.tanh %187 : vector<8x128xf32>
    %c0_78 = arith.constant 0 : index
    %c384_79 = arith.constant 384 : index
    %189 = vector.load %arg5[%c0_78, %c384_79] : memref<128x512xf32, #tpu.memory_space<vmem>>, vector<128x128xf32>
    %cst_80 = arith.constant dense<0.000000e+00> : vector<8x128xf32>
    %190 = tpu.matmul %159, %189, %cst_80 {dimension_numbers = #tpu.dot_dimension_numbers<[1], [0], [0], [1], [0, 0, 1, 1], [], []>} : vector<8x128xf32>, vector<128x128xf32>, vector<8x128xf32> -> vector<8x128xf32>
    %191 = vector.extract_strided_slice %165 {offsets = [0, 384], sizes = [8, 128], strides = [1, 1]} : vector<8x512xf32> to vector<8x128xf32>
    %192 = arith.addf %190, %191 : vector<8x128xf32>
    %193 = arith.negf %192 : vector<8x128xf32>
    %194 = math.exp %193 : vector<8x128xf32>
    %cst_81 = arith.constant 1.000000e+00 : f32
    %195 = vector.broadcast %cst_81 : f32 to vector<8x128xf32>
    %196 = arith.addf %195, %194 : vector<8x128xf32>
    %197 = arith.divf %195, %196 : vector<8x128xf32>
    %198 = arith.mulf %183, %162 : vector<8x128xf32>
    %199 = arith.mulf %174, %188 : vector<8x128xf32>
    %200 = arith.addf %198, %199 : vector<8x128xf32>
    %201 = math.tanh %200 : vector<8x128xf32>
    %202 = arith.mulf %197, %201 : vector<8x128xf32>
    %203 = arith.addi %13, %c3_i32 : i32
    %204 = vector.broadcast %203 : i32 to vector<8x1xi32>
    %205 = arith.cmpi slt, %204, %12 : vector<8x1xi32>
    %206 = vector.shape_cast %205 : vector<8x1xi1> to vector<8x1xi1>
    %207 = vector.broadcast %206 : vector<8x1xi1> to vector<8x128xi1>
    %208 = arith.select %207, %202, %159 : vector<8x128xi1>, vector<8x128xf32>
    %209 = vector.shape_cast %205 : vector<8x1xi1> to vector<8x1xi1>
    %210 = vector.broadcast %209 : vector<8x1xi1> to vector<8x128xi1>
    %211 = arith.select %210, %200, %162 : vector<8x128xi1>, vector<8x128xf32>
    %c4_i32 = arith.constant 4 : i32
    %212 = arith.index_cast %c4_i32 : i32 to index
    %c0_82 = arith.constant 0 : index
    %c0_83 = arith.constant 0 : index
    %213 = vector.load %arg14[%212, %c0_82, %c0_83] : memref<8x8x512xf32, #tpu.memory_space<vmem>>, vector<1x8x512xf32>
    %214 = vector.shape_cast %213 : vector<1x8x512xf32> to vector<8x512xf32>
    %c0_84 = arith.constant 0 : index
    %c0_85 = arith.constant 0 : index
    %215 = vector.load %arg5[%c0_84, %c0_85] : memref<128x512xf32, #tpu.memory_space<vmem>>, vector<128x128xf32>
    %cst_86 = arith.constant dense<0.000000e+00> : vector<8x128xf32>
    %216 = tpu.matmul %208, %215, %cst_86 {dimension_numbers = #tpu.dot_dimension_numbers<[1], [0], [0], [1], [0, 0, 1, 1], [], []>} : vector<8x128xf32>, vector<128x128xf32>, vector<8x128xf32> -> vector<8x128xf32>
    %217 = vector.extract_strided_slice %214 {offsets = [0, 0], sizes = [8, 128], strides = [1, 1]} : vector<8x512xf32> to vector<8x128xf32>
    %218 = arith.addf %216, %217 : vector<8x128xf32>
    %219 = arith.negf %218 : vector<8x128xf32>
    %220 = math.exp %219 : vector<8x128xf32>
    %cst_87 = arith.constant 1.000000e+00 : f32
    %221 = vector.broadcast %cst_87 : f32 to vector<8x128xf32>
    %222 = arith.addf %221, %220 : vector<8x128xf32>
    %223 = arith.divf %221, %222 : vector<8x128xf32>
    %c0_88 = arith.constant 0 : index
    %c128_89 = arith.constant 128 : index
    %224 = vector.load %arg5[%c0_88, %c128_89] : memref<128x512xf32, #tpu.memory_space<vmem>>, vector<128x128xf32>
    %cst_90 = arith.constant dense<0.000000e+00> : vector<8x128xf32>
    %225 = tpu.matmul %208, %224, %cst_90 {dimension_numbers = #tpu.dot_dimension_numbers<[1], [0], [0], [1], [0, 0, 1, 1], [], []>} : vector<8x128xf32>, vector<128x128xf32>, vector<8x128xf32> -> vector<8x128xf32>
    %226 = vector.extract_strided_slice %214 {offsets = [0, 128], sizes = [8, 128], strides = [1, 1]} : vector<8x512xf32> to vector<8x128xf32>
    %227 = arith.addf %225, %226 : vector<8x128xf32>
    %228 = arith.negf %227 : vector<8x128xf32>
    %229 = math.exp %228 : vector<8x128xf32>
    %cst_91 = arith.constant 1.000000e+00 : f32
    %230 = vector.broadcast %cst_91 : f32 to vector<8x128xf32>
    %231 = arith.addf %230, %229 : vector<8x128xf32>
    %232 = arith.divf %230, %231 : vector<8x128xf32>
    %c0_92 = arith.constant 0 : index
    %c256_93 = arith.constant 256 : index
    %233 = vector.load %arg5[%c0_92, %c256_93] : memref<128x512xf32, #tpu.memory_space<vmem>>, vector<128x128xf32>
    %cst_94 = arith.constant dense<0.000000e+00> : vector<8x128xf32>
    %234 = tpu.matmul %208, %233, %cst_94 {dimension_numbers = #tpu.dot_dimension_numbers<[1], [0], [0], [1], [0, 0, 1, 1], [], []>} : vector<8x128xf32>, vector<128x128xf32>, vector<8x128xf32> -> vector<8x128xf32>
    %235 = vector.extract_strided_slice %214 {offsets = [0, 256], sizes = [8, 128], strides = [1, 1]} : vector<8x512xf32> to vector<8x128xf32>
    %236 = arith.addf %234, %235 : vector<8x128xf32>
    %237 = math.tanh %236 : vector<8x128xf32>
    %c0_95 = arith.constant 0 : index
    %c384_96 = arith.constant 384 : index
    %238 = vector.load %arg5[%c0_95, %c384_96] : memref<128x512xf32, #tpu.memory_space<vmem>>, vector<128x128xf32>
    %cst_97 = arith.constant dense<0.000000e+00> : vector<8x128xf32>
    %239 = tpu.matmul %208, %238, %cst_97 {dimension_numbers = #tpu.dot_dimension_numbers<[1], [0], [0], [1], [0, 0, 1, 1], [], []>} : vector<8x128xf32>, vector<128x128xf32>, vector<8x128xf32> -> vector<8x128xf32>
    %240 = vector.extract_strided_slice %214 {offsets = [0, 384], sizes = [8, 128], strides = [1, 1]} : vector<8x512xf32> to vector<8x128xf32>
    %241 = arith.addf %239, %240 : vector<8x128xf32>
    %242 = arith.negf %241 : vector<8x128xf32>
    %243 = math.exp %242 : vector<8x128xf32>
    %cst_98 = arith.constant 1.000000e+00 : f32
    %244 = vector.broadcast %cst_98 : f32 to vector<8x128xf32>
    %245 = arith.addf %244, %243 : vector<8x128xf32>
    %246 = arith.divf %244, %245 : vector<8x128xf32>
    %247 = arith.mulf %232, %211 : vector<8x128xf32>
    %248 = arith.mulf %223, %237 : vector<8x128xf32>
    %249 = arith.addf %247, %248 : vector<8x128xf32>
    %250 = math.tanh %249 : vector<8x128xf32>
    %251 = arith.mulf %246, %250 : vector<8x128xf32>
    %252 = arith.addi %13, %c4_i32 : i32
    %253 = vector.broadcast %252 : i32 to vector<8x1xi32>
    %254 = arith.cmpi slt, %253, %12 : vector<8x1xi32>
    %255 = vector.shape_cast %254 : vector<8x1xi1> to vector<8x1xi1>
    %256 = vector.broadcast %255 : vector<8x1xi1> to vector<8x128xi1>
    %257 = arith.select %256, %251, %208 : vector<8x128xi1>, vector<8x128xf32>
    %258 = vector.shape_cast %254 : vector<8x1xi1> to vector<8x1xi1>
    %259 = vector.broadcast %258 : vector<8x1xi1> to vector<8x128xi1>
    %260 = arith.select %259, %249, %211 : vector<8x128xi1>, vector<8x128xf32>
    %c5_i32 = arith.constant 5 : i32
    %261 = arith.index_cast %c5_i32 : i32 to index
    %c0_99 = arith.constant 0 : index
    %c0_100 = arith.constant 0 : index
    %262 = vector.load %arg14[%261, %c0_99, %c0_100] : memref<8x8x512xf32, #tpu.memory_space<vmem>>, vector<1x8x512xf32>
    %263 = vector.shape_cast %262 : vector<1x8x512xf32> to vector<8x512xf32>
    %c0_101 = arith.constant 0 : index
    %c0_102 = arith.constant 0 : index
    %264 = vector.load %arg5[%c0_101, %c0_102] : memref<128x512xf32, #tpu.memory_space<vmem>>, vector<128x128xf32>
    %cst_103 = arith.constant dense<0.000000e+00> : vector<8x128xf32>
    %265 = tpu.matmul %257, %264, %cst_103 {dimension_numbers = #tpu.dot_dimension_numbers<[1], [0], [0], [1], [0, 0, 1, 1], [], []>} : vector<8x128xf32>, vector<128x128xf32>, vector<8x128xf32> -> vector<8x128xf32>
    %266 = vector.extract_strided_slice %263 {offsets = [0, 0], sizes = [8, 128], strides = [1, 1]} : vector<8x512xf32> to vector<8x128xf32>
    %267 = arith.addf %265, %266 : vector<8x128xf32>
    %268 = arith.negf %267 : vector<8x128xf32>
    %269 = math.exp %268 : vector<8x128xf32>
    %cst_104 = arith.constant 1.000000e+00 : f32
    %270 = vector.broadcast %cst_104 : f32 to vector<8x128xf32>
    %271 = arith.addf %270, %269 : vector<8x128xf32>
    %272 = arith.divf %270, %271 : vector<8x128xf32>
    %c0_105 = arith.constant 0 : index
    %c128_106 = arith.constant 128 : index
    %273 = vector.load %arg5[%c0_105, %c128_106] : memref<128x512xf32, #tpu.memory_space<vmem>>, vector<128x128xf32>
    %cst_107 = arith.constant dense<0.000000e+00> : vector<8x128xf32>
    %274 = tpu.matmul %257, %273, %cst_107 {dimension_numbers = #tpu.dot_dimension_numbers<[1], [0], [0], [1], [0, 0, 1, 1], [], []>} : vector<8x128xf32>, vector<128x128xf32>, vector<8x128xf32> -> vector<8x128xf32>
    %275 = vector.extract_strided_slice %263 {offsets = [0, 128], sizes = [8, 128], strides = [1, 1]} : vector<8x512xf32> to vector<8x128xf32>
    %276 = arith.addf %274, %275 : vector<8x128xf32>
    %277 = arith.negf %276 : vector<8x128xf32>
    %278 = math.exp %277 : vector<8x128xf32>
    %cst_108 = arith.constant 1.000000e+00 : f32
    %279 = vector.broadcast %cst_108 : f32 to vector<8x128xf32>
    %280 = arith.addf %279, %278 : vector<8x128xf32>
    %281 = arith.divf %279, %280 : vector<8x128xf32>
    %c0_109 = arith.constant 0 : index
    %c256_110 = arith.constant 256 : index
    %282 = vector.load %arg5[%c0_109, %c256_110] : memref<128x512xf32, #tpu.memory_space<vmem>>, vector<128x128xf32>
    %cst_111 = arith.constant dense<0.000000e+00> : vector<8x128xf32>
    %283 = tpu.matmul %257, %282, %cst_111 {dimension_numbers = #tpu.dot_dimension_numbers<[1], [0], [0], [1], [0, 0, 1, 1], [], []>} : vector<8x128xf32>, vector<128x128xf32>, vector<8x128xf32> -> vector<8x128xf32>
    %284 = vector.extract_strided_slice %263 {offsets = [0, 256], sizes = [8, 128], strides = [1, 1]} : vector<8x512xf32> to vector<8x128xf32>
    %285 = arith.addf %283, %284 : vector<8x128xf32>
    %286 = math.tanh %285 : vector<8x128xf32>
    %c0_112 = arith.constant 0 : index
    %c384_113 = arith.constant 384 : index
    %287 = vector.load %arg5[%c0_112, %c384_113] : memref<128x512xf32, #tpu.memory_space<vmem>>, vector<128x128xf32>
    %cst_114 = arith.constant dense<0.000000e+00> : vector<8x128xf32>
    %288 = tpu.matmul %257, %287, %cst_114 {dimension_numbers = #tpu.dot_dimension_numbers<[1], [0], [0], [1], [0, 0, 1, 1], [], []>} : vector<8x128xf32>, vector<128x128xf32>, vector<8x128xf32> -> vector<8x128xf32>
    %289 = vector.extract_strided_slice %263 {offsets = [0, 384], sizes = [8, 128], strides = [1, 1]} : vector<8x512xf32> to vector<8x128xf32>
    %290 = arith.addf %288, %289 : vector<8x128xf32>
    %291 = arith.negf %290 : vector<8x128xf32>
    %292 = math.exp %291 : vector<8x128xf32>
    %cst_115 = arith.constant 1.000000e+00 : f32
    %293 = vector.broadcast %cst_115 : f32 to vector<8x128xf32>
    %294 = arith.addf %293, %292 : vector<8x128xf32>
    %295 = arith.divf %293, %294 : vector<8x128xf32>
    %296 = arith.mulf %281, %260 : vector<8x128xf32>
    %297 = arith.mulf %272, %286 : vector<8x128xf32>
    %298 = arith.addf %296, %297 : vector<8x128xf32>
    %299 = math.tanh %298 : vector<8x128xf32>
    %300 = arith.mulf %295, %299 : vector<8x128xf32>
    %301 = arith.addi %13, %c5_i32 : i32
    %302 = vector.broadcast %301 : i32 to vector<8x1xi32>
    %303 = arith.cmpi slt, %302, %12 : vector<8x1xi32>
    %304 = vector.shape_cast %303 : vector<8x1xi1> to vector<8x1xi1>
    %305 = vector.broadcast %304 : vector<8x1xi1> to vector<8x128xi1>
    %306 = arith.select %305, %300, %257 : vector<8x128xi1>, vector<8x128xf32>
    %307 = vector.shape_cast %303 : vector<8x1xi1> to vector<8x1xi1>
    %308 = vector.broadcast %307 : vector<8x1xi1> to vector<8x128xi1>
    %309 = arith.select %308, %298, %260 : vector<8x128xi1>, vector<8x128xf32>
    %c6_i32 = arith.constant 6 : i32
    %310 = arith.index_cast %c6_i32 : i32 to index
    %c0_116 = arith.constant 0 : index
    %c0_117 = arith.constant 0 : index
    %311 = vector.load %arg14[%310, %c0_116, %c0_117] : memref<8x8x512xf32, #tpu.memory_space<vmem>>, vector<1x8x512xf32>
    %312 = vector.shape_cast %311 : vector<1x8x512xf32> to vector<8x512xf32>
    %c0_118 = arith.constant 0 : index
    %c0_119 = arith.constant 0 : index
    %313 = vector.load %arg5[%c0_118, %c0_119] : memref<128x512xf32, #tpu.memory_space<vmem>>, vector<128x128xf32>
    %cst_120 = arith.constant dense<0.000000e+00> : vector<8x128xf32>
    %314 = tpu.matmul %306, %313, %cst_120 {dimension_numbers = #tpu.dot_dimension_numbers<[1], [0], [0], [1], [0, 0, 1, 1], [], []>} : vector<8x128xf32>, vector<128x128xf32>, vector<8x128xf32> -> vector<8x128xf32>
    %315 = vector.extract_strided_slice %312 {offsets = [0, 0], sizes = [8, 128], strides = [1, 1]} : vector<8x512xf32> to vector<8x128xf32>
    %316 = arith.addf %314, %315 : vector<8x128xf32>
    %317 = arith.negf %316 : vector<8x128xf32>
    %318 = math.exp %317 : vector<8x128xf32>
    %cst_121 = arith.constant 1.000000e+00 : f32
    %319 = vector.broadcast %cst_121 : f32 to vector<8x128xf32>
    %320 = arith.addf %319, %318 : vector<8x128xf32>
    %321 = arith.divf %319, %320 : vector<8x128xf32>
    %c0_122 = arith.constant 0 : index
    %c128_123 = arith.constant 128 : index
    %322 = vector.load %arg5[%c0_122, %c128_123] : memref<128x512xf32, #tpu.memory_space<vmem>>, vector<128x128xf32>
    %cst_124 = arith.constant dense<0.000000e+00> : vector<8x128xf32>
    %323 = tpu.matmul %306, %322, %cst_124 {dimension_numbers = #tpu.dot_dimension_numbers<[1], [0], [0], [1], [0, 0, 1, 1], [], []>} : vector<8x128xf32>, vector<128x128xf32>, vector<8x128xf32> -> vector<8x128xf32>
    %324 = vector.extract_strided_slice %312 {offsets = [0, 128], sizes = [8, 128], strides = [1, 1]} : vector<8x512xf32> to vector<8x128xf32>
    %325 = arith.addf %323, %324 : vector<8x128xf32>
    %326 = arith.negf %325 : vector<8x128xf32>
    %327 = math.exp %326 : vector<8x128xf32>
    %cst_125 = arith.constant 1.000000e+00 : f32
    %328 = vector.broadcast %cst_125 : f32 to vector<8x128xf32>
    %329 = arith.addf %328, %327 : vector<8x128xf32>
    %330 = arith.divf %328, %329 : vector<8x128xf32>
    %c0_126 = arith.constant 0 : index
    %c256_127 = arith.constant 256 : index
    %331 = vector.load %arg5[%c0_126, %c256_127] : memref<128x512xf32, #tpu.memory_space<vmem>>, vector<128x128xf32>
    %cst_128 = arith.constant dense<0.000000e+00> : vector<8x128xf32>
    %332 = tpu.matmul %306, %331, %cst_128 {dimension_numbers = #tpu.dot_dimension_numbers<[1], [0], [0], [1], [0, 0, 1, 1], [], []>} : vector<8x128xf32>, vector<128x128xf32>, vector<8x128xf32> -> vector<8x128xf32>
    %333 = vector.extract_strided_slice %312 {offsets = [0, 256], sizes = [8, 128], strides = [1, 1]} : vector<8x512xf32> to vector<8x128xf32>
    %334 = arith.addf %332, %333 : vector<8x128xf32>
    %335 = math.tanh %334 : vector<8x128xf32>
    %c0_129 = arith.constant 0 : index
    %c384_130 = arith.constant 384 : index
    %336 = vector.load %arg5[%c0_129, %c384_130] : memref<128x512xf32, #tpu.memory_space<vmem>>, vector<128x128xf32>
    %cst_131 = arith.constant dense<0.000000e+00> : vector<8x128xf32>
    %337 = tpu.matmul %306, %336, %cst_131 {dimension_numbers = #tpu.dot_dimension_numbers<[1], [0], [0], [1], [0, 0, 1, 1], [], []>} : vector<8x128xf32>, vector<128x128xf32>, vector<8x128xf32> -> vector<8x128xf32>
    %338 = vector.extract_strided_slice %312 {offsets = [0, 384], sizes = [8, 128], strides = [1, 1]} : vector<8x512xf32> to vector<8x128xf32>
    %339 = arith.addf %337, %338 : vector<8x128xf32>
    %340 = arith.negf %339 : vector<8x128xf32>
    %341 = math.exp %340 : vector<8x128xf32>
    %cst_132 = arith.constant 1.000000e+00 : f32
    %342 = vector.broadcast %cst_132 : f32 to vector<8x128xf32>
    %343 = arith.addf %342, %341 : vector<8x128xf32>
    %344 = arith.divf %342, %343 : vector<8x128xf32>
    %345 = arith.mulf %330, %309 : vector<8x128xf32>
    %346 = arith.mulf %321, %335 : vector<8x128xf32>
    %347 = arith.addf %345, %346 : vector<8x128xf32>
    %348 = math.tanh %347 : vector<8x128xf32>
    %349 = arith.mulf %344, %348 : vector<8x128xf32>
    %350 = arith.addi %13, %c6_i32 : i32
    %351 = vector.broadcast %350 : i32 to vector<8x1xi32>
    %352 = arith.cmpi slt, %351, %12 : vector<8x1xi32>
    %353 = vector.shape_cast %352 : vector<8x1xi1> to vector<8x1xi1>
    %354 = vector.broadcast %353 : vector<8x1xi1> to vector<8x128xi1>
    %355 = arith.select %354, %349, %306 : vector<8x128xi1>, vector<8x128xf32>
    %356 = vector.shape_cast %352 : vector<8x1xi1> to vector<8x1xi1>
    %357 = vector.broadcast %356 : vector<8x1xi1> to vector<8x128xi1>
    %358 = arith.select %357, %347, %309 : vector<8x128xi1>, vector<8x128xf32>
    %c7_i32 = arith.constant 7 : i32
    %359 = arith.index_cast %c7_i32 : i32 to index
    %c0_133 = arith.constant 0 : index
    %c0_134 = arith.constant 0 : index
    %360 = vector.load %arg14[%359, %c0_133, %c0_134] : memref<8x8x512xf32, #tpu.memory_space<vmem>>, vector<1x8x512xf32>
    %361 = vector.shape_cast %360 : vector<1x8x512xf32> to vector<8x512xf32>
    %c0_135 = arith.constant 0 : index
    %c0_136 = arith.constant 0 : index
    %362 = vector.load %arg5[%c0_135, %c0_136] : memref<128x512xf32, #tpu.memory_space<vmem>>, vector<128x128xf32>
    %cst_137 = arith.constant dense<0.000000e+00> : vector<8x128xf32>
    %363 = tpu.matmul %355, %362, %cst_137 {dimension_numbers = #tpu.dot_dimension_numbers<[1], [0], [0], [1], [0, 0, 1, 1], [], []>} : vector<8x128xf32>, vector<128x128xf32>, vector<8x128xf32> -> vector<8x128xf32>
    %364 = vector.extract_strided_slice %361 {offsets = [0, 0], sizes = [8, 128], strides = [1, 1]} : vector<8x512xf32> to vector<8x128xf32>
    %365 = arith.addf %363, %364 : vector<8x128xf32>
    %366 = arith.negf %365 : vector<8x128xf32>
    %367 = math.exp %366 : vector<8x128xf32>
    %cst_138 = arith.constant 1.000000e+00 : f32
    %368 = vector.broadcast %cst_138 : f32 to vector<8x128xf32>
    %369 = arith.addf %368, %367 : vector<8x128xf32>
    %370 = arith.divf %368, %369 : vector<8x128xf32>
    %c0_139 = arith.constant 0 : index
    %c128_140 = arith.constant 128 : index
    %371 = vector.load %arg5[%c0_139, %c128_140] : memref<128x512xf32, #tpu.memory_space<vmem>>, vector<128x128xf32>
    %cst_141 = arith.constant dense<0.000000e+00> : vector<8x128xf32>
    %372 = tpu.matmul %355, %371, %cst_141 {dimension_numbers = #tpu.dot_dimension_numbers<[1], [0], [0], [1], [0, 0, 1, 1], [], []>} : vector<8x128xf32>, vector<128x128xf32>, vector<8x128xf32> -> vector<8x128xf32>
    %373 = vector.extract_strided_slice %361 {offsets = [0, 128], sizes = [8, 128], strides = [1, 1]} : vector<8x512xf32> to vector<8x128xf32>
    %374 = arith.addf %372, %373 : vector<8x128xf32>
    %375 = arith.negf %374 : vector<8x128xf32>
    %376 = math.exp %375 : vector<8x128xf32>
    %cst_142 = arith.constant 1.000000e+00 : f32
    %377 = vector.broadcast %cst_142 : f32 to vector<8x128xf32>
    %378 = arith.addf %377, %376 : vector<8x128xf32>
    %379 = arith.divf %377, %378 : vector<8x128xf32>
    %c0_143 = arith.constant 0 : index
    %c256_144 = arith.constant 256 : index
    %380 = vector.load %arg5[%c0_143, %c256_144] : memref<128x512xf32, #tpu.memory_space<vmem>>, vector<128x128xf32>
    %cst_145 = arith.constant dense<0.000000e+00> : vector<8x128xf32>
    %381 = tpu.matmul %355, %380, %cst_145 {dimension_numbers = #tpu.dot_dimension_numbers<[1], [0], [0], [1], [0, 0, 1, 1], [], []>} : vector<8x128xf32>, vector<128x128xf32>, vector<8x128xf32> -> vector<8x128xf32>
    %382 = vector.extract_strided_slice %361 {offsets = [0, 256], sizes = [8, 128], strides = [1, 1]} : vector<8x512xf32> to vector<8x128xf32>
    %383 = arith.addf %381, %382 : vector<8x128xf32>
    %384 = math.tanh %383 : vector<8x128xf32>
    %c0_146 = arith.constant 0 : index
    %c384_147 = arith.constant 384 : index
    %385 = vector.load %arg5[%c0_146, %c384_147] : memref<128x512xf32, #tpu.memory_space<vmem>>, vector<128x128xf32>
    %cst_148 = arith.constant dense<0.000000e+00> : vector<8x128xf32>
    %386 = tpu.matmul %355, %385, %cst_148 {dimension_numbers = #tpu.dot_dimension_numbers<[1], [0], [0], [1], [0, 0, 1, 1], [], []>} : vector<8x128xf32>, vector<128x128xf32>, vector<8x128xf32> -> vector<8x128xf32>
    %387 = vector.extract_strided_slice %361 {offsets = [0, 384], sizes = [8, 128], strides = [1, 1]} : vector<8x512xf32> to vector<8x128xf32>
    %388 = arith.addf %386, %387 : vector<8x128xf32>
    %389 = arith.negf %388 : vector<8x128xf32>
    %390 = math.exp %389 : vector<8x128xf32>
    %cst_149 = arith.constant 1.000000e+00 : f32
    %391 = vector.broadcast %cst_149 : f32 to vector<8x128xf32>
    %392 = arith.addf %391, %390 : vector<8x128xf32>
    %393 = arith.divf %391, %392 : vector<8x128xf32>
    %394 = arith.mulf %379, %358 : vector<8x128xf32>
    %395 = arith.mulf %370, %384 : vector<8x128xf32>
    %396 = arith.addf %394, %395 : vector<8x128xf32>
    %397 = math.tanh %396 : vector<8x128xf32>
    %398 = arith.mulf %393, %397 : vector<8x128xf32>
    %399 = arith.addi %13, %c7_i32 : i32
    %400 = vector.broadcast %399 : i32 to vector<8x1xi32>
    %401 = arith.cmpi slt, %400, %12 : vector<8x1xi32>
    %402 = vector.shape_cast %401 : vector<8x1xi1> to vector<8x1xi1>
    %403 = vector.broadcast %402 : vector<8x1xi1> to vector<8x128xi1>
    %404 = arith.select %403, %398, %355 : vector<8x128xi1>, vector<8x128xf32>
    %405 = vector.shape_cast %401 : vector<8x1xi1> to vector<8x1xi1>
    %406 = vector.broadcast %405 : vector<8x1xi1> to vector<8x128xi1>
    %407 = arith.select %406, %396, %358 : vector<8x128xi1>, vector<8x128xf32>
    %c8_i32_150 = arith.constant 8 : i32
    %c0_151 = arith.constant 0 : index
    %c0_152 = arith.constant 0 : index
    %408 = vector.load %arg12[%c0_151, %c0_152] : memref<8x128xf32, #tpu.memory_space<vmem>>, vector<8x128xf32>
    tpu.vector_store %arg12[%c0_151, %c0_152], %404 {strides = array<i32>} : memref<8x128xf32, #tpu.memory_space<vmem>>, vector<8x128xf32>,
    %c0_153 = arith.constant 0 : index
    %c0_154 = arith.constant 0 : index
    %409 = vector.load %arg13[%c0_153, %c0_154] : memref<8x128xf32, #tpu.memory_space<vmem>>, vector<8x128xf32>
    tpu.vector_store %arg13[%c0_153, %c0_154], %407 {strides = array<i32>} : memref<8x128xf32, #tpu.memory_space<vmem>>, vector<8x128xf32>,
    %c0_i32_155 = arith.constant 0 : i32
    %410 = arith.cmpi eq, %arg1, %c0_i32_155 : i32
    %411 = arith.extui %410 : i1 to i32
    %c0_i32_156 = arith.constant 0 : i32
    %412 = arith.cmpi ne, %411, %c0_i32_156 : i32
    scf.if %412 {
      %c0_157 = arith.constant 0 : index
      %c0_158 = arith.constant 0 : index
      %413 = vector.load %arg10[%c0_157, %c0_158] : memref<8x128xf32, #tpu.memory_space<vmem>>, vector<8x128xf32>
      tpu.vector_store %arg10[%c0_157, %c0_158], %404 {strides = array<i32>} : memref<8x128xf32, #tpu.memory_space<vmem>>, vector<8x128xf32>,
      %c0_159 = arith.constant 0 : index
      %c0_160 = arith.constant 0 : index
      %414 = vector.load %arg11[%c0_159, %c0_160] : memref<8x128xf32, #tpu.memory_space<vmem>>, vector<8x128xf32>
      tpu.vector_store %arg11[%c0_159, %c0_160], %407 {strides = array<i32>} : memref<8x128xf32, #tpu.memory_space<vmem>>, vector<8x128xf32>,
      %c8_i32_161 = arith.constant 8 : i32
      %415 = vector.broadcast %c8_i32_161 : i32 to vector<8x1xi32>
      %416 = arith.cmpi eq, %12, %415 : vector<8x1xi32>
      %cst_162 = arith.constant 0.000000e+00 : f32
      %417 = vector.shape_cast %416 : vector<8x1xi1> to vector<8x1xi1>
      %418 = vector.broadcast %417 : vector<8x1xi1> to vector<8x128xi1>
      %419 = vector.broadcast %cst_162 : f32 to vector<8x128xf32>
      %420 = arith.select %418, %404, %419 : vector<8x128xi1>, vector<8x128xf32>
      %c0_163 = arith.constant 0 : index
      %c0_164 = arith.constant 0 : index
      %421 = vector.load %arg7[%c0_163, %c0_164] : memref<128x128xf32, #tpu.memory_space<vmem>>, vector<128x128xf32>
      %cst_165 = arith.constant dense<0.000000e+00> : vector<8x128xf32>
      %422 = tpu.matmul %420, %421, %cst_165 {dimension_numbers = #tpu.dot_dimension_numbers<[1], [0], [0], [1], [0, 0, 1, 1], [], []>} : vector<8x128xf32>, vector<128x128xf32>, vector<8x128xf32> -> vector<8x128xf32>
      %c0_166 = arith.constant 0 : index
      %c0_167 = arith.constant 0 : index
      %423 = vector.load %arg8[%c0_166, %c0_167] : memref<1x128xf32, #tpu.memory_space<vmem>>, vector<1x128xf32>
      %424 = vector.broadcast %423 : vector<1x128xf32> to vector<8x128xf32>
      %425 = arith.addf %422, %424 : vector<8x128xf32>
      %c0_168 = arith.constant 0 : index
      %c0_169 = arith.constant 0 : index
      %426 = vector.load %arg9[%c0_168, %c0_169] : memref<8x128xf32, #tpu.memory_space<vmem>>, vector<8x128xf32>
      tpu.vector_store %arg9[%c0_168, %c0_169], %425 {strides = array<i32>} : memref<8x128xf32, #tpu.memory_space<vmem>>, vector<8x128xf32>,
    } else {
    }
    return
  }
  func.func @transform_0(%arg0: i32, %arg1: i32) -> (i32, i32, i32) {
    %c0_i32 = arith.constant 0 : i32
    %c0_i32_0 = arith.constant 0 : i32
    return %arg1, %arg0, %c0_i32 : i32, i32, i32
  }
  func.func @transform_1(%arg0: i32, %arg1: i32) -> (i32, i32) {
    %c0_i32 = arith.constant 0 : i32
    %c0_i32_0 = arith.constant 0 : i32
    return %arg0, %c0_i32 : i32, i32
  }
  func.func @transform_2(%arg0: i32, %arg1: i32) -> (i32, i32) {
    %c0_i32 = arith.constant 0 : i32
    %c0_i32_0 = arith.constant 0 : i32
    %c0_i32_1 = arith.constant 0 : i32
    return %c0_i32, %c0_i32_0 : i32, i32
  }
  func.func @transform_3(%arg0: i32, %arg1: i32) -> (i32, i32) {
    %c0_i32 = arith.constant 0 : i32
    %c0_i32_0 = arith.constant 0 : i32
    %c0_i32_1 = arith.constant 0 : i32
    return %c0_i32, %c0_i32_0 : i32, i32
  }
  func.func @transform_4(%arg0: i32, %arg1: i32) -> (i32, i32) {
    %c0_i32 = arith.constant 0 : i32
    %c0_i32_0 = arith.constant 0 : i32
    %c0_i32_1 = arith.constant 0 : i32
    return %c0_i32, %c0_i32_0 : i32, i32
  }
  func.func @transform_5(%arg0: i32, %arg1: i32) -> (i32, i32) {
    %c0_i32 = arith.constant 0 : i32
    %c0_i32_0 = arith.constant 0 : i32
    %c0_i32_1 = arith.constant 0 : i32
    return %c0_i32, %c0_i32_0 : i32, i32
  }
  func.func @transform_6(%arg0: i32, %arg1: i32) -> (i32, i32) {
    %c0_i32 = arith.constant 0 : i32
    %c0_i32_0 = arith.constant 0 : i32
    %c0_i32_1 = arith.constant 0 : i32
    return %c0_i32, %c0_i32_0 : i32, i32
  }
  func.func @transform_7(%arg0: i32, %arg1: i32) -> (i32, i32) {
    %c0_i32 = arith.constant 0 : i32
    %c0_i32_0 = arith.constant 0 : i32
    return %arg0, %c0_i32 : i32, i32
  }
  func.func @transform_8(%arg0: i32, %arg1: i32) -> (i32, i32) {
    %c0_i32 = arith.constant 0 : i32
    %c0_i32_0 = arith.constant 0 : i32
    return %arg0, %c0_i32 : i32, i32
  }
  func.func @transform_9(%arg0: i32, %arg1: i32) -> (i32, i32) {
    %c0_i32 = arith.constant 0 : i32
    %c0_i32_0 = arith.constant 0 : i32
    return %arg0, %c0_i32 : i32, i32
  }
}

</mosaic_0001>

<bundles_post_ra>
// kernel: tpu_custom_call.1
= control target key start
LH: loop header
LB: loop body
LE: loop exit
PB: predicated region body
PF: predicated region fallthrough
CT: control target
= control target key end

     0   :  { %15 = vsyncpa [#allocation6], 0  ;;  %s3406_s0 = inlined_call_operand.hbm [shape: f32[8,8,28], index: 0, kind: input, shape index: {}]   ;;  %s3407_s1 = inlined_call_operand.vmem [shape: s32[8,1], index: 1, kind: input, shape index: {}]   ;;  %s3408_s2 = inlined_call_operand.hbm [shape: f32[28,512], index: 2, kind: input, shape index: {}]   ;;  %s3409_s3 = inlined_call_operand.hbm [shape: f32[128,512], index: 3, kind: input, shape index: {}]   ;;  %s3410_s4 = inlined_call_operand.vmem [shape: f32[1,512], index: 4, kind: input, shape index: {}]   ;;  %s3411_s5 = inlined_call_operand.hbm [shape: f32[128,128], index: 5, kind: input, shape index: {}]   ;;  %s3412_s6 = inlined_call_operand.vmem [shape: f32[1,128], index: 6, kind: input, shape index: {}]   ;;  %s3413_s7 = inlined_call_operand.hbm [shape: f32[8,128], index: 7, kind: output, shape index: {0}]   ;;  %s3414_s8 = inlined_call_operand.hbm [shape: f32[8,128], index: 8, kind: output, shape index: {1}]   ;;  %s3415_s9 = inlined_call_operand.hbm [shape: f32[8,128], index: 9, kind: output, shape index: {2}]  }
   0x1   :  { %16 = vsyncpa [#allocation9], 0 }
   0x2   :  { %17 = vsyncpa [#allocation12], 0 }
   0x3   :  { %18 = vsyncpa [#allocation7], 0  ;;  %s39_s11 = sshll.u32 %s3408_s2, 4  ;;  %s40_s11 = int_to_ptr.hbm [resolvable:$true] %s39_s11 }
   0x4   :  { %19 = vsyncpa [#allocation15], 0  ;;  %s2276_s12 = smov [#allocation8]   ;;  %s24_s16 = sshll.u32 %s3406_s0, 4  ;;  %s25_s16 = int_to_ptr.hbm [resolvable:$true] %s24_s16 }
   0x5   :  { %s41_s13 = sshll.u32 %s2276_s12, 4  ;;  %s2277_s17 = smov 512   ;;  %s42_s13 = int_to_ptr.vmem [resolvable:$true] %s41_s13 }
   0x6   :  { %s2278_s18 = smov 32   ;;  %s2279_s19 = smov [#allocation5]  }
   0x7   :  { %47 = dma.hbm_to_vmem [thread:$0]  %s40_s11, 2048, %s42_s13, [#allocation9], %s2277_s17, %s2277_s17, %s2278_s18  }
   0x8   :  { %s26_s20 = sshll.u32 %s2279_s19, 4  ;;  %s2280_s21 = smov 128   ;;  %s27_s20 = int_to_ptr.vmem [resolvable:$true] %s26_s20 }
   0x9   :  { %s2281_s22 = smov 8   ;;  %s52_s24 = sshll.u32 %s3409_s3, 4  ;;  %s53_s24 = int_to_ptr.hbm [resolvable:$true] %s52_s24 }
   0xa   :  { %32 = dma.hbm_to_vmem [thread:$0]  %s25_s16, 1024, %s27_s20, [#allocation6], %s2280_s21, %s2280_s21, %s2281_s22  }
   0xb   :  { %s2282_s25 = smov [#allocation10]   ;;  %s67_s28 = sshll.u32 %s3411_s5, 4  ;;  %s68_s28 = int_to_ptr.hbm [resolvable:$true] %s67_s28 }
   0xc   :  { %s54_s26 = sshll.u32 %s2282_s25, 4  ;;  %s2283_s29 = smov [#allocation11]   ;;  %s55_s26 = int_to_ptr.vmem [resolvable:$true] %s54_s26 }
   0xd   :  { %60 = dma.hbm_to_vmem [thread:$0]  %s53_s24, 8192, %s55_s26, [#allocation9], %s2277_s17, %s2277_s17, %s2278_s18  }
   0xe   :  { %s69_s30 = sshll.u32 %s2283_s29, 4  ;;  %s70_s30 = int_to_ptr.vmem [resolvable:$true] %s69_s30 }
   0xf   :  { %75 = dma.hbm_to_vmem [thread:$0]  %s68_s28, 2048, %s70_s30, [#allocation12], %s2280_s21, %s2280_s21, %s2281_s22  }
  0x10   :  { %2266 = dma.done.wait [#allocation6], 1024  }
  0x11   :  { %2267 = vsyncadd [#allocation6], 4294966272 }
  0x12   :  { %2268 = dma.done.wait [#allocation9], 10240  }
  0x13   :  { %2269 = vsyncadd [#allocation9], 4294957056 }
  0x14   :  { %2270 = dma.done.wait [#allocation12], 2048  }
  0x15   :  { %2271 = vsyncadd [#allocation12], 4294965248  ;;  %vm159_vm0 = vcmask 1043456   ;;  %v120_v0 = vld [vmem:[#allocation8 + $0x60] sm:$0xf]  ;;  %vm134_vm1 = vcmask 228352  }
  0x16   :  { %v116_v1 = vld [vmem:[#allocation8 + $0x40] sm:$0xff]  ;;  %1803 = vmatpush.msk.msra.mxu0 %vm159_vm0, %v120_v0  ;;  %1876 = vmatpush.msk.msra.mxu1 %vm159_vm0, %v120_v0  ;;  %v2355_v5 = vld [vmem:[#allocation5 + $0x28] sm:$0xff]  ;;  %v2357_v6 = vld [vmem:[#allocation5 + $0x30] sm:$0xff]  ;;  %s1771_s16 = sshll.u32 %s3414_s8, 4  ;;  %s2287_s17 = smov [#allocation16]   ;;  %s1772_s16 = int_to_ptr.hbm [resolvable:$true] %s1771_s16 }
  0x17   :  { %1877 = vmatpush.msk.msra.mxu2 %vm159_vm0, %v120_v0  ;;  %1878 = vmatpush.msk.msra.mxu3 %vm159_vm0, %v120_v0  ;;  %v112_v2 = vld [vmem:[#allocation8 + $0x20] sm:$0xff]  ;;  %v2359_v7 = vld [vmem:[#allocation5 + $0x38] sm:$0xff]  ;;  %v121_v8 = vld [vmem:[#allocation8 + $0x68] sm:$0xf]  ;;  %s1780_s18 = sshll.u32 %s2287_s17, 4  ;;  %s1782_s21 = sshll.u32 %s3415_s9, 4  ;;  %s1781_s18 = int_to_ptr.vmem [resolvable:$true] %s1780_s18  ;;  %s1783_s21 = int_to_ptr.hbm [resolvable:$true] %s1782_s21 }
  0x18   :  { %185 = vmatpush.msra.mxu0 %v116_v1  ;;  %1879 = vmatpush.msra.mxu1 %v116_v1  ;;  %v108_v3 = vld [vmem:[#allocation8] sm:$0xff]  ;;  %v122_v9 = vld [vmem:[#allocation8 + $0x70] sm:$0xf]  ;;  %v123_v10 = vld [vmem:[#allocation8 + $0x78] sm:$0xf]  ;;  %s2288_s23 = smov [#allocation13]  }
  0x19   :  { %1880 = vmatpush.msra.mxu2 %v116_v1  ;;  %1881 = vmatpush.msra.mxu3 %v116_v1  ;;  %v100_v4 = vld [vmem:[#allocation5] sm:$0xff]  ;;  %v117_v12 = vld [vmem:[#allocation8 + $0x48] sm:$0xff]  ;;  %v118_v13 = vld [vmem:[#allocation8 + $0x50] sm:$0xff]  ;;  %s1758_s8 = sshll.u32 %s2288_s23, 4  ;;  %s1760_s26 = sshll.u32 %s3413_s7, 4  ;;  %s1759_s8 = int_to_ptr.vmem [resolvable:$true] %s1758_s8  ;;  %s1761_s26 = int_to_ptr.hbm [resolvable:$true] %s1760_s26 }
  0x1a   :  { %186 = vmatpush.msra.mxu0 %v112_v2  ;;  %1882 = vmatpush.msra.mxu1 %v112_v2  ;;  %v2364_v11 = vld [vmem:[#allocation10 + $0x1e0] sm:$0xff]  ;;  %v119_v14 = vld [vmem:[#allocation8 + $0x58] sm:$0xff]  ;;  %v113_v16 = vld [vmem:[#allocation8 + $0x28] sm:$0xff] }
  0x1b   :  { %1883 = vmatpush.msra.mxu2 %v112_v2  ;;  %1884 = vmatpush.msra.mxu3 %v112_v2  ;;  %v2372_v15 = vld [vmem:[#allocation10 + $0x1c0] sm:$0xff]  ;;  %v114_v17 = vld [vmem:[#allocation8 + $0x30] sm:$0xff]  ;;  %v115_v18 = vld [vmem:[#allocation8 + $0x38] sm:$0xff] }
  0x1c   :  { %187 = vmatpush.msra.mxu0 %v108_v3  ;;  %1885 = vmatpush.msra.mxu1 %v108_v3  ;;  %v2376_v19 = vld [vmem:[#allocation10 + $0x1a0] sm:$0xff]  ;;  %v109_v20 = vld [vmem:[#allocation8 + $0x8] sm:$0xff]  ;;  %v110_v21 = vld [vmem:[#allocation8 + $0x10] sm:$0xff] }
  0x1d   :  { %1886 = vmatpush.msra.mxu2 %v108_v3  ;;  %1887 = vmatpush.msra.mxu3 %v108_v3  ;;  %v111_v22 = vld [vmem:[#allocation8 + $0x18] sm:$0xff]  ;;  %v101_v23 = vld [vmem:[#allocation5 + $0x8] sm:$0xff]  ;;  %v2385_v26 = vld [vmem:[#allocation10 + $0x180] sm:$0xff] }
  0x1e   :  { %1804 = vmatmul.msk.f32.vlgmr.msra.gmra.mxu0 %vm134_vm1, %v100_v4  ;;  %1809 = vmatmul.msk.f32.vlgmr.msra.gmra.mxu1 %vm134_vm1, %v2355_v5  ;;  %v2380_v24 = vld [vmem:[#allocation10 + $0x1e8] sm:$0xff]  ;;  %v2383_v25 = vld [vmem:[#allocation10 + $0x1f8] sm:$0xff]  ;;  %v2391_v28 = vld [vmem:[#allocation10 + $0x1f0] sm:$0xff] }
  0x1f   :  { %1810 = vmatmul.msk.f32.vlgmr.msra.gmra.mxu2 %vm134_vm1, %v2357_v6  ;;  %1811 = vmatmul.msk.f32.vlgmr.msra.gmra.mxu3 %vm134_vm1, %v2359_v7  ;;  %v2389_v27 = vld [vmem:[#allocation10 + $0x1c8] sm:$0xff]  ;;  %v2395_v29 = vld [vmem:[#allocation10 + $0x160] sm:$0xff]  ;;  %v2397_v30 = vld [vmem:[#allocation10 + $0x1d8] sm:$0xff] }
  0x20   :  { %1812 = vmatpush.msk.msrb.mxu1 %vm159_vm0, %v121_v8  ;;  %1821 = vmatpush.msk.msrb.mxu2 %vm159_vm0, %v122_v9  ;;  %v2401_v31 = vld [vmem:[#allocation10 + $0x1a8] sm:$0xff]  ;;  %v2403_v32 = vld [vmem:[#allocation10 + $0x1d0] sm:$0xff]  ;;  %v2406_v33 = vld [vmem:[#allocation10 + $0x140] sm:$0xff] }
  0x21   :  { %1830 = vmatpush.msk.msrb.mxu3 %vm159_vm0, %v123_v10  ;;  %392 = vmatpush.msrb.mxu0 %v2364_v11  ;;  %v2408_v34 = vld [vmem:[#allocation10 + $0x1b8] sm:$0xff]  ;;  %v102_v35 = vld [vmem:[#allocation5 + $0x10] sm:$0xff]  ;;  %v2413_v36 = vld [vmem:[#allocation10 + $0x188] sm:$0xff] }
  0x22   :  { %226 = vmatpush.msrb.mxu1 %v117_v12  ;;  %267 = vmatpush.msrb.mxu2 %v118_v13  ;;  %v2418_v37 = vld [vmem:[#allocation10 + $0x120] sm:$0xff]  ;;  %v2423_v38 = vld [vmem:[#allocation10 + $0x168] sm:$0xff]  ;;  %v2425_v39 = vld [vmem:[#allocation10 + $0x198] sm:$0xff] }
  0x23   :  { %308 = vmatpush.msrb.mxu3 %v119_v14  ;;  %393 = vmatpush.msrb.mxu0 %v2372_v15  ;;  %v2429_v40 = vld [vmem:[#allocation10 + $0x100] sm:$0xff]  ;;  %v2431_v41 = vld [vmem:[#allocation10 + $0x1b0] sm:$0xff]  ;;  %v2435_v42 = vld [vmem:[#allocation10 + $0x148] sm:$0xff] }
  0x24   :  { %227 = vmatpush.msrb.mxu1 %v113_v16  ;;  %268 = vmatpush.msrb.mxu2 %v114_v17  ;;  %v2437_v43 = vld [vmem:[#allocation10 + $0x178] sm:$0xff]  ;;  %v2440_v44 = vld [vmem:[#allocation10 + $0xe0] sm:$0xff]  ;;  %v2443_v45 = vld [vmem:[#allocation10 + $0x190] sm:$0xff] }
  0x25   :  { %309 = vmatpush.msrb.mxu3 %v115_v18  ;;  %394 = vmatpush.msrb.mxu0 %v2376_v19  ;;  %v2447_v46 = vld [vmem:[#allocation10 + $0x128] sm:$0xff]  ;;  %v2449_v47 = vld [vmem:[#allocation10 + $0x158] sm:$0xff]  ;;  %v2453_v49 = vld [vmem:[#allocation10 + $0x170] sm:$0xff] }
  0x26   :  { %228 = vmatpush.msrb.mxu1 %v109_v20  ;;  %269 = vmatpush.msrb.mxu2 %v110_v21  ;;  %v103_v48 = vld [vmem:[#allocation5 + $0x18] sm:$0xff]  ;;  %v2457_v50 = vld [vmem:[#allocation10 + $0xc0] sm:$0xff]  ;;  %v2462_v51 = vld [vmem:[#allocation10 + $0x108] sm:$0xff]  ;;  %v3416_v21 = vmov 0.0  }
  0x27   :  { %310 = vmatpush.msrb.mxu3 %v111_v22  ;;  %1805 = vmatmul.msk.f32.gmra.mxu0 %vm134_vm1, %v101_v23  ;;  %v2464_v52 = vld [vmem:[#allocation10 + $0x138] sm:$0xff]  ;;  %v2469_v53 = vld [vmem:[#allocation10 + $0xa0] sm:$0xff]  ;;  %v2471_v54 = vld [vmem:[#allocation10 + $0x150] sm:$0xff] }
  0x28   :  { %1813 = vmatmul.msk.f32.vlgmr.msrb.gmra.mxu1 %vm134_vm1, %v100_v4  ;;  %1822 = vmatmul.msk.f32.vlgmr.msrb.gmra.mxu2 %vm134_vm1, %v100_v4  ;;  %3518 = vst [vmem:[#allocation22_spill] sm:$0xff] %v2469_v53  ;;  %v2475_v55 = vld [vmem:[#allocation10 + $0xe8] sm:$0xff]  ;;  %v2477_v56 = vld [vmem:[#allocation10 + $0x118] sm:$0xff]  ;;  %v2479_v57 = vld [vmem:[#allocation10 + $0x80] sm:$0xff] }
  0x29   :  { %1831 = vmatmul.msk.f32.vlgmr.msrb.gmra.mxu3 %vm134_vm1, %v100_v4  ;;  %447 = vmatpush.msra.mxu1 %v2380_v24  ;;  %3519 = vst [vmem:[#allocation23_spill] sm:$0xff] %v2479_v57  ;;  %v2483_v58 = vld [vmem:[#allocation10 + $0x130] sm:$0xff]  ;;  %v2487_v59 = vld [vmem:[#allocation10 + $0xc8] sm:$0xff]  ;;  %v2489_v60 = vld [vmem:[#allocation10 + $0xf8] sm:$0xff] }
  0x2a   :  { %539 = vmatpush.msra.mxu3 %v2383_v25  ;;  %395 = vmatpush.msrb.mxu0 %v2385_v26  ;;  %v104_v61 = vld [vmem:[#allocation5 + $0x20] sm:$0xff]  ;;  %v2493_v62 = vld [vmem:[#allocation10 + $0x110] sm:$0xff]  ;;  %v2502_v0 = vld [vmem:[#allocation10 + $0xa8] sm:$0xff] }
  0x2b   :  { %448 = vmatpush.msra.mxu1 %v2389_v27  ;;  %502 = vmatpush.msra.mxu2 %v2391_v28  ;;  %v2497_v63 = vld [vmem:[#allocation10 + $0x60] sm:$0xff]  ;;  %3521 = vst [vmem:[#allocation25_spill] sm:$0xff] %v2502_v0  ;;  %v2504_v1 = vld [vmem:[#allocation10 + $0xd8] sm:$0xff]  ;;  %v2511_v3 = vld [vmem:[#allocation10 + $0xf0] sm:$0xff] }
  0x2c   :  { %396 = vmatpush.msrb.mxu0 %v2395_v29  ;;  %540 = vmatpush.msra.mxu3 %v2397_v30  ;;  %3520 = vst [vmem:[#allocation24_spill] sm:$0xff] %v2497_v63  ;;  %v2509_v2 = vld [vmem:[#allocation10 + $0x40] sm:$0xff]  ;;  %v2515_v4 = vld [vmem:[#allocation10 + $0x88] sm:$0xff]  ;;  %v2517_v8 = vld [vmem:[#allocation10 + $0xb8] sm:$0xff] }
  0x2d   :  { %449 = vmatpush.msra.mxu1 %v2401_v31  ;;  %503 = vmatpush.msra.mxu2 %v2403_v32  ;;  %3522 = vst [vmem:[#allocation26_spill] sm:$0xff] %v2504_v1  ;;  %v2519_v9 = vld [vmem:[#allocation10 + $0x20] sm:$0xff]  ;;  %v2523_v10 = vld [vmem:[#allocation10 + $0xd0] sm:$0xff]  ;;  %v2527_v12 = vld [vmem:[#allocation10 + $0x68] sm:$0xff] }
  0x2e   :  { %397 = vmatpush.msrb.mxu0 %v2406_v33  ;;  %541 = vmatpush.msra.mxu3 %v2408_v34  ;;  %3523 = vst [vmem:[#allocation27_spill] sm:$0xff] %v2509_v2  ;;  %v2529_v13 = vld [vmem:[#allocation10 + $0x98] sm:$0xff]  ;;  %v2531_v14 = vld [vmem:[#allocation10] sm:$0xff]  ;;  %v2535_v16 = vld [vmem:[#allocation10 + $0xb0] sm:$0xff] }
  0x2f   :  { %1806 = vmatmul.msk.f32.gmra.mxu0 %vm134_vm1, %v102_v35  ;;  %450 = vmatpush.msra.mxu1 %v2413_v36  ;;  %3524 = vst [vmem:[#allocation28_spill] sm:$0xff] %v2515_v4  ;;  %v2542_v17 = vld [vmem:[#allocation10 + $0x48] sm:$0xff]  ;;  %v2545_v18 = vld [vmem:[#allocation10 + $0x78] sm:$0xff]  ;;  %v2549_v20 = vld [vmem:[#allocation10 + $0x90] sm:$0xff] }
  0x30   :  { %1814 = vmatmul.msk.f32.gmra.mxu1 %vm134_vm1, %v101_v23  ;;  %1823 = vmatmul.msk.f32.gmra.mxu2 %vm134_vm1, %v101_v23  ;;  %3525 = vst [vmem:[#allocation29_spill] sm:$0xff] %v2517_v8  ;;  %v2553_v22 = vld [vmem:[#allocation10 + $0x28] sm:$0xff] }
  0x31   :  { %1832 = vmatmul.msk.f32.gmra.mxu3 %vm134_vm1, %v101_v23  ;;  %398 = vmatpush.msrb.mxu0 %v2418_v37  ;;  %3526 = vst [vmem:[#allocation30_spill] sm:$0xff] %v2519_v9  ;;  %v2555_v23 = vld [vmem:[#allocation10 + $0x58] sm:$0xff] }
  0x32   :  { %451 = vmatpush.msra.mxu1 %v2423_v38  ;;  %542 = vmatpush.msra.mxu3 %v2425_v39  ;;  %3527 = vst [vmem:[#allocation31_spill] sm:$0xff] %v2523_v10 }
  0x33   :  { %399 = vmatpush.msrb.mxu0 %v2429_v40  ;;  %504 = vmatpush.msra.mxu2 %v2431_v41  ;;  %3528 = vst [vmem:[#allocation32_spill] sm:$0xff] %v2527_v12 }
  0x34   :  { %452 = vmatpush.msra.mxu1 %v2435_v42  ;;  %543 = vmatpush.msra.mxu3 %v2437_v43  ;;  %3529 = vst [vmem:[#allocation33_spill] sm:$0xff] %v2529_v13 }
  0x35   :  { %400 = vmatpush.msrb.mxu0 %v2440_v44  ;;  %505 = vmatpush.msra.mxu2 %v2443_v45  ;;  %3530 = vst [vmem:[#allocation34_spill] sm:$0xff] %v2531_v14 }
  0x36   :  { %453 = vmatpush.msra.mxu1 %v2447_v46  ;;  %544 = vmatpush.msra.mxu3 %v2449_v47  ;;  %3531 = vst [vmem:[#allocation35_spill] sm:$0xff] %v2535_v16 }
  0x37   :  { %1807 = vmatmul.msk.f32.gmra.mxu0 %vm134_vm1, %v103_v48  ;;  %506 = vmatpush.msra.mxu2 %v2453_v49  ;;  %3532 = vst [vmem:[#allocation36_spill] sm:$0xff] %v2542_v17 }
  0x38   :  { %1815 = vmatmul.msk.f32.gmra.mxu1 %vm134_vm1, %v102_v35  ;;  %1824 = vmatmul.msk.f32.gmra.mxu2 %vm134_vm1, %v102_v35  ;;  %3533 = vst [vmem:[#allocation37_spill] sm:$0xff] %v2545_v18 }
  0x39   :  { %1833 = vmatmul.msk.f32.gmra.mxu3 %vm134_vm1, %v102_v35  ;;  %401 = vmatpush.msrb.mxu0 %v2457_v50  ;;  %3534 = vst [vmem:[#allocation38_spill] sm:$0xff] %v2549_v20  ;;  %v2560_v35 = vld [vmem:[%s3407_s1] sm:$0xff] }
  0x3a   :  { %454 = vmatpush.msra.mxu1 %v2462_v51  ;;  %545 = vmatpush.msra.mxu3 %v2464_v52  ;;  %3535 = vst [vmem:[#allocation39_spill] sm:$0xff] %v2553_v22  ;;  %vm1842_vm2 = vcmp.gt.s32.totalorder %v2560_v35, 0  ;;  %vm1846_vm3 = vcmp.gt.s32.totalorder %v2560_v35, 1  ;;  %vm1866_vm4 = vcmp.gt.s32.totalorder %v2560_v35, 6 }
  0x3b   :  { %402 = vmatpush.msrb.mxu0 %v2469_v53  ;;  %507 = vmatpush.msra.mxu2 %v2471_v54  ;;  %3536 = vst [vmem:[#allocation40_spill] sm:$0xff] %v2555_v23 }
  0x3c   :  { %455 = vmatpush.msra.mxu1 %v2475_v55  ;;  %546 = vmatpush.msra.mxu3 %v2477_v56  ;;  %3537 = vst [vmem:[#allocation41_spill] sm:$0xff] %v2560_v35 }
  0x3d   :  { %403 = vmatpush.msrb.mxu0 %v2479_v57  ;;  %508 = vmatpush.msra.mxu2 %v2483_v58 }
  0x3e   :  { %456 = vmatpush.msra.mxu1 %v2487_v59  ;;  %547 = vmatpush.msra.mxu3 %v2489_v60 }
  0x3f   :  { %1808 = vmatmul.msk.f32.gmra.mxu0 %vm134_vm1, %v104_v61  ;;  %509 = vmatpush.msra.mxu2 %v2493_v62 }
  0x40   :  { %1816 = vmatmul.msk.f32.gmra.mxu1 %vm134_vm1, %v103_v48  ;;  %1825 = vmatmul.msk.f32.gmra.mxu2 %vm134_vm1, %v103_v48 }
  0x41   :  { %1834 = vmatmul.msk.f32.gmra.mxu3 %vm134_vm1, %v103_v48  ;;  %404 = vmatpush.msrb.mxu0 %v2497_v63  ;;  %v2564_v48 = vld [vmem:[#allocation10 + $0x70] sm:$0xff] }
  0x42   :  { %457 = vmatpush.msra.mxu1 %v2502_v0  ;;  %548 = vmatpush.msra.mxu3 %v2504_v1  ;;  %3538 = vst [vmem:[#allocation42_spill] sm:$0xff] %v2564_v48 }
  0x43   :  { %405 = vmatpush.msrb.mxu0 %v2509_v2  ;;  %510 = vmatpush.msra.mxu2 %v2511_v3  ;;  %v2584_v2 = vld [vmem:[#allocation10 + $0x18] sm:$0xff] }
  0x44   :  { %458 = vmatpush.msra.mxu1 %v2515_v4  ;;  %549 = vmatpush.msra.mxu3 %v2517_v8  ;;  %3543 = vst [vmem:[#allocation47_spill] sm:$0xff] %v2584_v2 }
  0x45   :  { %406 = vmatpush.msrb.mxu0 %v2519_v9  ;;  %511 = vmatpush.msra.mxu2 %v2523_v10 }
  0x46   :  { %459 = vmatpush.msra.mxu1 %v2527_v12  ;;  %550 = vmatpush.msra.mxu3 %v2529_v13 }
  0x47   :  { %407 = vmatpush.msrb.mxu0 %v2531_v14  ;;  %512 = vmatpush.msra.mxu2 %v2535_v16  ;;  %v3430_v14 = vmov 0  }
  0x48   :  { %1817 = vmatmul.msk.f32.gmra.mxu1 %vm134_vm1, %v104_v61  ;;  %1826 = vmatmul.msk.f32.gmra.mxu2 %vm134_vm1, %v104_v61  ;;  %v585_v9 = vsel %vm1842_vm2, 1, %v3430_v14 }
  0x49   :  { %1835 = vmatmul.msk.f32.gmra.mxu3 %vm134_vm1, %v104_v61  ;;  %408 = vmatmul.f32.vlgmr.msrb.gmra.mxu0 %v3416_v21  ;;  %v2568_v61 = vld [vmem:[#allocation10 + $0x8] sm:$0xff]  ;;  %v2570_v21 = vld [vmem:[#allocation10 + $0x38] sm:$0xff] }
  0x4a   :  { %460 = vmatpush.msra.mxu1 %v2542_v17  ;;  %551 = vmatpush.msra.mxu3 %v2545_v18  ;;  %3539 = vst [vmem:[#allocation43_spill] sm:$0xff] %v2568_v61  ;;  %v2576_v17 = vld [vmem:[#allocation10 + $0x50] sm:$0xff] }
  0x4b   :  { %513 = vmatpush.msra.mxu2 %v2549_v20  ;;  %3540 = vst [vmem:[#allocation44_spill] sm:$0xff] %v2570_v21  ;;  %1901 = vset.pattern.permute.xlu0 %v3430_v14  ;;  %v2580_v18 = vld [vmem:[#allocation10 + $0x30] sm:$0xff] }
  0x4c   :  { %461 = vmatpush.msra.mxu1 %v2553_v22  ;;  %552 = vmatpush.msra.mxu3 %v2555_v23  ;;  %3541 = vst [vmem:[#allocation45_spill] sm:$0xff] %v2576_v17 }
  0x4d   :  { %514 = vmatpush.msra.mxu2 %v2564_v48  ;;  %587 = vperm.xlu0 %1901, %v585_v9   ;;  %3542 = vst [vmem:[#allocation46_spill] sm:$0xff] %v2580_v18  ;;  %v2592_v9 = vld [vmem:[#allocation10 + $0x10] sm:$0xff] }
  0x4e   :  { %462 = vmatpush.msra.mxu1 %v2568_v61  ;;  %553 = vmatpush.msra.mxu3 %v2570_v21  ;;  %3544 = vst [vmem:[#allocation48_spill] sm:$0xff] %v2592_v9  ;;  %v743_v61 = vsel %vm1846_vm3, 1, %v3430_v14 }
  0x4f   :  { %515 = vmatpush.msra.mxu2 %v2576_v17  ;;  %597 = vmatpush.msra.mxu0 %v2364_v11 }
  0x50   :  { %1818 = vmatmul.msk.f32.gmra.mxu1 %vm134_vm1, %v2355_v5  ;;  %1827 = vmatmul.msk.f32.gmra.mxu2 %vm134_vm1, %v2355_v5 }
  0x51   :  { %1836 = vmatmul.msk.f32.gmra.mxu3 %vm134_vm1, %v2355_v5  ;;  %516 = vmatpush.msra.mxu2 %v2580_v18  ;;  %v1533_v5 = vsel %vm1866_vm4, 1, %v3430_v14  ;;  %v3550_v14 = vld [vmem:[#allocation34_spill] sm:$0xff]  ;;  %v3551_v35 = vld [vmem:[#allocation43_spill] sm:$0xff] }
  0x52   :  { %554 = vmatpush.msra.mxu3 %v2584_v2  ;;  %636 = vmatpush.msrb.mxu1 %v2380_v24 }
  0x53   :  { %517 = vmatpush.msra.mxu2 %v2592_v9  ;;  %598 = vmatpush.msra.mxu0 %v2372_v15 }
  0x54   :  { %696 = vmatpush.msrb.mxu3 %v2383_v25  ;;  %637 = vmatpush.msrb.mxu1 %v2389_v27 }
  0x55   :  { %675 = vmatpush.msrb.mxu2 %v2391_v28  ;;  %745 = vperm.xlu0 %1901, %v743_v61   ;;  %v3547_v61 = vld [vmem:[#allocation37_spill] sm:$0xff] }
  0x56   :  { %697 = vmatpush.msrb.mxu3 %v2397_v30  ;;  %599 = vmatpush.msra.mxu0 %v2376_v19 }
  0x57   :  { %676 = vmatpush.msrb.mxu2 %v2403_v32  ;;  %638 = vmatpush.msrb.mxu1 %v2401_v31 }
  0x58   :  { %1819 = vmatmul.msk.f32.gmra.mxu1 %vm134_vm1, %v2357_v6  ;;  %1828 = vmatmul.msk.f32.gmra.mxu2 %vm134_vm1, %v2357_v6 }
  0x59   :  { %1837 = vmatmul.msk.f32.gmra.mxu3 %vm134_vm1, %v2357_v6  ;;  %677 = vmatpush.msrb.mxu2 %v2431_v41  ;;  %v3545_v6 = vmov 0.0  }
  0x5a   :  { %698 = vmatpush.msrb.mxu3 %v2408_v34  ;;  %600 = vmatpush.msra.mxu0 %v2385_v26 }
  0x5b   :  { %639 = vmatpush.msrb.mxu1 %v2413_v36  ;;  %678 = vmatpush.msrb.mxu2 %v2443_v45 }
  0x5c   :  { %699 = vmatpush.msrb.mxu3 %v2425_v39  ;;  %601 = vmatpush.msra.mxu0 %v2395_v29 }
  0x5d   :  { %1535 = vperm.xlu0 %1901, %v1533_v5   ;;  %640 = vmatpush.msrb.mxu1 %v2423_v38  ;;  %v3548_v5 = vld [vmem:[#allocation36_spill] sm:$0xff] }
  0x5e   :  { %679 = vmatpush.msrb.mxu2 %v2453_v49  ;;  %700 = vmatpush.msrb.mxu3 %v2437_v43 }
  0x5f   :  { %602 = vmatpush.msra.mxu0 %v2406_v33  ;;  %641 = vmatpush.msrb.mxu1 %v2435_v42 }
  0x60   :  { %1820 = vmatmul.msk.f32.gmra.mxu1 %vm134_vm1, %v2359_v7  ;;  %1829 = vmatmul.msk.f32.gmra.mxu2 %vm134_vm1, %v2359_v7 }
  0x61   :  { %1838 = vmatmul.msk.f32.gmra.mxu3 %vm134_vm1, %v2359_v7  ;;  %680 = vmatpush.msrb.mxu2 %v2471_v54  ;;  %v3546_v7 = vld [vmem:[#allocation27_spill] sm:$0xff] }
  0x62   :  { %701 = vmatpush.msrb.mxu3 %v2449_v47  ;;  %603 = vmatpush.msra.mxu0 %v2418_v37 }
  0x63   :  { %642 = vmatpush.msrb.mxu1 %v2447_v46  ;;  %681 = vmatpush.msrb.mxu2 %v2483_v58 }
  0x64   :  { %702 = vmatpush.msrb.mxu3 %v2464_v52  ;;  %604 = vmatpush.msra.mxu0 %v2429_v40 }
  0x65   :  { %643 = vmatpush.msrb.mxu1 %v2462_v51  ;;  %682 = vmatpush.msrb.mxu2 %v2493_v62 }
  0x66   :  { %703 = vmatpush.msrb.mxu3 %v2477_v56  ;;  %605 = vmatpush.msra.mxu0 %v2440_v44 }
  0x67   :  { %644 = vmatpush.msrb.mxu1 %v2475_v55  ;;  %683 = vmatpush.msrb.mxu2 %v2511_v3 }
  0x68   :  { %463 = vmatmul.f32.vlgmr.msra.gmra.mxu1 %v3545_v6  ;;  %518 = vmatmul.f32.vlgmr.msra.gmra.mxu2 %v3545_v6 }
  0x69   :  { %555 = vmatmul.f32.vlgmr.msra.gmra.mxu3 %v3545_v6  ;;  %606 = vmatpush.msra.mxu0 %v2457_v50  ;;  %v3549_v6 = vld [vmem:[#allocation30_spill] sm:$0xff] }
  0x6a   :  { %704 = vmatpush.msrb.mxu3 %v2489_v60  ;;  %645 = vmatpush.msrb.mxu1 %v2487_v59 }
  0x6b   :  { %684 = vmatpush.msrb.mxu2 %v2523_v10  ;;  %607 = vmatpush.msra.mxu0 %v2469_v53 }
  0x6c   :  { %705 = vmatpush.msrb.mxu3 %v2504_v1  ;;  %646 = vmatpush.msrb.mxu1 %v2502_v0 }
  0x6d   :  { %685 = vmatpush.msrb.mxu2 %v2535_v16  ;;  %608 = vmatpush.msra.mxu0 %v2479_v57 }
  0x6e   :  { %706 = vmatpush.msrb.mxu3 %v2517_v8  ;;  %647 = vmatpush.msrb.mxu1 %v2515_v4 }
  0x6f   :  { %686 = vmatpush.msrb.mxu2 %v2549_v20  ;;  %609 = vmatpush.msra.mxu0 %v2497_v63 }
  0x70   :  { %707 = vmatpush.msrb.mxu3 %v2529_v13  ;;  %648 = vmatpush.msrb.mxu1 %v2527_v12 }
  0x71   :  { %687 = vmatpush.msrb.mxu2 %v2564_v48  ;;  %610 = vmatpush.msra.mxu0 %v3546_v7 }
  0x72   :  { %708 = vmatpush.msrb.mxu3 %v3547_v61  ;;  %649 = vmatpush.msrb.mxu1 %v3548_v5 }
  0x73   :  { %688 = vmatpush.msrb.mxu2 %v2576_v17  ;;  %611 = vmatpush.msra.mxu0 %v3549_v6 }
  0x74   :  { %709 = vmatpush.msrb.mxu3 %v2555_v23  ;;  %650 = vmatpush.msrb.mxu1 %v2553_v22 }
  0x75   :  { %689 = vmatpush.msrb.mxu2 %v2580_v18  ;;  %612 = vmatpush.msra.mxu0 %v3550_v14 }
  0x76   :  { %710 = vmatpush.msrb.mxu3 %v2570_v21  ;;  %651 = vmatpush.msrb.mxu1 %v3551_v35 }
  0x77   :  { %690 = vmatpush.msrb.mxu2 %v2592_v9  ;;  %755 = vmatpush.msrb.mxu0 %v2364_v11 }
  0x78   :  { %711 = vmatpush.msrb.mxu3 %v2584_v2  ;;  %794 = vmatpush.msra.mxu1 %v2380_v24 }
  0x79   :  { %833 = vmatpush.msra.mxu2 %v2391_v28  ;;  %756 = vmatpush.msrb.mxu0 %v2372_v15 }
  0x7a   :  { %854 = vmatpush.msra.mxu3 %v2383_v25  ;;  %795 = vmatpush.msra.mxu1 %v2389_v27 }
  0x7b   :  { %834 = vmatpush.msra.mxu2 %v2403_v32  ;;  %757 = vmatpush.msrb.mxu0 %v2376_v19 }
  0x7c   :  { %855 = vmatpush.msra.mxu3 %v2397_v30  ;;  %796 = vmatpush.msra.mxu1 %v2401_v31 }
  0x7d   :  { %835 = vmatpush.msra.mxu2 %v2431_v41  ;;  %758 = vmatpush.msrb.mxu0 %v2385_v26 }
  0x7e   :  { %856 = vmatpush.msra.mxu3 %v2408_v34  ;;  %797 = vmatpush.msra.mxu1 %v2413_v36 }
  0x7f   :  { %836 = vmatpush.msra.mxu2 %v2443_v45  ;;  %759 = vmatpush.msrb.mxu0 %v2395_v29 }
  0x80   :  { %857 = vmatpush.msra.mxu3 %v2425_v39  ;;  %798 = vmatpush.msra.mxu1 %v2423_v38 }
  0x81   :  { %837 = vmatpush.msra.mxu2 %v2453_v49  ;;  %760 = vmatpush.msrb.mxu0 %v2406_v33 }
  0x82   :  { %858 = vmatpush.msra.mxu3 %v2437_v43  ;;  %799 = vmatpush.msra.mxu1 %v2435_v42 }
  0x83   :  { %838 = vmatpush.msra.mxu2 %v2471_v54  ;;  %761 = vmatpush.msrb.mxu0 %v2418_v37 }
  0x84   :  { %859 = vmatpush.msra.mxu3 %v2449_v47  ;;  %800 = vmatpush.msra.mxu1 %v2447_v46 }
  0x85   :  { %839 = vmatpush.msra.mxu2 %v2483_v58  ;;  %762 = vmatpush.msrb.mxu0 %v2429_v40 }
  0x86   :  { %860 = vmatpush.msra.mxu3 %v2464_v52  ;;  %801 = vmatpush.msra.mxu1 %v2462_v51 }
  0x87   :  { %840 = vmatpush.msra.mxu2 %v2493_v62  ;;  %763 = vmatpush.msrb.mxu0 %v2440_v44 }
  0x88   :  { %861 = vmatpush.msra.mxu3 %v2477_v56  ;;  %802 = vmatpush.msra.mxu1 %v2475_v55 }
  0x89   :  { %841 = vmatpush.msra.mxu2 %v2511_v3  ;;  %764 = vmatpush.msrb.mxu0 %v2457_v50 }
  0x8a   :  { %862 = vmatpush.msra.mxu3 %v2489_v60  ;;  %803 = vmatpush.msra.mxu1 %v2487_v59 }
  0x8b   :  { %842 = vmatpush.msra.mxu2 %v2523_v10  ;;  %765 = vmatpush.msrb.mxu0 %v2469_v53 }
  0x8c   :  { %863 = vmatpush.msra.mxu3 %v2504_v1  ;;  %804 = vmatpush.msra.mxu1 %v2502_v0 }
  0x8d   :  { %843 = vmatpush.msra.mxu2 %v2535_v16  ;;  %766 = vmatpush.msrb.mxu0 %v2479_v57 }
  0x8e   :  { %864 = vmatpush.msra.mxu3 %v2517_v8  ;;  %805 = vmatpush.msra.mxu1 %v2515_v4 }
  0x8f   :  { %844 = vmatpush.msra.mxu2 %v2549_v20  ;;  %767 = vmatpush.msrb.mxu0 %v2497_v63 }
  0x90   :  { %865 = vmatpush.msra.mxu3 %v2529_v13  ;;  %806 = vmatpush.msra.mxu1 %v2527_v12  ;;  %v124_v12 = vld [vmem:[%s3410_s4] sm:$0xf] }
  0x91   :  { %845 = vmatpush.msra.mxu2 %v2564_v48  ;;  %768 = vmatpush.msrb.mxu0 %v3546_v7  ;;  %v127_v48 = vperm.slane %v124_v12, 1  ;;  %v2765_v20 = vperm.slane %v124_v12, 2 }
  0x92   :  { %866 = vmatpush.msra.mxu3 %v3547_v61  ;;  %807 = vmatpush.msra.mxu1 %v3548_v5 }
  0x93   :  { %846 = vmatpush.msra.mxu2 %v2576_v17  ;;  %769 = vmatpush.msrb.mxu0 %v3549_v6  ;;  %v3552_v6 = vmov 0  }
  0x94   :  { %867 = vmatpush.msra.mxu3 %v2555_v23  ;;  %808 = vmatpush.msra.mxu1 %v2553_v22  ;;  %v126_v23 = vperm.slane %v124_v12, 0 }
  0x95   :  { %847 = vmatpush.msra.mxu2 %v2580_v18  ;;  %770 = vmatpush.msrb.mxu0 %v3550_v14 }
  0x96   :  { %868 = vmatpush.msra.mxu3 %v2570_v21  ;;  %809 = vmatpush.msra.mxu1 %v3551_v35 }
  0x97   :  { %848 = vmatpush.msra.mxu2 %v2592_v9  ;;  %1902 = vset.pattern.permute.xlu1 %v3552_v6 }
  0x98   :  { %869 = vmatpush.msra.mxu3 %v2584_v2  ;;  %1903 = vset.pattern.permute.xlu2 %v3552_v6 }
  0x9b   :  { %v189_v22 = vpop.f32.mrf.mxu0  ;;  %v204_v17 = vpop.f32.mrf.mxu1 }
  0x9c   :  { %v2749_v5 = vadd.f32 %v204_v17, %v126_v23 }
  0x9e   :  { %3553 = vst [vmem:[#allocation49_spill] sm:$0xff] %v2749_v5 }
  0xa2   :  { %v207_v18 = vpop.f32.mrf.mxu2  ;;  %v210_v7 = vpop.f32.mrf.mxu3 }
  0xa3   :  { %v2751_v21 = vadd.f32 %v207_v18, %v126_v23  ;;  %v2753_v14 = vadd.f32 %v210_v7, %v126_v23  ;;  %v129_v18 = vperm.slane %v124_v12, 3 }
  0xa4   :  { %v192_v35 = vpop.f32.mrf.mxu0 }
  0xa5   :  { %3554 = vst [vmem:[#allocation50_spill] sm:$0xff] %v2751_v21  ;;  %v2755_v61 = vadd.f32 %v192_v35, %v126_v23  ;;  %v230_v9 = vpop.f32.mrf.mxu1 }
  0xa6   :  { %3555 = vst [vmem:[#allocation51_spill] sm:$0xff] %v2753_v14 }
  0xa7   :  { %3556 = vst [vmem:[#allocation52_spill] sm:$0xff] %v2755_v61 }
  0xab   :  { %v2757_v2 = vpop.f32.mrf.mxu2 }
  0xac   :  { %v2759_v63 = vpop.f32.mrf.mxu3  ;;  %v195_v6 = vpop.f32.mrf.mxu0 }
  0xad   :  { %v2761_v13 = vadd.f32 %v195_v6, %v126_v23  ;;  %v233_v17 = vpop.f32.mrf.mxu1 }
  0xae   :  { %v2763_v5 = vadd.f32 %v233_v17, %v127_v48 }
  0xaf   :  { %3557 = vst [vmem:[#allocation53_spill] sm:$0xff] %v2761_v13 }
  0xb0   :  { %3558 = vst [vmem:[#allocation54_spill] sm:$0xff] %v2763_v5 }
  0xb3   :  { %v274_v7 = vpop.f32.mrf.mxu2 }
  0xb4   :  { %v2768_v14 = vadd.f32 %v274_v7, %v2765_v20  ;;  %v315_v35 = vpop.f32.mrf.mxu3  ;;  %v198_v21 = vpop.f32.mrf.mxu0 }
  0xb5   :  { %v2770_v61 = vadd.f32 %v315_v35, %v129_v18  ;;  %v2772_v4 = vadd.f32 %v198_v21, %v126_v23  ;;  %v236_v57 = vpop.f32.mrf.mxu1 }
  0xb6   :  { %3559 = vst [vmem:[#allocation55_spill] sm:$0xff] %v2768_v14  ;;  %v2774_v8 = vadd.f32 %v236_v57, %v127_v48 }
  0xb7   :  { %3560 = vst [vmem:[#allocation56_spill] sm:$0xff] %v2770_v61 }
  0xb8   :  { %3561 = vst [vmem:[#allocation57_spill] sm:$0xff] %v2772_v4 }
  0xb9   :  { %3562 = vst [vmem:[#allocation58_spill] sm:$0xff] %v2774_v8 }
  0xbb   :  { %v277_v6 = vpop.f32.mrf.mxu2 }
  0xbc   :  { %v2777_v17 = vadd.f32 %v277_v6, %v2765_v20  ;;  %v318_v13 = vpop.f32.mrf.mxu3  ;;  %v201_v5 = vpop.f32.mrf.mxu0 }
  0xbd   :  { %v2779_v12 = vadd.f32 %v318_v13, %v129_v18  ;;  %v2781_v16 = vadd.f32 %v201_v5, %v126_v23  ;;  %v239_v7 = vpop.f32.mrf.mxu1 }
  0xbe   :  { %3563 = vst [vmem:[#allocation59_spill] sm:$0xff] %v2777_v17  ;;  %v2783_v14 = vadd.f32 %v239_v7, %v127_v48 }
  0xbf   :  { %3564 = vst [vmem:[#allocation60_spill] sm:$0xff] %v2779_v12  ;;  %v190_v12 = vadd.f32 %v189_v22, %v126_v23  ;;  %v588_v53 = vpop.permute.xlu0 %587 }
  0xc0   :  { %3565 = vst [vmem:[#allocation61_spill] sm:$0xff] %v2781_v16  ;;  %vm589_vm13 = vcmp.eq.s32.totalorder %v588_v53, 1  ;;  %v3608_v53 = vld [vmem:[#allocation54_spill] sm:$0xff] }
  0xc1   :  { %3566 = vst [vmem:[#allocation62_spill] sm:$0xff] %v2783_v14 }
  0xc3   :  { %v280_v35 = vpop.f32.mrf.mxu2 }
  0xc4   :  { %v2786_v21 = vadd.f32 %v280_v35, %v2765_v20  ;;  %v321_v4 = vpop.f32.mrf.mxu3 }
  0xc5   :  { %v2788_v57 = vadd.f32 %v321_v4, %v129_v18  ;;  %v242_v8 = vpop.f32.mrf.mxu1 }
  0xc6   :  { %3567 = vst [vmem:[#allocation63_spill] sm:$0xff] %v2786_v21  ;;  %v2790_v61 = vadd.f32 %v242_v8, %v127_v48  ;;  %v409_v14 = vpop.f32.mrf.mxu0 }
  0xc7   :  { %3568 = vst [vmem:[#allocation64_spill] sm:$0xff] %v2788_v57  ;;  %v410_v35 = vadd.f32 %v409_v14, %v190_v12 }
  0xc8   :  { %3569 = vst [vmem:[#allocation65_spill] sm:$0xff] %v2790_v61 }
  0xc9   :  { %v1839_v0 = vmul.f32 -1.442695, %v410_v35 }
  0xcb   :  { %v283_v6 = vpop.f32.mrf.mxu2  ;;  %1905 = vpow2.f32 %v1839_v0 }
  0xcc   :  { %v2793_v17 = vadd.f32 %v283_v6, %v2765_v20  ;;  %v324_v13 = vpop.f32.mrf.mxu3 }
  0xcd   :  { %v2795_v5 = vadd.f32 %v324_v13, %v129_v18  ;;  %v245_v16 = vpop.f32.mrf.mxu1 }
  0xce   :  { %3570 = vst [vmem:[#allocation66_spill] sm:$0xff] %v2793_v17  ;;  %v2797_v7 = vadd.f32 %v245_v16, %v127_v48 }
  0xcf   :  { %3571 = vst [vmem:[#allocation67_spill] sm:$0xff] %v2795_v5 }
  0xd0   :  { %3572 = vst [vmem:[#allocation68_spill] sm:$0xff] %v2797_v7 }
  0xd1   :  { %v1906_v23 = vpop.eup %1905 }
  0xd2   :  { %v415_v12 = vadd.f32 1.0, %v1906_v23 }
  0xd3   :  { %v286_v21 = vpop.f32.mrf.mxu2 }
  0xd4   :  { %v2800_v4 = vadd.f32 %v286_v21, %v2765_v20  ;;  %v327_v57 = vpop.f32.mrf.mxu3  ;;  %1907 = vrcp.f32 %v415_v12  ;;  %vm421_vm6 = vweird.f32 %v415_v12 }
  0xd5   :  { %v2802_v8 = vadd.f32 %v327_v57, %v129_v18  ;;  %v248_v61 = vpop.f32.mrf.mxu1  ;;  %v231_v57 = vadd.f32 %v230_v9, %v127_v48 }
  0xd6   :  { %3573 = vst [vmem:[#allocation69_spill] sm:$0xff] %v2800_v4  ;;  %v2804_v6 = vadd.f32 %v248_v61, %v127_v48 }
  0xd7   :  { %3574 = vst [vmem:[#allocation70_spill] sm:$0xff] %v2802_v8 }
  0xd8   :  { %3575 = vst [vmem:[#allocation71_spill] sm:$0xff] %v2804_v6 }
  0xdb   :  { %v289_v13 = vpop.f32.mrf.mxu2 }
  0xdc   :  { %v2807_v17 = vadd.f32 %v289_v13, %v2765_v20  ;;  %v330_v16 = vpop.f32.mrf.mxu3 }
  0xdd   :  { %v2809_v7 = vadd.f32 %v330_v16, %v129_v18  ;;  %v251_v14 = vpop.f32.mrf.mxu1  ;;  %v313_v16 = vadd.f32 %v2759_v63, %v129_v18 }
  0xde   :  { %3576 = vst [vmem:[#allocation72_spill] sm:$0xff] %v2807_v17  ;;  %v2811_v22 = vadd.f32 %v251_v14, %v127_v48  ;;  %v1908_v14 = vpop.eup %1907 }
  0xdf   :  { %3577 = vst [vmem:[#allocation73_spill] sm:$0xff] %v2809_v7  ;;  %v417_v8 = vmul.f32 %v1908_v14, %v415_v12  ;;  %vm422_vm5 = vweird.f32 %v1908_v14 }
  0xe0   :  { %3578 = vst [vmem:[#allocation74_spill] sm:$0xff] %v2811_v22  ;;  %vm423_vm8 = vmor %vm421_vm6, %vm422_vm5 }
  0xe1   :  { %v418_v9 = vsub.f32 1.0, %v417_v8  ;;  %v425_v8 = vand.u32 2147483647, %v415_v12 }
  0xe3   :  { %v292_v21 = vpop.f32.mrf.mxu2  ;;  %vm426_vm11 = vcmp.eq.f32.partialorder %v425_v8, 8.507059e+37 }
  0xe4   :  { %v2814_v4 = vadd.f32 %v292_v21, %v2765_v20  ;;  %v333_v61 = vpop.f32.mrf.mxu3 }
  0xe5   :  { %v2816_v35 = vadd.f32 %v333_v61, %v129_v18  ;;  %v464_v0 = vpop.f32.mrf.mxu1  ;;  %v272_v61 = vadd.f32 %v2757_v2, %v2765_v20 }
  0xe6   :  { %3579 = vst [vmem:[#allocation75_spill] sm:$0xff] %v2814_v4  ;;  %v465_v6 = vadd.f32 %v464_v0, %v231_v57 }
  0xe7   :  { %3580 = vst [vmem:[#allocation76_spill] sm:$0xff] %v2816_v35 }
  0xe8   :  { %v1840_v13 = vmul.f32 -1.442695, %v465_v6  ;;  %v419_v6 = vmul.f32 %v1908_v14, %v418_v9 }
  0xea   :  { %1909 = vpow2.f32 %v1840_v13 }
  0xeb   :  { %v519_v21 = vpop.f32.mrf.mxu2 }
  0xec   :  { %v556_v17 = vpop.f32.mrf.mxu3  ;;  %v520_v0 = vadd.f32 %v519_v21, %v272_v61 }
  0xed   :  { %v557_v22 = vadd.f32 %v556_v17, %v313_v16  ;;  %v420_v17 = vadd.f32 %v1908_v14, %v419_v6 }
  0xef   :  { %v1841_v7 = vmul.f32 -1.442695, %v557_v22  ;;  %v424_v20 = vsel %vm423_vm8, %v1908_v14, %v420_v17 }
  0xf0   :  { %v1910_v23 = vpop.eup %1909 }
  0xf1   :  { %v470_v48 = vadd.f32 1.0, %v1910_v23  ;;  %1911 = vpow2.f32 %v1841_v7  ;;  %v427_v7 = vand.u32 2147483648, %v415_v12 }
  0xf3   :  { %1913 = vrcp.f32 %v470_v48  ;;  %v482_v22 = vand.u32 2147483648, %v470_v48  ;;  %v480_v23 = vand.u32 2147483647, %v470_v48  ;;  %vm476_vm9 = vweird.f32 %v470_v48 }
  0xf5   :  { %v483_v61 = vor.u32 1.1754944e-38, %v482_v22  ;;  %vm481_vm12 = vcmp.eq.f32.partialorder %v480_v23, 8.507059e+37  ;;  %v3610_v23 = vld [vmem:[#allocation41_spill] sm:$0xff] }
  0xf6   :  { %vm1850_vm2 = vcmp.gt.s32.totalorder %v3610_v23, 2  ;;  %vm1854_vm3 = vcmp.gt.s32.totalorder %v3610_v23, 3 }
  0xf7   :  { %v1912_v57 = vpop.eup %1911 }
  0xf8   :  { %v562_v13 = vadd.f32 1.0, %v1912_v57  ;;  %v428_v57 = vor.u32 1.1754944e-38, %v427_v7 }
  0xf9   :  { %v1914_v4 = vpop.eup %1913 }
  0xfa   :  { %v472_v63 = vmul.f32 %v1914_v4, %v470_v48  ;;  %1915 = vrcp.f32 %v562_v13  ;;  %vm477_vm7 = vweird.f32 %v1914_v4  ;;  %v574_v48 = vand.u32 2147483648, %v562_v13 }
  0xfb   :  { %1917 = vtanh.f32 %v520_v0  ;;  %vm478_vm10 = vmor %vm476_vm9, %vm477_vm7  ;;  %vm568_vm15 = vweird.f32 %v562_v13  ;;  %v572_v22 = vand.u32 2147483647, %v562_v13  ;;  %vm1870_vm9 = vcmp.gt.s32.totalorder %v3610_v23, 7  ;;  %v2961_v23 = vld [vmem:[#allocation10 + $0x198] sm:$0xff] }
  0xfc   :  { %v473_v18 = vsub.f32 1.0, %v472_v63  ;;  %v429_v63 = vsel %vm426_vm11, %v428_v57, %v424_v20  ;;  %v575_v7 = vor.u32 1.1754944e-38, %v574_v48  ;;  %v3611_v20 = vmov 0  }
  0xfd   :  { %vm573_vm1 = vcmp.eq.f32.partialorder %v572_v22, 8.507059e+37  ;;  %v1059_v48 = vsel %vm1854_vm3, 1, %v3611_v20 }
  0xfe   :  { %v474_v16 = vmul.f32 %v1914_v4, %v473_v18 }
 0x100   :  { %v1916_v2 = vpop.eup %1915  ;;  %v475_v9 = vadd.f32 %v1914_v4, %v474_v16 }
 0x101   :  { %v1918_v21 = vpop.eup %1917  ;;  %v564_v0 = vmul.f32 %v1916_v2, %v562_v13  ;;  %vm569_vm14 = vweird.f32 %v1916_v2 }
 0x102   :  { %v479_v6 = vsel %vm478_vm10, %v1914_v4, %v475_v9  ;;  %v579_v12 = vmul.f32 %v1918_v21, %v429_v63  ;;  %vm570_vm0 = vmor %vm568_vm15, %vm569_vm14  ;;  %v901_v9 = vsel %vm1850_vm2, 1, %v3611_v20 }
 0x103   :  { %v484_v35 = vsel %vm481_vm12, %v483_v61, %v479_v6  ;;  %v565_v5 = vsub.f32 1.0, %v564_v0  ;;  %903 = vperm.xlu1 %1902, %v901_v9   ;;  %v3612_v0 = vld [vmem:[#allocation55_spill] sm:$0xff]  ;;  %v2967_v9 = vld [vmem:[#allocation10 + $0x168] sm:$0xff] }
 0x104   :  { %v578_v18 = vmul.f32 0.0, %v484_v35 }
 0x105   :  { %v566_v1 = vmul.f32 %v1916_v2, %v565_v5 }
 0x106   :  { %v580_v10 = vadd.f32 %v579_v12, %v578_v18 }
 0x107   :  { %v567_v14 = vadd.f32 %v1916_v2, %v566_v1 }
 0x108   :  { %1919 = vtanh.f32 %v580_v10  ;;  %v2822_v17 = vsel %vm589_vm13, %v580_v10, 0.0 }
 0x109   :  { %v571_v4 = vsel %vm570_vm0, %v1916_v2, %v567_v14 }
 0x10a   :  { %v576_v35 = vsel %vm573_vm1, %v575_v7, %v571_v4 }
 0x10b   :  { %1061 = vperm.xlu1 %1902, %v1059_v48   ;;  %v2997_v48 = vld [vmem:[#allocation10 + $0x138] sm:$0xff] }
 0x10e   :  { %v1920_v16 = vpop.eup %1919 }
 0x10f   :  { %v582_v8 = vmul.f32 %v1920_v16, %v576_v35 }
 0x111   :  { %1872 = vmatmul.msk.f32.vlgmr.msra.gmra.mxu0 %vm589_vm13, %v582_v8  ;;  %1873 = vmatmul.msk.f32.vlgmr.msrb.gmra.mxu1 %vm589_vm13, %v582_v8  ;;  %v2827_v1 = vsel %vm589_vm13, %v582_v8, 0.0 }
 0x112   :  { %1874 = vmatmul.msk.f32.vlgmr.msrb.gmra.mxu2 %vm589_vm13, %v582_v8  ;;  %1875 = vmatmul.msk.f32.vlgmr.msrb.gmra.mxu3 %vm589_vm13, %v582_v8 }
 0x113   :  { %913 = vmatpush.msra.mxu0 %v2364_v11  ;;  %952 = vmatpush.msrb.mxu1 %v2380_v24  ;;  %v3581_v11 = vld [vmem:[#allocation31_spill] sm:$0xff]  ;;  %v3584_v24 = vld [vmem:[#allocation25_spill] sm:$0xff] }
 0x114   :  { %991 = vmatpush.msrb.mxu2 %v2391_v28  ;;  %1012 = vmatpush.msrb.mxu3 %v2383_v25  ;;  %v3585_v25 = vld [vmem:[#allocation35_spill] sm:$0xff]  ;;  %v3588_v28 = vld [vmem:[#allocation28_spill] sm:$0xff] }
 0x115   :  { %914 = vmatpush.msra.mxu0 %v2372_v15  ;;  %953 = vmatpush.msrb.mxu1 %v2389_v27  ;;  %v3582_v15 = vld [vmem:[#allocation26_spill] sm:$0xff]  ;;  %v3587_v27 = vld [vmem:[#allocation23_spill] sm:$0xff] }
 0x116   :  { %992 = vmatpush.msrb.mxu2 %v2403_v32  ;;  %1013 = vmatpush.msrb.mxu3 %v2397_v30  ;;  %v3590_v30 = vld [vmem:[#allocation33_spill] sm:$0xff]  ;;  %v3592_v32 = vld [vmem:[#allocation32_spill] sm:$0xff] }
 0x117   :  { %915 = vmatpush.msra.mxu0 %v2376_v19  ;;  %954 = vmatpush.msrb.mxu1 %v2401_v31  ;;  %v3583_v19 = vld [vmem:[#allocation22_spill] sm:$0xff]  ;;  %v3591_v31 = vld [vmem:[#allocation24_spill] sm:$0xff] }
 0x118   :  { %993 = vmatpush.msrb.mxu2 %v2431_v41  ;;  %1014 = vmatpush.msrb.mxu3 %v2408_v34  ;;  %v3594_v34 = vld [vmem:[#allocation37_spill] sm:$0xff]  ;;  %v3600_v41 = vld [vmem:[#allocation39_spill] sm:$0xff] }
 0x119   :  { %916 = vmatpush.msra.mxu0 %v2385_v26  ;;  %955 = vmatpush.msrb.mxu1 %v2413_v36  ;;  %v3586_v26 = vld [vmem:[#allocation29_spill] sm:$0xff]  ;;  %v3595_v36 = vld [vmem:[#allocation27_spill] sm:$0xff] }
 0x11a   :  { %994 = vmatpush.msrb.mxu2 %v2443_v45  ;;  %1015 = vmatpush.msrb.mxu3 %v2425_v39  ;;  %v3598_v39 = vld [vmem:[#allocation40_spill] sm:$0xff]  ;;  %v3604_v45 = vld [vmem:[#allocation43_spill] sm:$0xff] }
 0x11b   :  { %917 = vmatpush.msra.mxu0 %v2395_v29  ;;  %956 = vmatpush.msrb.mxu1 %v2423_v38  ;;  %v3589_v29 = vld [vmem:[#allocation38_spill] sm:$0xff]  ;;  %v3597_v38 = vld [vmem:[#allocation45_spill] sm:$0xff] }
 0x11c   :  { %995 = vmatpush.msrb.mxu2 %v2453_v49  ;;  %1016 = vmatpush.msrb.mxu3 %v2437_v43  ;;  %v3602_v43 = vld [vmem:[#allocation44_spill] sm:$0xff] }
 0x11d   :  { %918 = vmatpush.msra.mxu0 %v2406_v33  ;;  %957 = vmatpush.msrb.mxu1 %v2435_v42  ;;  %v3593_v33 = vld [vmem:[#allocation42_spill] sm:$0xff] }
 0x11e   :  { %996 = vmatpush.msrb.mxu2 %v2471_v54  ;;  %1017 = vmatpush.msrb.mxu3 %v2449_v47  ;;  %v3601_v42 = vld [vmem:[#allocation46_spill] sm:$0xff]  ;;  %v3606_v47 = vld [vmem:[#allocation47_spill] sm:$0xff] }
 0x11f   :  { %919 = vmatpush.msra.mxu0 %v2418_v37  ;;  %958 = vmatpush.msrb.mxu1 %v2447_v46  ;;  %v3596_v37 = vld [vmem:[#allocation36_spill] sm:$0xff] }
 0x120   :  { %997 = vmatpush.msrb.mxu2 %v2483_v58  ;;  %1018 = vmatpush.msrb.mxu3 %v2464_v52  ;;  %v3605_v46 = vld [vmem:[#allocation48_spill] sm:$0xff] }
 0x121   :  { %920 = vmatpush.msra.mxu0 %v2429_v40  ;;  %959 = vmatpush.msrb.mxu1 %v2462_v51  ;;  %v3599_v40 = vld [vmem:[#allocation30_spill] sm:$0xff]  ;;  %v3607_v51 = vld [vmem:[#allocation52_spill] sm:$0xff] }
 0x122   :  { %998 = vmatpush.msrb.mxu2 %v2493_v62  ;;  %1019 = vmatpush.msrb.mxu3 %v2477_v56 }
 0x123   :  { %921 = vmatpush.msra.mxu0 %v2440_v44  ;;  %960 = vmatpush.msrb.mxu1 %v2475_v55  ;;  %v3603_v44 = vld [vmem:[#allocation34_spill] sm:$0xff] }
 0x124   :  { %999 = vmatpush.msrb.mxu2 %v2511_v3  ;;  %1020 = vmatpush.msrb.mxu3 %v2489_v60 }
 0x125   :  { %922 = vmatpush.msra.mxu0 %v2457_v50  ;;  %961 = vmatpush.msrb.mxu1 %v2487_v59  ;;  %v3609_v59 = vld [vmem:[#allocation56_spill] sm:$0xff] }
 0x126   :  { %1000 = vmatpush.msrb.mxu2 %v3581_v11  ;;  %1021 = vmatpush.msrb.mxu3 %v3582_v15 }
 0x127   :  { %923 = vmatpush.msra.mxu0 %v3583_v19  ;;  %962 = vmatpush.msrb.mxu1 %v3584_v24 }
 0x128   :  { %1001 = vmatpush.msrb.mxu2 %v3585_v25  ;;  %1022 = vmatpush.msrb.mxu3 %v3586_v26 }
 0x129   :  { %924 = vmatpush.msra.mxu0 %v3587_v27  ;;  %963 = vmatpush.msrb.mxu1 %v3588_v28 }
 0x12a   :  { %1002 = vmatpush.msrb.mxu2 %v3589_v29  ;;  %1023 = vmatpush.msrb.mxu3 %v3590_v30 }
 0x12b   :  { %925 = vmatpush.msra.mxu0 %v3591_v31  ;;  %964 = vmatpush.msrb.mxu1 %v3592_v32 }
 0x12c   :  { %1003 = vmatpush.msrb.mxu2 %v3593_v33  ;;  %1024 = vmatpush.msrb.mxu3 %v3594_v34 }
 0x12d   :  { %926 = vmatpush.msra.mxu0 %v3595_v36  ;;  %965 = vmatpush.msrb.mxu1 %v3596_v37  ;;  %v1691_v36 = vsel %vm1870_vm9, 1, %v3611_v20  ;;  %v3099_v20 = vld [vmem:[#allocation10 + $0x8] sm:$0xff] }
 0x12e   :  { %1004 = vmatpush.msrb.mxu2 %v3597_v38  ;;  %1025 = vmatpush.msrb.mxu3 %v3598_v39  ;;  %v746_v39 = vpop.permute.xlu0 %745  ;;  %3638 = vst [vmem:[#allocation47_spill] sm:$0xff] %v3099_v20 }
 0x12f   :  { %927 = vmatpush.msra.mxu0 %v3599_v40  ;;  %966 = vmatpush.msrb.mxu1 %v3600_v41  ;;  %vm747_vm13 = vcmp.eq.s32.totalorder %v746_v39, 1  ;;  %v3069_v39 = vld [vmem:[#allocation10 + $0x78] sm:$0xff] }
 0x130   :  { %1005 = vmatpush.msrb.mxu2 %v3601_v42  ;;  %1026 = vmatpush.msrb.mxu3 %v3602_v43  ;;  %3628 = vst [vmem:[#allocation36_spill] sm:$0xff] %v3069_v39 }
 0x131   :  { %928 = vmatpush.msra.mxu0 %v3603_v44  ;;  %967 = vmatpush.msrb.mxu1 %v3604_v45 }
 0x132   :  { %1006 = vmatpush.msrb.mxu2 %v3605_v46  ;;  %1027 = vmatpush.msrb.mxu3 %v3606_v47 }
 0x133   :  { %1693 = vperm.xlu1 %1902, %v1691_v36   ;;  %v3060_v36 = vld [vmem:[#allocation10 + $0x60] sm:$0xff] }
 0x134   :  { %3625 = vst [vmem:[#allocation42_spill] sm:$0xff] %v3060_v36 }
 0x18e   :  { %v614_v49 = vpop.f32.mrf.mxu0  ;;  %v653_v50 = vpop.f32.mrf.mxu1 }
 0x18f   :  { %v615_v52 = vadd.f32 %v614_v49, %v3607_v51  ;;  %v654_v54 = vadd.f32 %v653_v50, %v3608_v53  ;;  %v2922_v53 = vld [vmem:[#allocation10 + $0x1f0] sm:$0xff] }
 0x191   :  { %v1843_v55 = vmul.f32 -1.442695, %v615_v52  ;;  %v1844_v56 = vmul.f32 -1.442695, %v654_v54  ;;  %v2919_v52 = vld [vmem:[#allocation10 + $0x1e8] sm:$0xff]  ;;  %v2928_v54 = vld [vmem:[#allocation10 + $0x1c0] sm:$0xff] }
 0x193   :  { %1921 = vpow2.f32 %v1843_v55  ;;  %v2931_v55 = vld [vmem:[#allocation10 + $0x1c8] sm:$0xff] }
 0x194   :  { %1923 = vpow2.f32 %v1844_v56  ;;  %v2934_v56 = vld [vmem:[#allocation10 + $0x1d0] sm:$0xff] }
 0x195   :  { %v713_v58 = vpop.f32.mrf.mxu3  ;;  %v692_v2 = vpop.f32.mrf.mxu2 }
 0x196   :  { %v714_v60 = vadd.f32 %v713_v58, %v3609_v59  ;;  %v693_v6 = vadd.f32 %v692_v2, %v3612_v0  ;;  %v2937_v58 = vld [vmem:[#allocation10 + $0x1d8] sm:$0xff]  ;;  %v2940_v59 = vld [vmem:[#allocation10 + $0x1a0] sm:$0xff]  ;;  %v2979_v0 = vld [vmem:[#allocation10 + $0x148] sm:$0xff] }
 0x197   :  { %v2964_v2 = vld [vmem:[#allocation10 + $0x160] sm:$0xff] }
 0x198   :  { %v1845_v62 = vmul.f32 -1.442695, %v714_v60  ;;  %v2943_v60 = vld [vmem:[#allocation10 + $0x1a8] sm:$0xff] }
 0x199   :  { %v1922_v3 = vpop.eup %1921 }
 0x19a   :  { %v1924_v10 = vpop.eup %1923  ;;  %v620_v5 = vadd.f32 1.0, %v1922_v3  ;;  %1925 = vpow2.f32 %v1845_v62  ;;  %v2946_v62 = vld [vmem:[#allocation10 + $0x1b0] sm:$0xff]  ;;  %v2949_v3 = vld [vmem:[#allocation10 + $0x1b8] sm:$0xff] }
 0x19b   :  { %v659_v13 = vadd.f32 1.0, %v1924_v10  ;;  %v2952_v10 = vld [vmem:[#allocation10 + $0x180] sm:$0xff] }
 0x19c   :  { %1927 = vrcp.f32 %v620_v5  ;;  %v632_v4 = vand.u32 2147483648, %v620_v5  ;;  %v630_v35 = vand.u32 2147483647, %v620_v5  ;;  %vm626_vm7 = vweird.f32 %v620_v5 }
 0x19d   :  { %1929 = vrcp.f32 %v659_v13  ;;  %v671_v7 = vand.u32 2147483648, %v659_v13  ;;  %v669_v11 = vand.u32 2147483647, %v659_v13  ;;  %vm665_vm6 = vweird.f32 %v659_v13 }
 0x19e   :  { %v633_v24 = vor.u32 1.1754944e-38, %v632_v4  ;;  %vm631_vm11 = vcmp.eq.f32.partialorder %v630_v35, 8.507059e+37  ;;  %v3003_v4 = vld [vmem:[#allocation10 + $0x108] sm:$0xff]  ;;  %v3012_v35 = vld [vmem:[#allocation10 + $0xe0] sm:$0xff] }
 0x19f   :  { %v672_v27 = vor.u32 1.1754944e-38, %v671_v7  ;;  %vm670_vm12 = vcmp.eq.f32.partialorder %v669_v11, 8.507059e+37  ;;  %v3006_v7 = vld [vmem:[#allocation10 + $0x110] sm:$0xff] }
 0x1a0   :  { %v1926_v21 = vpop.eup %1925  ;;  %v3018_v11 = vld [vmem:[#allocation10 + $0xf0] sm:$0xff] }
 0x1a1   :  { %v719_v61 = vadd.f32 1.0, %v1926_v21  ;;  %v2970_v21 = vld [vmem:[#allocation10 + $0x170] sm:$0xff] }
 0x1a2   :  { %v1928_v57 = vpop.eup %1927 }
 0x1a3   :  { %v1930_v63 = vpop.eup %1929  ;;  %v622_v18 = vmul.f32 %v1928_v57, %v620_v5  ;;  %1931 = vrcp.f32 %v719_v61  ;;  %vm627_vm4 = vweird.f32 %v1928_v57  ;;  %v731_v42 = vand.u32 2147483648, %v719_v61  ;;  %v2955_v5 = vld [vmem:[#allocation10 + $0x188] sm:$0xff] }
 0x1a4   :  { %v661_v12 = vmul.f32 %v1930_v63, %v659_v13  ;;  %1933 = vtanh.f32 %v693_v6  ;;  %vm666_vm5 = vweird.f32 %v1930_v63  ;;  %vm628_vm8 = vmor %vm626_vm7, %vm627_vm4  ;;  %vm725_vm15 = vweird.f32 %v719_v61  ;;  %v2958_v13 = vld [vmem:[#allocation10 + $0x190] sm:$0xff] }
 0x1a5   :  { %v623_v14 = vsub.f32 1.0, %v622_v18  ;;  %vm667_vm10 = vmor %vm665_vm6, %vm666_vm5  ;;  %v729_v44 = vand.u32 2147483647, %v719_v61  ;;  %v732_v46 = vor.u32 1.1754944e-38, %v731_v42  ;;  %v2982_v6 = vld [vmem:[#allocation10 + $0x150] sm:$0xff]  ;;  %v2988_v18 = vld [vmem:[#allocation10 + $0x120] sm:$0xff] }
 0x1a6   :  { %v662_v22 = vsub.f32 1.0, %v661_v12  ;;  %v2991_v12 = vld [vmem:[#allocation10 + $0x128] sm:$0xff]  ;;  %v3078_v42 = vld [vmem:[#allocation10 + $0x50] sm:$0xff] }
 0x1a7   :  { %v624_v16 = vmul.f32 %v1928_v57, %v623_v14  ;;  %vm730_vm1 = vcmp.eq.f32.partialorder %v729_v44, 8.507059e+37  ;;  %v2994_v14 = vld [vmem:[#allocation10 + $0x130] sm:$0xff]  ;;  %3631 = vst [vmem:[#allocation30_spill] sm:$0xff] %v3078_v42  ;;  %v3081_v44 = vld [vmem:[#allocation10 + $0x58] sm:$0xff] }
 0x1a8   :  { %v663_v8 = vmul.f32 %v1930_v63, %v662_v22  ;;  %v3000_v22 = vld [vmem:[#allocation10 + $0x100] sm:$0xff]  ;;  %3632 = vst [vmem:[#allocation39_spill] sm:$0xff] %v3081_v44 }
 0x1a9   :  { %v1932_v15 = vpop.eup %1931  ;;  %v625_v19 = vadd.f32 %v1928_v57, %v624_v16  ;;  %v3009_v16 = vld [vmem:[#allocation10 + $0x118] sm:$0xff] }
 0x1aa   :  { %v664_v25 = vadd.f32 %v1930_v63, %v663_v8  ;;  %v721_v26 = vmul.f32 %v1932_v15, %v719_v61  ;;  %v1934_v29 = vpop.eup %1933  ;;  %vm726_vm14 = vweird.f32 %v1932_v15  ;;  %v2973_v61 = vld [vmem:[#allocation10 + $0x178] sm:$0xff]  ;;  %v3015_v8 = vld [vmem:[#allocation10 + $0xe8] sm:$0xff] }
 0x1ab   :  { %v629_v28 = vsel %vm628_vm8, %v1928_v57, %v625_v19  ;;  %vm727_vm0 = vmor %vm725_vm15, %vm726_vm14  ;;  %v2976_v57 = vld [vmem:[#allocation10 + $0x140] sm:$0xff] }
 0x1ac   :  { %v634_v30 = vsel %vm631_vm11, %v633_v24, %v629_v28  ;;  %v668_v31 = vsel %vm667_vm10, %v1930_v63, %v664_v25  ;;  %v722_v32 = vsub.f32 1.0, %v721_v26  ;;  %v2985_v63 = vld [vmem:[#allocation10 + $0x158] sm:$0xff]  ;;  %v3024_v19 = vld [vmem:[#allocation10 + $0xc0] sm:$0xff]  ;;  %v3027_v24 = vld [vmem:[#allocation10 + $0xc8] sm:$0xff] }
 0x1ad   :  { %v673_v33 = vsel %vm670_vm12, %v672_v27, %v668_v31  ;;  %v736_v34 = vmul.f32 %v1934_v29, %v634_v30  ;;  %3613 = vst [vmem:[#allocation31_spill] sm:$0xff] %v3024_v19  ;;  %v3030_v25 = vld [vmem:[#allocation10 + $0xd0] sm:$0xff]  ;;  %v3033_v26 = vld [vmem:[#allocation10 + $0xd8] sm:$0xff]  ;;  %v3036_v27 = vld [vmem:[#allocation10 + $0xa0] sm:$0xff] }
 0x1ae   :  { %v735_v37 = vmul.f32 %v673_v33, %v2822_v17  ;;  %v723_v38 = vmul.f32 %v1932_v15, %v722_v32  ;;  %3614 = vst [vmem:[#allocation26_spill] sm:$0xff] %v3027_v24  ;;  %v3039_v28 = vld [vmem:[#allocation10 + $0xa8] sm:$0xff]  ;;  %v3042_v29 = vld [vmem:[#allocation10 + $0xb0] sm:$0xff]  ;;  %v3045_v30 = vld [vmem:[#allocation10 + $0xb8] sm:$0xff] }
 0x1af   :  { %3615 = vst [vmem:[#allocation22_spill] sm:$0xff] %v3030_v25  ;;  %v3048_v31 = vld [vmem:[#allocation10 + $0x80] sm:$0xff]  ;;  %v3051_v32 = vld [vmem:[#allocation10 + $0x88] sm:$0xff]  ;;  %v3054_v33 = vld [vmem:[#allocation10 + $0x90] sm:$0xff] }
 0x1b0   :  { %v737_v40 = vadd.f32 %v736_v34, %v735_v37  ;;  %v724_v41 = vadd.f32 %v1932_v15, %v723_v38  ;;  %3616 = vst [vmem:[#allocation25_spill] sm:$0xff] %v3033_v26  ;;  %v3057_v34 = vld [vmem:[#allocation10 + $0x98] sm:$0xff]  ;;  %v3063_v37 = vld [vmem:[#allocation10 + $0x68] sm:$0xff]  ;;  %v3066_v38 = vld [vmem:[#allocation10 + $0x70] sm:$0xff] }
 0x1b1   :  { %3617 = vst [vmem:[#allocation35_spill] sm:$0xff] %v3036_v27 }
 0x1b2   :  { %1935 = vtanh.f32 %v737_v40  ;;  %v2907_v43 = vsel %vm747_vm13, %v737_v40, %v2822_v17  ;;  %v728_v45 = vsel %vm727_vm0, %v1932_v15, %v724_v41  ;;  %v2916_v17 = vld [vmem:[#allocation10 + $0x1e0] sm:$0xff]  ;;  %v3021_v15 = vld [vmem:[#allocation10 + $0xf8] sm:$0xff]  ;;  %3618 = vst [vmem:[#allocation29_spill] sm:$0xff] %v3039_v28  ;;  %v3075_v41 = vld [vmem:[#allocation10 + $0x48] sm:$0xff] }
 0x1b3   :  { %v733_v49 = vsel %vm730_vm1, %v732_v46, %v728_v45  ;;  %3619 = vst [vmem:[#allocation23_spill] sm:$0xff] %v3042_v29  ;;  %v3072_v40 = vld [vmem:[#allocation10 + $0x40] sm:$0xff]  ;;  %v3087_v46 = vld [vmem:[#allocation10 + $0x28] sm:$0xff] }
 0x1b4   :  { %3620 = vst [vmem:[#allocation28_spill] sm:$0xff] %v3045_v30  ;;  %v3084_v45 = vld [vmem:[#allocation10 + $0x20] sm:$0xff] }
 0x1b5   :  { %3621 = vst [vmem:[#allocation38_spill] sm:$0xff] %v3048_v31 }
 0x1b6   :  { %3622 = vst [vmem:[#allocation33_spill] sm:$0xff] %v3051_v32 }
 0x1b7   :  { %3623 = vst [vmem:[#allocation24_spill] sm:$0xff] %v3054_v33 }
 0x1b8   :  { %v1936_v47 = vpop.eup %1935  ;;  %3624 = vst [vmem:[#allocation32_spill] sm:$0xff] %v3057_v34 }
 0x1b9   :  { %v739_v50 = vmul.f32 %v1936_v47, %v733_v49  ;;  %3626 = vst [vmem:[#allocation37_spill] sm:$0xff] %v3063_v37  ;;  %v3090_v47 = vld [vmem:[#allocation10 + $0x30] sm:$0xff]  ;;  %v3093_v49 = vld [vmem:[#allocation10 + $0x38] sm:$0xff] }
 0x1ba   :  { %3627 = vst [vmem:[#allocation27_spill] sm:$0xff] %v3066_v38 }
 0x1bb   :  { %v2910_v51 = vsel %vm747_vm13, %v739_v50, %v2827_v1  ;;  %v2925_v1 = vld [vmem:[#allocation10 + $0x1f8] sm:$0xff]  ;;  %3629 = vst [vmem:[#allocation45_spill] sm:$0xff] %v3072_v40  ;;  %v3096_v50 = vld [vmem:[#allocation10] sm:$0xff] }
 0x1bc   :  { %771 = vmatmul.f32.vlgmr.msrb.gmra.mxu0 %v2910_v51  ;;  %810 = vmatmul.f32.vlgmr.msra.gmra.mxu1 %v2910_v51  ;;  %3630 = vst [vmem:[#allocation40_spill] sm:$0xff] %v3075_v41 }
 0x1bd   :  { %849 = vmatmul.f32.vlgmr.msra.gmra.mxu2 %v2910_v51  ;;  %870 = vmatmul.f32.vlgmr.msra.gmra.mxu3 %v2910_v51  ;;  %3633 = vst [vmem:[#allocation46_spill] sm:$0xff] %v3084_v45 }
 0x1be   :  { %1071 = vmatpush.msrb.mxu0 %v2916_v17  ;;  %1110 = vmatpush.msra.mxu1 %v2919_v52  ;;  %3634 = vst [vmem:[#allocation44_spill] sm:$0xff] %v3087_v46 }
 0x1bf   :  { %1149 = vmatpush.msra.mxu2 %v2922_v53  ;;  %1170 = vmatpush.msra.mxu3 %v2925_v1  ;;  %3635 = vst [vmem:[#allocation34_spill] sm:$0xff] %v3090_v47 }
 0x1c0   :  { %1072 = vmatpush.msrb.mxu0 %v2928_v54  ;;  %1111 = vmatpush.msra.mxu1 %v2931_v55  ;;  %3636 = vst [vmem:[#allocation43_spill] sm:$0xff] %v3093_v49 }
 0x1c1   :  { %1150 = vmatpush.msra.mxu2 %v2934_v56  ;;  %1171 = vmatpush.msra.mxu3 %v2937_v58  ;;  %3637 = vst [vmem:[#allocation48_spill] sm:$0xff] %v3096_v50 }
 0x1c2   :  { %1073 = vmatpush.msrb.mxu0 %v2940_v59  ;;  %1112 = vmatpush.msra.mxu1 %v2943_v60 }
 0x1c3   :  { %1151 = vmatpush.msra.mxu2 %v2946_v62  ;;  %1172 = vmatpush.msra.mxu3 %v2949_v3 }
 0x1c4   :  { %1074 = vmatpush.msrb.mxu0 %v2952_v10  ;;  %1113 = vmatpush.msra.mxu1 %v2955_v5 }
 0x1c5   :  { %1152 = vmatpush.msra.mxu2 %v2958_v13  ;;  %1173 = vmatpush.msra.mxu3 %v2961_v23 }
 0x1c6   :  { %1075 = vmatpush.msrb.mxu0 %v2964_v2  ;;  %1114 = vmatpush.msra.mxu1 %v2967_v9 }
 0x1c7   :  { %1153 = vmatpush.msra.mxu2 %v2970_v21  ;;  %1174 = vmatpush.msra.mxu3 %v2973_v61 }
 0x1c8   :  { %1076 = vmatpush.msrb.mxu0 %v2976_v57  ;;  %1115 = vmatpush.msra.mxu1 %v2979_v0 }
 0x1c9   :  { %1154 = vmatpush.msra.mxu2 %v2982_v6  ;;  %1175 = vmatpush.msra.mxu3 %v2985_v63 }
 0x1ca   :  { %1077 = vmatpush.msrb.mxu0 %v2988_v18  ;;  %1116 = vmatpush.msra.mxu1 %v2991_v12 }
 0x1cb   :  { %1155 = vmatpush.msra.mxu2 %v2994_v14  ;;  %1176 = vmatpush.msra.mxu3 %v2997_v48 }
 0x1cc   :  { %1078 = vmatpush.msrb.mxu0 %v3000_v22  ;;  %1117 = vmatpush.msra.mxu1 %v3003_v4 }
 0x1cd   :  { %1156 = vmatpush.msra.mxu2 %v3006_v7  ;;  %1177 = vmatpush.msra.mxu3 %v3009_v16 }
 0x1ce   :  { %1079 = vmatpush.msrb.mxu0 %v3012_v35  ;;  %1118 = vmatpush.msra.mxu1 %v3015_v8 }
 0x1cf   :  { %1157 = vmatpush.msra.mxu2 %v3018_v11  ;;  %1178 = vmatpush.msra.mxu3 %v3021_v15 }
 0x1d0   :  { %1080 = vmatpush.msrb.mxu0 %v3024_v19  ;;  %1119 = vmatpush.msra.mxu1 %v3027_v24  ;;  %v904_v24 = vpop.permute.xlu1 %903 }
 0x1d1   :  { %1158 = vmatpush.msra.mxu2 %v3030_v25  ;;  %1179 = vmatpush.msra.mxu3 %v3033_v26  ;;  %vm905_vm10 = vcmp.eq.s32.totalorder %v904_v24, 1  ;;  %v3648_v24 = vld [vmem:[#allocation25_spill] sm:$0xff] }
 0x1d2   :  { %1081 = vmatpush.msrb.mxu0 %v3036_v27  ;;  %1120 = vmatpush.msra.mxu1 %v3039_v28 }
 0x1d3   :  { %1159 = vmatpush.msra.mxu2 %v3042_v29  ;;  %1180 = vmatpush.msra.mxu3 %v3045_v30 }
 0x1d4   :  { %1082 = vmatpush.msrb.mxu0 %v3048_v31  ;;  %1121 = vmatpush.msra.mxu1 %v3051_v32 }
 0x1d5   :  { %1160 = vmatpush.msra.mxu2 %v3054_v33  ;;  %1181 = vmatpush.msra.mxu3 %v3057_v34 }
 0x1d6   :  { %1083 = vmatpush.msrb.mxu0 %v3060_v36  ;;  %1122 = vmatpush.msra.mxu1 %v3063_v37 }
 0x1d7   :  { %1161 = vmatpush.msra.mxu2 %v3066_v38  ;;  %1182 = vmatpush.msra.mxu3 %v3069_v39 }
 0x1d8   :  { %1084 = vmatpush.msrb.mxu0 %v3072_v40  ;;  %1123 = vmatpush.msra.mxu1 %v3075_v41  ;;  %v3642_v41 = vld [vmem:[#allocation58_spill] sm:$0xff] }
 0x1d9   :  { %1162 = vmatpush.msra.mxu2 %v3078_v42  ;;  %1183 = vmatpush.msra.mxu3 %v3081_v44  ;;  %v3641_v42 = vld [vmem:[#allocation53_spill] sm:$0xff] }
 0x1da   :  { %1085 = vmatpush.msrb.mxu0 %v3084_v45  ;;  %1124 = vmatpush.msra.mxu1 %v3087_v46  ;;  %v3102_v45 = vld [vmem:[#allocation10 + $0x10] sm:$0xff]  ;;  %v3105_v46 = vld [vmem:[#allocation10 + $0x18] sm:$0xff] }
 0x1db   :  { %1163 = vmatpush.msra.mxu2 %v3090_v47  ;;  %1184 = vmatpush.msra.mxu3 %v3093_v49  ;;  %3639 = vst [vmem:[#allocation52_spill] sm:$0xff] %v3102_v45 }
 0x1dc   :  { %1086 = vmatpush.msrb.mxu0 %v3096_v50  ;;  %1125 = vmatpush.msra.mxu1 %v3099_v20  ;;  %3640 = vst [vmem:[#allocation54_spill] sm:$0xff] %v3105_v46  ;;  %v3643_v20 = vld [vmem:[#allocation60_spill] sm:$0xff] }
 0x1dd   :  { %1164 = vmatpush.msra.mxu2 %v3102_v45  ;;  %1185 = vmatpush.msra.mxu3 %v3105_v46 }
 0x239   :  { %v772_v47 = vpop.f32.mrf.mxu0  ;;  %v811_v44 = vpop.f32.mrf.mxu1 }
 0x23a   :  { %v773_v49 = vadd.f32 %v772_v47, %v3641_v42  ;;  %v812_v40 = vadd.f32 %v811_v44, %v3642_v41  ;;  %v3644_v41 = vld [vmem:[#allocation59_spill] sm:$0xff] }
 0x23c   :  { %v1847_v39 = vmul.f32 -1.442695, %v773_v49  ;;  %v1848_v50 = vmul.f32 -1.442695, %v812_v40 }
 0x23e   :  { %1937 = vpow2.f32 %v1847_v39 }
 0x23f   :  { %1939 = vpow2.f32 %v1848_v50 }
 0x240   :  { %v871_v38 = vpop.f32.mrf.mxu3  ;;  %v850_v46 = vpop.f32.mrf.mxu2 }
 0x241   :  { %v872_v37 = vadd.f32 %v871_v38, %v3643_v20  ;;  %v851_v44 = vadd.f32 %v850_v46, %v3644_v41 }
 0x243   :  { %v1849_v36 = vmul.f32 -1.442695, %v872_v37 }
 0x244   :  { %v1938_v34 = vpop.eup %1937 }
 0x245   :  { %v1940_v45 = vpop.eup %1939  ;;  %v778_v33 = vadd.f32 1.0, %v1938_v34  ;;  %1941 = vpow2.f32 %v1849_v36 }
 0x246   :  { %v817_v32 = vadd.f32 1.0, %v1940_v45 }
 0x247   :  { %1943 = vrcp.f32 %v778_v33  ;;  %v790_v37 = vand.u32 2147483648, %v778_v33  ;;  %v788_v34 = vand.u32 2147483647, %v778_v33  ;;  %vm784_vm4 = vweird.f32 %v778_v33 }
 0x248   :  { %1945 = vrcp.f32 %v817_v32  ;;  %v829_v36 = vand.u32 2147483648, %v817_v32  ;;  %v827_v30 = vand.u32 2147483647, %v817_v32  ;;  %vm823_vm6 = vweird.f32 %v817_v32 }
 0x249   :  { %v791_v46 = vor.u32 1.1754944e-38, %v790_v37  ;;  %vm789_vm7 = vcmp.eq.f32.partialorder %v788_v34, 8.507059e+37 }
 0x24a   :  { %vm828_vm9 = vcmp.eq.f32.partialorder %v827_v30, 8.507059e+37 }
 0x24b   :  { %v1942_v31 = vpop.eup %1941 }
 0x24c   :  { %v877_v42 = vadd.f32 1.0, %v1942_v31 }
 0x24d   :  { %v1944_v47 = vpop.eup %1943 }
 0x24e   :  { %v1946_v40 = vpop.eup %1945  ;;  %v780_v39 = vmul.f32 %v1944_v47, %v778_v33  ;;  %1947 = vrcp.f32 %v877_v42  ;;  %vm785_vm2 = vweird.f32 %v1944_v47  ;;  %vm883_vm12 = vweird.f32 %v877_v42 }
 0x24f   :  { %v819_v49 = vmul.f32 %v1946_v40, %v817_v32  ;;  %1949 = vtanh.f32 %v851_v44  ;;  %vm824_vm3 = vweird.f32 %v1946_v40  ;;  %vm786_vm5 = vmor %vm784_vm4, %vm785_vm2  ;;  %v889_v32 = vand.u32 2147483648, %v877_v42 }
 0x250   :  { %v781_v50 = vsub.f32 1.0, %v780_v39  ;;  %vm825_vm8 = vmor %vm823_vm6, %vm824_vm3  ;;  %v830_v39 = vor.u32 1.1754944e-38, %v829_v36  ;;  %v3651_v36 = vld [vmem:[#allocation23_spill] sm:$0xff] }
 0x251   :  { %v820_v20 = vsub.f32 1.0, %v819_v49  ;;  %v890_v30 = vor.u32 1.1754944e-38, %v889_v32  ;;  %v3664_v32 = vld [vmem:[#allocation39_spill] sm:$0xff] }
 0x252   :  { %v782_v38 = vmul.f32 %v1944_v47, %v781_v50 }
 0x253   :  { %v821_v45 = vmul.f32 %v1946_v40, %v820_v20 }
 0x254   :  { %v1948_v29 = vpop.eup %1947  ;;  %v783_v31 = vadd.f32 %v1944_v47, %v782_v38 }
 0x255   :  { %v879_v41 = vmul.f32 %v1948_v29, %v877_v42  ;;  %v822_v28 = vadd.f32 %v1946_v40, %v821_v45  ;;  %v1950_v44 = vpop.eup %1949  ;;  %vm884_vm11 = vweird.f32 %v1948_v29  ;;  %v3652_v45 = vld [vmem:[#allocation28_spill] sm:$0xff] }
 0x256   :  { %v787_v27 = vsel %vm786_vm5, %v1944_v47, %v783_v31  ;;  %vm885_vm13 = vmor %vm883_vm12, %vm884_vm11  ;;  %v3653_v31 = vld [vmem:[#allocation38_spill] sm:$0xff] }
 0x257   :  { %v792_v49 = vsel %vm789_vm7, %v791_v46, %v787_v27  ;;  %v880_v50 = vsub.f32 1.0, %v879_v41  ;;  %v826_v26 = vsel %vm825_vm8, %v1946_v40, %v822_v28  ;;  %v887_v27 = vand.u32 2147483647, %v877_v42  ;;  %v3650_v42 = vld [vmem:[#allocation29_spill] sm:$0xff]  ;;  %v3655_v41 = vld [vmem:[#allocation24_spill] sm:$0xff] }
 0x258   :  { %v894_v20 = vmul.f32 %v1950_v44, %v792_v49  ;;  %v831_v25 = vsel %vm828_vm9, %v830_v39, %v826_v26  ;;  %v3654_v46 = vld [vmem:[#allocation33_spill] sm:$0xff]  ;;  %v3656_v39 = vld [vmem:[#allocation32_spill] sm:$0xff]  ;;  %v3657_v44 = vld [vmem:[#allocation42_spill] sm:$0xff] }
 0x259   :  { %v881_v19 = vmul.f32 %v1948_v29, %v880_v50  ;;  %v893_v33 = vmul.f32 %v831_v25, %v2907_v43  ;;  %vm888_vm14 = vcmp.eq.f32.partialorder %v887_v27, 8.507059e+37  ;;  %v3658_v49 = vld [vmem:[#allocation37_spill] sm:$0xff]  ;;  %v3659_v50 = vld [vmem:[#allocation27_spill] sm:$0xff]  ;;  %v3665_v27 = vld [vmem:[#allocation46_spill] sm:$0xff] }
 0x25b   :  { %v895_v37 = vadd.f32 %v894_v20, %v893_v33  ;;  %v882_v38 = vadd.f32 %v1948_v29, %v881_v19  ;;  %v3647_v19 = vld [vmem:[#allocation22_spill] sm:$0xff]  ;;  %v3660_v20 = vld [vmem:[#allocation36_spill] sm:$0xff]  ;;  %v3661_v33 = vld [vmem:[#allocation45_spill] sm:$0xff] }
 0x25d   :  { %1951 = vtanh.f32 %v895_v37  ;;  %v3115_v47 = vsel %vm905_vm10, %v895_v37, %v2907_v43  ;;  %v886_v28 = vsel %vm885_vm13, %v1948_v29, %v882_v38  ;;  %v3645_v43 = vld [vmem:[#allocation31_spill] sm:$0xff]  ;;  %v3662_v37 = vld [vmem:[#allocation40_spill] sm:$0xff]  ;;  %v3663_v38 = vld [vmem:[#allocation30_spill] sm:$0xff] }
 0x25e   :  { %v891_v40 = vsel %vm888_vm14, %v890_v30, %v886_v28  ;;  %v3649_v29 = vld [vmem:[#allocation35_spill] sm:$0xff]  ;;  %v3666_v28 = vld [vmem:[#allocation44_spill] sm:$0xff]  ;;  %v3667_v30 = vld [vmem:[#allocation34_spill] sm:$0xff] }
 0x263   :  { %v1952_v26 = vpop.eup %1951 }
 0x264   :  { %v897_v34 = vmul.f32 %v1952_v26, %v891_v40  ;;  %v3668_v26 = vld [vmem:[#allocation43_spill] sm:$0xff]  ;;  %v3669_v40 = vld [vmem:[#allocation48_spill] sm:$0xff] }
 0x266   :  { %v3119_v25 = vsel %vm905_vm10, %v897_v34, %v2910_v51  ;;  %v3646_v51 = vld [vmem:[#allocation26_spill] sm:$0xff]  ;;  %v3670_v34 = vld [vmem:[#allocation47_spill] sm:$0xff] }
 0x267   :  { %929 = vmatmul.f32.vlgmr.msra.gmra.mxu0 %v3119_v25  ;;  %968 = vmatmul.f32.vlgmr.msrb.gmra.mxu1 %v3119_v25 }
 0x268   :  { %1007 = vmatmul.f32.vlgmr.msrb.gmra.mxu2 %v3119_v25  ;;  %1028 = vmatmul.f32.vlgmr.msrb.gmra.mxu3 %v3119_v25 }
 0x269   :  { %1229 = vmatpush.msra.mxu0 %v2916_v17  ;;  %1268 = vmatpush.msrb.mxu1 %v2919_v52 }
 0x26a   :  { %1307 = vmatpush.msrb.mxu2 %v2922_v53  ;;  %1328 = vmatpush.msrb.mxu3 %v2925_v1 }
 0x26b   :  { %1230 = vmatpush.msra.mxu0 %v2928_v54  ;;  %1269 = vmatpush.msrb.mxu1 %v2931_v55 }
 0x26c   :  { %1308 = vmatpush.msrb.mxu2 %v2934_v56  ;;  %1329 = vmatpush.msrb.mxu3 %v2937_v58 }
 0x26d   :  { %1231 = vmatpush.msra.mxu0 %v2940_v59  ;;  %1270 = vmatpush.msrb.mxu1 %v2943_v60 }
 0x26e   :  { %1309 = vmatpush.msrb.mxu2 %v2946_v62  ;;  %1330 = vmatpush.msrb.mxu3 %v2949_v3 }
 0x26f   :  { %1232 = vmatpush.msra.mxu0 %v2952_v10  ;;  %1271 = vmatpush.msrb.mxu1 %v2955_v5 }
 0x270   :  { %1310 = vmatpush.msrb.mxu2 %v2958_v13  ;;  %1331 = vmatpush.msrb.mxu3 %v2961_v23 }
 0x271   :  { %1233 = vmatpush.msra.mxu0 %v2964_v2  ;;  %1272 = vmatpush.msrb.mxu1 %v2967_v9 }
 0x272   :  { %1311 = vmatpush.msrb.mxu2 %v2970_v21  ;;  %1332 = vmatpush.msrb.mxu3 %v2973_v61 }
 0x273   :  { %1234 = vmatpush.msra.mxu0 %v2976_v57  ;;  %1273 = vmatpush.msrb.mxu1 %v2979_v0 }
 0x274   :  { %1312 = vmatpush.msrb.mxu2 %v2982_v6  ;;  %1333 = vmatpush.msrb.mxu3 %v2985_v63 }
 0x275   :  { %1235 = vmatpush.msra.mxu0 %v2988_v18  ;;  %1274 = vmatpush.msrb.mxu1 %v2991_v12 }
 0x276   :  { %1313 = vmatpush.msrb.mxu2 %v2994_v14  ;;  %1334 = vmatpush.msrb.mxu3 %v2997_v48 }
 0x277   :  { %1236 = vmatpush.msra.mxu0 %v3000_v22  ;;  %1275 = vmatpush.msrb.mxu1 %v3003_v4 }
 0x278   :  { %1314 = vmatpush.msrb.mxu2 %v3006_v7  ;;  %1335 = vmatpush.msrb.mxu3 %v3009_v16 }
 0x279   :  { %1237 = vmatpush.msra.mxu0 %v3012_v35  ;;  %1276 = vmatpush.msrb.mxu1 %v3015_v8 }
 0x27a   :  { %1315 = vmatpush.msrb.mxu2 %v3018_v11  ;;  %1336 = vmatpush.msrb.mxu3 %v3021_v15 }
 0x27b   :  { %1238 = vmatpush.msra.mxu0 %v3645_v43  ;;  %1277 = vmatpush.msrb.mxu1 %v3646_v51 }
 0x27c   :  { %1316 = vmatpush.msrb.mxu2 %v3647_v19  ;;  %1337 = vmatpush.msrb.mxu3 %v3648_v24 }
 0x27d   :  { %1239 = vmatpush.msra.mxu0 %v3649_v29  ;;  %1278 = vmatpush.msrb.mxu1 %v3650_v42 }
 0x27e   :  { %1317 = vmatpush.msrb.mxu2 %v3651_v36  ;;  %1338 = vmatpush.msrb.mxu3 %v3652_v45 }
 0x27f   :  { %1240 = vmatpush.msra.mxu0 %v3653_v31  ;;  %1279 = vmatpush.msrb.mxu1 %v3654_v46 }
 0x280   :  { %1318 = vmatpush.msrb.mxu2 %v3655_v41  ;;  %1339 = vmatpush.msrb.mxu3 %v3656_v39 }
 0x281   :  { %1241 = vmatpush.msra.mxu0 %v3657_v44  ;;  %1280 = vmatpush.msrb.mxu1 %v3658_v49  ;;  %v3674_v49 = vld [vmem:[#allocation62_spill] sm:$0xff] }
 0x282   :  { %1319 = vmatpush.msrb.mxu2 %v3659_v50  ;;  %1340 = vmatpush.msrb.mxu3 %v3660_v20  ;;  %v3671_v20 = vld [vmem:[#allocation52_spill] sm:$0xff]  ;;  %v3673_v50 = vld [vmem:[#allocation57_spill] sm:$0xff] }
 0x283   :  { %1242 = vmatpush.msra.mxu0 %v3661_v33  ;;  %1281 = vmatpush.msrb.mxu1 %v3662_v37  ;;  %v3672_v33 = vld [vmem:[#allocation54_spill] sm:$0xff] }
 0x284   :  { %1320 = vmatpush.msrb.mxu2 %v3663_v38  ;;  %1341 = vmatpush.msrb.mxu3 %v3664_v32 }
 0x285   :  { %1243 = vmatpush.msra.mxu0 %v3665_v27  ;;  %1282 = vmatpush.msrb.mxu1 %v3666_v28 }
 0x286   :  { %1321 = vmatpush.msrb.mxu2 %v3667_v30  ;;  %1342 = vmatpush.msrb.mxu3 %v3668_v26  ;;  %v3675_v26 = vld [vmem:[#allocation64_spill] sm:$0xff] }
 0x287   :  { %1244 = vmatpush.msra.mxu0 %v3669_v40  ;;  %1283 = vmatpush.msrb.mxu1 %v3670_v34 }
 0x288   :  { %1322 = vmatpush.msrb.mxu2 %v3671_v20  ;;  %1343 = vmatpush.msrb.mxu3 %v3672_v33 }
 0x2e4   :  { %v930_v37 = vpop.f32.mrf.mxu0  ;;  %v969_v38 = vpop.f32.mrf.mxu1 }
 0x2e5   :  { %v931_v32 = vadd.f32 %v930_v37, %v3673_v50  ;;  %v970_v27 = vadd.f32 %v969_v38, %v3674_v49  ;;  %v2097_v50 = vld [vmem:[%s3407_s1] sm:$0xff]  ;;  %v3676_v37 = vmov 0   ;;  %s2286_s1 = smov [#allocation14]  }
 0x2e6   :  { %vm1858_vm15 = vcmp.gt.s32.totalorder %v2097_v50, 4  ;;  %vm1862_vm0 = vcmp.gt.s32.totalorder %v2097_v50, 5  ;;  %vm1705_vm6 = vcmp.eq.s32.totalorder %v2097_v50, 8  ;;  %s1769_s13 = sshll.u32 %s2286_s1, 4  ;;  %s1770_s13 = int_to_ptr.vmem [resolvable:$true] %s1769_s13 }
 0x2e7   :  { %v1851_v44 = vmul.f32 -1.442695, %v931_v32  ;;  %v1852_v28 = vmul.f32 -1.442695, %v970_v27 }
 0x2e9   :  { %1953 = vpow2.f32 %v1851_v44  ;;  %v1217_v44 = vsel %vm1858_vm15, 1, %v3676_v37 }
 0x2ea   :  { %1955 = vpow2.f32 %v1852_v28  ;;  %1219 = vperm.xlu2 %1903, %v1217_v44  }
 0x2eb   :  { %v1029_v30 = vpop.f32.mrf.mxu3  ;;  %v1008_v49 = vpop.f32.mrf.mxu2 }
 0x2ec   :  { %v1030_v39 = vadd.f32 %v1029_v30, %v3675_v26 }
 0x2ee   :  { %v1853_v40 = vmul.f32 -1.442695, %v1030_v39  ;;  %v3677_v39 = vld [vmem:[#allocation63_spill] sm:$0xff] }
 0x2ef   :  { %v1954_v41 = vpop.eup %1953  ;;  %v1009_v28 = vadd.f32 %v1008_v49, %v3677_v39 }
 0x2f0   :  { %v1956_v34 = vpop.eup %1955  ;;  %v936_v46 = vadd.f32 1.0, %v1954_v41  ;;  %1957 = vpow2.f32 %v1853_v40 }
 0x2f1   :  { %v975_v20 = vadd.f32 1.0, %v1956_v34  ;;  %v1375_v34 = vsel %vm1862_vm0, 1, %v3676_v37 }
 0x2f2   :  { %1959 = vrcp.f32 %v936_v46  ;;  %v948_v31 = vand.u32 2147483648, %v936_v46  ;;  %v946_v42 = vand.u32 2147483647, %v936_v46  ;;  %1377 = vperm.xlu2 %1903, %v1375_v34   ;;  %vm942_vm4 = vweird.f32 %v936_v46 }
 0x2f3   :  { %1961 = vrcp.f32 %v975_v20  ;;  %v987_v45 = vand.u32 2147483648, %v975_v20  ;;  %vm981_vm3 = vweird.f32 %v975_v20 }
 0x2f4   :  { %v949_v29 = vor.u32 1.1754944e-38, %v948_v31  ;;  %vm947_vm8 = vcmp.eq.f32.partialorder %v946_v42, 8.507059e+37  ;;  %v1062_v31 = vpop.permute.xlu1 %1061 }
 0x2f5   :  { %vm1063_vm10 = vcmp.eq.s32.totalorder %v1062_v31, 1  ;;  %v3694_v31 = vld [vmem:[#allocation45_spill] sm:$0xff] }
 0x2f6   :  { %v1958_v38 = vpop.eup %1957 }
 0x2f7   :  { %v1035_v32 = vadd.f32 1.0, %v1958_v38  ;;  %v985_v38 = vand.u32 2147483647, %v975_v20 }
 0x2f8   :  { %v1960_v27 = vpop.eup %1959 }
 0x2f9   :  { %v1962_v41 = vpop.eup %1961  ;;  %v938_v30 = vmul.f32 %v1960_v27, %v936_v46  ;;  %1963 = vrcp.f32 %v1035_v32  ;;  %vm943_vm1 = vweird.f32 %v1960_v27  ;;  %vm986_vm9 = vcmp.eq.f32.partialorder %v985_v38, 8.507059e+37  ;;  %v3682_v38 = vld [vmem:[#allocation35_spill] sm:$0xff] }
 0x2fa   :  { %v977_v26 = vmul.f32 %v1962_v41, %v975_v20  ;;  %1965 = vtanh.f32 %v1009_v28  ;;  %vm982_vm2 = vweird.f32 %v1962_v41  ;;  %vm944_vm5 = vmor %vm942_vm4, %vm943_vm1  ;;  %v1706_v20 = vsel %vm1705_vm6, 1, %v3676_v37 }
 0x2fb   :  { %v939_v40 = vsub.f32 1.0, %v938_v30  ;;  %vm983_vm7 = vmor %vm981_vm3, %vm982_vm2  ;;  %1708 = vperm.xlu2 %1903, %v1706_v20   ;;  %v1047_v42 = vand.u32 2147483648, %v1035_v32  ;;  %vm1041_vm12 = vweird.f32 %v1035_v32  ;;  %v3691_v20 = vld [vmem:[#allocation37_spill] sm:$0xff] }
 0x2fc   :  { %v978_v33 = vsub.f32 1.0, %v977_v26  ;;  %v988_v26 = vor.u32 1.1754944e-38, %v987_v45 }
 0x2fd   :  { %v940_v36 = vmul.f32 %v1960_v27, %v939_v40 }
 0x2fe   :  { %v979_v44 = vmul.f32 %v1962_v41, %v978_v33 }
 0x2ff   :  { %v1964_v49 = vpop.eup %1963  ;;  %v941_v39 = vadd.f32 %v1960_v27, %v940_v36 }
 0x300   :  { %v980_v30 = vadd.f32 %v1962_v41, %v979_v44  ;;  %v1037_v24 = vmul.f32 %v1964_v49, %v1035_v32  ;;  %v1966_v40 = vpop.eup %1965  ;;  %vm1042_vm11 = vweird.f32 %v1964_v49 }
 0x301   :  { %v945_v28 = vsel %vm944_vm5, %v1960_v27, %v941_v39  ;;  %vm1043_vm13 = vmor %vm1041_vm12, %vm1042_vm11  ;;  %v3684_v39 = vld [vmem:[#allocation23_spill] sm:$0xff] }
 0x302   :  { %v950_v19 = vsel %vm947_vm8, %v949_v29, %v945_v28  ;;  %v984_v51 = vsel %vm983_vm7, %v1962_v41, %v980_v30  ;;  %v1038_v33 = vsub.f32 1.0, %v1037_v24  ;;  %v1045_v24 = vand.u32 2147483647, %v1035_v32  ;;  %v3680_v32 = vld [vmem:[#allocation22_spill] sm:$0xff]  ;;  %v3681_v41 = vld [vmem:[#allocation25_spill] sm:$0xff]  ;;  %v3685_v30 = vld [vmem:[#allocation28_spill] sm:$0xff] }
 0x303   :  { %v989_v43 = vsel %vm986_vm9, %v988_v26, %v984_v51  ;;  %v1052_v34 = vmul.f32 %v1966_v40, %v950_v19  ;;  %v1048_v19 = vor.u32 1.1754944e-38, %v1047_v42  ;;  %v3686_v26 = vld [vmem:[#allocation38_spill] sm:$0xff]  ;;  %v3687_v28 = vld [vmem:[#allocation33_spill] sm:$0xff]  ;;  %v3688_v40 = vld [vmem:[#allocation24_spill] sm:$0xff] }
 0x304   :  { %v1051_v36 = vmul.f32 %v989_v43, %v3115_v47  ;;  %v1039_v46 = vmul.f32 %v1964_v49, %v1038_v33  ;;  %vm1046_vm14 = vcmp.eq.f32.partialorder %v1045_v24, 8.507059e+37  ;;  %v3689_v33 = vld [vmem:[#allocation32_spill] sm:$0xff]  ;;  %v3697_v42 = vld [vmem:[#allocation39_spill] sm:$0xff]  ;;  %v3698_v24 = vld [vmem:[#allocation46_spill] sm:$0xff] }
 0x306   :  { %v1053_v44 = vadd.f32 %v1052_v34, %v1051_v36  ;;  %v1040_v50 = vadd.f32 %v1964_v49, %v1039_v46  ;;  %v3690_v34 = vld [vmem:[#allocation42_spill] sm:$0xff]  ;;  %v3692_v36 = vld [vmem:[#allocation27_spill] sm:$0xff]  ;;  %v3693_v46 = vld [vmem:[#allocation36_spill] sm:$0xff] }
 0x308   :  { %1967 = vtanh.f32 %v1053_v44  ;;  %v3201_v29 = vsel %vm1063_vm10, %v1053_v44, %v3115_v47  ;;  %v1044_v51 = vsel %vm1043_vm13, %v1964_v49, %v1040_v50  ;;  %v3678_v47 = vld [vmem:[#allocation31_spill] sm:$0xff]  ;;  %v3683_v49 = vld [vmem:[#allocation29_spill] sm:$0xff]  ;;  %v3695_v44 = vld [vmem:[#allocation40_spill] sm:$0xff] }
 0x309   :  { %v1049_v43 = vsel %vm1046_vm14, %v1048_v19, %v1044_v51  ;;  %v3696_v50 = vld [vmem:[#allocation30_spill] sm:$0xff]  ;;  %v3699_v51 = vld [vmem:[#allocation44_spill] sm:$0xff] }
 0x30a   :  { %v3700_v19 = vld [vmem:[#allocation34_spill] sm:$0xff] }
 0x30e   :  { %v1968_v45 = vpop.eup %1967 }
 0x30f   :  { %v1055_v37 = vmul.f32 %v1968_v45, %v1049_v43  ;;  %v3701_v45 = vld [vmem:[#allocation43_spill] sm:$0xff]  ;;  %v3702_v43 = vld [vmem:[#allocation48_spill] sm:$0xff] }
 0x311   :  { %v3204_v27 = vsel %vm1063_vm10, %v1055_v37, %v3119_v25  ;;  %v3679_v25 = vld [vmem:[#allocation26_spill] sm:$0xff]  ;;  %v3703_v37 = vld [vmem:[#allocation47_spill] sm:$0xff] }
 0x312   :  { %1087 = vmatmul.f32.vlgmr.msrb.gmra.mxu0 %v3204_v27  ;;  %1126 = vmatmul.f32.vlgmr.msra.gmra.mxu1 %v3204_v27 }
 0x313   :  { %1165 = vmatmul.f32.vlgmr.msra.gmra.mxu2 %v3204_v27  ;;  %1186 = vmatmul.f32.vlgmr.msra.gmra.mxu3 %v3204_v27 }
 0x314   :  { %1387 = vmatpush.msrb.mxu0 %v2916_v17  ;;  %1426 = vmatpush.msra.mxu1 %v2919_v52 }
 0x315   :  { %1465 = vmatpush.msra.mxu2 %v2922_v53  ;;  %1486 = vmatpush.msra.mxu3 %v2925_v1 }
 0x316   :  { %1388 = vmatpush.msrb.mxu0 %v2928_v54  ;;  %1427 = vmatpush.msra.mxu1 %v2931_v55 }
 0x317   :  { %1466 = vmatpush.msra.mxu2 %v2934_v56  ;;  %1487 = vmatpush.msra.mxu3 %v2937_v58 }
 0x318   :  { %1389 = vmatpush.msrb.mxu0 %v2940_v59  ;;  %1428 = vmatpush.msra.mxu1 %v2943_v60 }
 0x319   :  { %1467 = vmatpush.msra.mxu2 %v2946_v62  ;;  %1488 = vmatpush.msra.mxu3 %v2949_v3 }
 0x31a   :  { %1390 = vmatpush.msrb.mxu0 %v2952_v10  ;;  %1429 = vmatpush.msra.mxu1 %v2955_v5 }
 0x31b   :  { %1468 = vmatpush.msra.mxu2 %v2958_v13  ;;  %1489 = vmatpush.msra.mxu3 %v2961_v23 }
 0x31c   :  { %1391 = vmatpush.msrb.mxu0 %v2964_v2  ;;  %1430 = vmatpush.msra.mxu1 %v2967_v9 }
 0x31d   :  { %1469 = vmatpush.msra.mxu2 %v2970_v21  ;;  %1490 = vmatpush.msra.mxu3 %v2973_v61 }
 0x31e   :  { %1392 = vmatpush.msrb.mxu0 %v2976_v57  ;;  %1431 = vmatpush.msra.mxu1 %v2979_v0 }
 0x31f   :  { %1470 = vmatpush.msra.mxu2 %v2982_v6  ;;  %1491 = vmatpush.msra.mxu3 %v2985_v63 }
 0x320   :  { %1393 = vmatpush.msrb.mxu0 %v2988_v18  ;;  %1432 = vmatpush.msra.mxu1 %v2991_v12 }
 0x321   :  { %1471 = vmatpush.msra.mxu2 %v2994_v14  ;;  %1492 = vmatpush.msra.mxu3 %v2997_v48 }
 0x322   :  { %1394 = vmatpush.msrb.mxu0 %v3000_v22  ;;  %1433 = vmatpush.msra.mxu1 %v3003_v4 }
 0x323   :  { %1472 = vmatpush.msra.mxu2 %v3006_v7  ;;  %1493 = vmatpush.msra.mxu3 %v3009_v16 }
 0x324   :  { %1395 = vmatpush.msrb.mxu0 %v3012_v35  ;;  %1434 = vmatpush.msra.mxu1 %v3015_v8 }
 0x325   :  { %1473 = vmatpush.msra.mxu2 %v3018_v11  ;;  %1494 = vmatpush.msra.mxu3 %v3021_v15 }
 0x326   :  { %1396 = vmatpush.msrb.mxu0 %v3678_v47  ;;  %1435 = vmatpush.msra.mxu1 %v3679_v25 }
 0x327   :  { %1474 = vmatpush.msra.mxu2 %v3680_v32  ;;  %1495 = vmatpush.msra.mxu3 %v3681_v41 }
 0x328   :  { %1397 = vmatpush.msrb.mxu0 %v3682_v38  ;;  %1436 = vmatpush.msra.mxu1 %v3683_v49 }
 0x329   :  { %1475 = vmatpush.msra.mxu2 %v3684_v39  ;;  %1496 = vmatpush.msra.mxu3 %v3685_v30 }
 0x32a   :  { %1398 = vmatpush.msrb.mxu0 %v3686_v26  ;;  %1437 = vmatpush.msra.mxu1 %v3687_v28 }
 0x32b   :  { %1476 = vmatpush.msra.mxu2 %v3688_v40  ;;  %1497 = vmatpush.msra.mxu3 %v3689_v33 }
 0x32c   :  { %1399 = vmatpush.msrb.mxu0 %v3690_v34  ;;  %1438 = vmatpush.msra.mxu1 %v3691_v20  ;;  %v3707_v20 = vld [vmem:[#allocation65_spill] sm:$0xff] }
 0x32d   :  { %1477 = vmatpush.msra.mxu2 %v3692_v36  ;;  %1498 = vmatpush.msra.mxu3 %v3693_v46  ;;  %v3704_v46 = vld [vmem:[#allocation52_spill] sm:$0xff]  ;;  %v3706_v36 = vld [vmem:[#allocation61_spill] sm:$0xff] }
 0x32e   :  { %1400 = vmatpush.msrb.mxu0 %v3694_v31  ;;  %1439 = vmatpush.msra.mxu1 %v3695_v44  ;;  %v3705_v31 = vld [vmem:[#allocation54_spill] sm:$0xff] }
 0x32f   :  { %1478 = vmatpush.msra.mxu2 %v3696_v50  ;;  %1499 = vmatpush.msra.mxu3 %v3697_v42 }
 0x330   :  { %1401 = vmatpush.msrb.mxu0 %v3698_v24  ;;  %1440 = vmatpush.msra.mxu1 %v3699_v51 }
 0x331   :  { %1479 = vmatpush.msra.mxu2 %v3700_v19  ;;  %1500 = vmatpush.msra.mxu3 %v3701_v45  ;;  %v3708_v45 = vld [vmem:[#allocation67_spill] sm:$0xff] }
 0x332   :  { %1402 = vmatpush.msrb.mxu0 %v3702_v43  ;;  %1441 = vmatpush.msra.mxu1 %v3703_v37 }
 0x333   :  { %1480 = vmatpush.msra.mxu2 %v3704_v46  ;;  %1501 = vmatpush.msra.mxu3 %v3705_v31 }
 0x344   :  { %v1220_v25 = vpop.permute.xlu2 %1219 }
 0x345   :  { %vm1221_vm7 = vcmp.eq.s32.totalorder %v1220_v25, 1 }
 0x38f   :  { %v1088_v44 = vpop.f32.mrf.mxu0  ;;  %v1127_v50 = vpop.f32.mrf.mxu1 }
 0x390   :  { %v1089_v42 = vadd.f32 %v1088_v44, %v3706_v36  ;;  %v1128_v24 = vadd.f32 %v1127_v50, %v3707_v20  ;;  %v3709_v20 = vld [vmem:[#allocation66_spill] sm:$0xff] }
 0x392   :  { %v1855_v34 = vmul.f32 -1.442695, %v1089_v42  ;;  %v1856_v51 = vmul.f32 -1.442695, %v1128_v24 }
 0x394   :  { %1969 = vpow2.f32 %v1855_v34 }
 0x395   :  { %1971 = vpow2.f32 %v1856_v51 }
 0x396   :  { %v1187_v19 = vpop.f32.mrf.mxu3  ;;  %v1166_v31 = vpop.f32.mrf.mxu2 }
 0x397   :  { %v1188_v33 = vadd.f32 %v1187_v19, %v3708_v45  ;;  %v1167_v50 = vadd.f32 %v1166_v31, %v3709_v20 }
 0x399   :  { %v1857_v43 = vmul.f32 -1.442695, %v1188_v33 }
 0x39a   :  { %v1970_v40 = vpop.eup %1969 }
 0x39b   :  { %v1972_v37 = vpop.eup %1971  ;;  %v1094_v28 = vadd.f32 1.0, %v1970_v40  ;;  %1973 = vpow2.f32 %v1857_v43 }
 0x39c   :  { %v1133_v46 = vadd.f32 1.0, %v1972_v37 }
 0x39d   :  { %1975 = vrcp.f32 %v1094_v28  ;;  %v1106_v33 = vand.u32 2147483648, %v1094_v28  ;;  %v1104_v40 = vand.u32 2147483647, %v1094_v28  ;;  %vm1100_vm1 = vweird.f32 %v1094_v28 }
 0x39e   :  { %1977 = vrcp.f32 %v1133_v46  ;;  %v1145_v43 = vand.u32 2147483648, %v1133_v46  ;;  %v1143_v30 = vand.u32 2147483647, %v1133_v46  ;;  %vm1139_vm3 = vweird.f32 %v1133_v46 }
 0x39f   :  { %v1107_v31 = vor.u32 1.1754944e-38, %v1106_v33  ;;  %vm1105_vm4 = vcmp.eq.f32.partialorder %v1104_v40, 8.507059e+37 }
 0x3a0   :  { %vm1144_vm6 = vcmp.eq.f32.partialorder %v1143_v30, 8.507059e+37 }
 0x3a1   :  { %v1974_v26 = vpop.eup %1973 }
 0x3a2   :  { %v1193_v36 = vadd.f32 1.0, %v1974_v26 }
 0x3a3   :  { %v1976_v44 = vpop.eup %1975 }
 0x3a4   :  { %v1978_v42 = vpop.eup %1977  ;;  %v1096_v34 = vmul.f32 %v1976_v44, %v1094_v28  ;;  %1979 = vrcp.f32 %v1193_v36  ;;  %vm1101_vm15 = vweird.f32 %v1976_v44  ;;  %vm1199_vm9 = vweird.f32 %v1193_v36 }
 0x3a5   :  { %v1135_v24 = vmul.f32 %v1978_v42, %v1133_v46  ;;  %1981 = vtanh.f32 %v1167_v50  ;;  %vm1140_vm0 = vweird.f32 %v1978_v42  ;;  %vm1102_vm2 = vmor %vm1100_vm1, %vm1101_vm15  ;;  %v1205_v46 = vand.u32 2147483648, %v1193_v36 }
 0x3a6   :  { %v1097_v51 = vsub.f32 1.0, %v1096_v34  ;;  %vm1141_vm5 = vmor %vm1139_vm3, %vm1140_vm0  ;;  %v1146_v34 = vor.u32 1.1754944e-38, %v1145_v43 }
 0x3a7   :  { %v1136_v19 = vsub.f32 1.0, %v1135_v24  ;;  %v1206_v30 = vor.u32 1.1754944e-38, %v1205_v46 }
 0x3a8   :  { %v1098_v45 = vmul.f32 %v1976_v44, %v1097_v51 }
 0x3a9   :  { %v1137_v37 = vmul.f32 %v1978_v42, %v1136_v19 }
 0x3aa   :  { %v1980_v39 = vpop.eup %1979  ;;  %v1099_v26 = vadd.f32 %v1976_v44, %v1098_v45 }
 0x3ab   :  { %v1195_v20 = vmul.f32 %v1980_v39, %v1193_v36  ;;  %v1138_v49 = vadd.f32 %v1978_v42, %v1137_v37  ;;  %v1982_v50 = vpop.eup %1981  ;;  %vm1200_vm8 = vweird.f32 %v1980_v39 }
 0x3ac   :  { %v1103_v38 = vsel %vm1102_vm2, %v1976_v44, %v1099_v26  ;;  %vm1201_vm10 = vmor %vm1199_vm9, %vm1200_vm8 }
 0x3ad   :  { %v1108_v24 = vsel %vm1105_vm4, %v1107_v31, %v1103_v38  ;;  %v1196_v51 = vsub.f32 1.0, %v1195_v20  ;;  %v1142_v41 = vsel %vm1141_vm5, %v1978_v42, %v1138_v49  ;;  %v1203_v38 = vand.u32 2147483647, %v1193_v36 }
 0x3ae   :  { %v1210_v19 = vmul.f32 %v1982_v50, %v1108_v24  ;;  %v1147_v32 = vsel %vm1144_vm6, %v1146_v34, %v1142_v41  ;;  %v3741_v50 = vld [vmem:[#allocation69_spill] sm:$0xff] }
 0x3af   :  { %v1197_v47 = vmul.f32 %v1980_v39, %v1196_v51  ;;  %v1209_v28 = vmul.f32 %v1147_v32, %v3201_v29  ;;  %vm1204_vm11 = vcmp.eq.f32.partialorder %v1203_v38, 8.507059e+37 }
 0x3b1   :  { %v1211_v33 = vadd.f32 %v1210_v19, %v1209_v28  ;;  %v1198_v45 = vadd.f32 %v1980_v39, %v1197_v47 }
 0x3b3   :  { %1983 = vtanh.f32 %v1211_v33  ;;  %v3281_v44 = vsel %vm1221_vm7, %v1211_v33, %v3201_v29  ;;  %v1202_v49 = vsel %vm1201_vm10, %v1980_v39, %v1198_v45 }
 0x3b4   :  { %v1207_v42 = vsel %vm1204_vm11, %v1206_v30, %v1202_v49 }
 0x3b9   :  { %v1984_v41 = vpop.eup %1983 }
 0x3ba   :  { %v1213_v40 = vmul.f32 %v1984_v41, %v1207_v42 }
 0x3bc   :  { %v3285_v32 = vsel %vm1221_vm7, %v1213_v40, %v3204_v27  ;;  %v3740_v27 = vld [vmem:[#allocation70_spill] sm:$0xff] }
 0x3bd   :  { %1245 = vmatmul.f32.vlgmr.msra.gmra.mxu0 %v3285_v32  ;;  %1284 = vmatmul.f32.vlgmr.msrb.gmra.mxu1 %v3285_v32 }
 0x3be   :  { %1323 = vmatmul.f32.vlgmr.msrb.gmra.mxu2 %v3285_v32  ;;  %1344 = vmatmul.f32.vlgmr.msrb.gmra.mxu3 %v3285_v32 }
 0x3bf   :  { %1545 = vmatpush.msra.mxu0 %v2916_v17  ;;  %1584 = vmatpush.msrb.mxu1 %v2919_v52  ;;  %v3710_v17 = vld [vmem:[#allocation31_spill] sm:$0xff]  ;;  %v3711_v52 = vld [vmem:[#allocation26_spill] sm:$0xff] }
 0x3c0   :  { %1623 = vmatpush.msrb.mxu2 %v2922_v53  ;;  %1644 = vmatpush.msrb.mxu3 %v2925_v1  ;;  %v3712_v53 = vld [vmem:[#allocation22_spill] sm:$0xff]  ;;  %v3713_v1 = vld [vmem:[#allocation25_spill] sm:$0xff] }
 0x3c1   :  { %1546 = vmatpush.msra.mxu0 %v2928_v54  ;;  %1585 = vmatpush.msrb.mxu1 %v2931_v55  ;;  %v3714_v54 = vld [vmem:[#allocation35_spill] sm:$0xff]  ;;  %v3715_v55 = vld [vmem:[#allocation29_spill] sm:$0xff] }
 0x3c2   :  { %1624 = vmatpush.msrb.mxu2 %v2934_v56  ;;  %1645 = vmatpush.msrb.mxu3 %v2937_v58  ;;  %v3716_v56 = vld [vmem:[#allocation23_spill] sm:$0xff]  ;;  %v3717_v58 = vld [vmem:[#allocation28_spill] sm:$0xff] }
 0x3c3   :  { %1547 = vmatpush.msra.mxu0 %v2940_v59  ;;  %1586 = vmatpush.msrb.mxu1 %v2943_v60  ;;  %v3718_v59 = vld [vmem:[#allocation38_spill] sm:$0xff]  ;;  %v3719_v60 = vld [vmem:[#allocation33_spill] sm:$0xff] }
 0x3c4   :  { %1625 = vmatpush.msrb.mxu2 %v2946_v62  ;;  %1646 = vmatpush.msrb.mxu3 %v2949_v3  ;;  %v3720_v62 = vld [vmem:[#allocation24_spill] sm:$0xff] }
 0x3c5   :  { %1548 = vmatpush.msra.mxu0 %v2952_v10  ;;  %1587 = vmatpush.msrb.mxu1 %v2955_v5  ;;  %v3721_v3 = vld [vmem:[#allocation32_spill] sm:$0xff]  ;;  %v3722_v10 = vld [vmem:[#allocation42_spill] sm:$0xff]  ;;  %v3723_v5 = vld [vmem:[#allocation37_spill] sm:$0xff] }
 0x3c6   :  { %1626 = vmatpush.msrb.mxu2 %v2958_v13  ;;  %1647 = vmatpush.msrb.mxu3 %v2961_v23  ;;  %v3724_v13 = vld [vmem:[#allocation27_spill] sm:$0xff]  ;;  %v3725_v23 = vld [vmem:[#allocation36_spill] sm:$0xff] }
 0x3c7   :  { %1549 = vmatpush.msra.mxu0 %v2964_v2  ;;  %1588 = vmatpush.msrb.mxu1 %v2967_v9  ;;  %v3726_v2 = vld [vmem:[#allocation45_spill] sm:$0xff]  ;;  %v3727_v9 = vld [vmem:[#allocation40_spill] sm:$0xff] }
 0x3c8   :  { %1627 = vmatpush.msrb.mxu2 %v2970_v21  ;;  %1648 = vmatpush.msrb.mxu3 %v2973_v61  ;;  %v3728_v21 = vld [vmem:[#allocation30_spill] sm:$0xff]  ;;  %v3729_v61 = vld [vmem:[#allocation39_spill] sm:$0xff] }
 0x3c9   :  { %1550 = vmatpush.msra.mxu0 %v2976_v57  ;;  %1589 = vmatpush.msrb.mxu1 %v2979_v0  ;;  %v3730_v57 = vld [vmem:[#allocation46_spill] sm:$0xff]  ;;  %v3731_v0 = vld [vmem:[#allocation44_spill] sm:$0xff] }
 0x3ca   :  { %1628 = vmatpush.msrb.mxu2 %v2982_v6  ;;  %1649 = vmatpush.msrb.mxu3 %v2985_v63  ;;  %v3732_v6 = vld [vmem:[#allocation34_spill] sm:$0xff]  ;;  %v3733_v63 = vld [vmem:[#allocation43_spill] sm:$0xff] }
 0x3cb   :  { %1551 = vmatpush.msra.mxu0 %v2988_v18  ;;  %1590 = vmatpush.msrb.mxu1 %v2991_v12  ;;  %v3734_v18 = vld [vmem:[#allocation48_spill] sm:$0xff]  ;;  %v3735_v12 = vld [vmem:[#allocation47_spill] sm:$0xff] }
 0x3cc   :  { %1629 = vmatpush.msrb.mxu2 %v2994_v14  ;;  %1650 = vmatpush.msrb.mxu3 %v2997_v48  ;;  %v3736_v14 = vld [vmem:[#allocation52_spill] sm:$0xff]  ;;  %v3737_v48 = vld [vmem:[#allocation54_spill] sm:$0xff] }
 0x3cd   :  { %1552 = vmatpush.msra.mxu0 %v3000_v22  ;;  %1591 = vmatpush.msrb.mxu1 %v3003_v4 }
 0x3ce   :  { %1630 = vmatpush.msrb.mxu2 %v3006_v7  ;;  %1651 = vmatpush.msrb.mxu3 %v3009_v16  ;;  %v3738_v7 = vld [vmem:[#allocation49_spill] sm:$0xff] }
 0x3cf   :  { %1553 = vmatpush.msra.mxu0 %v3012_v35  ;;  %1592 = vmatpush.msrb.mxu1 %v3015_v8  ;;  %v3739_v35 = vld [vmem:[#allocation68_spill] sm:$0xff] }
 0x3d0   :  { %1631 = vmatpush.msrb.mxu2 %v3018_v11  ;;  %1652 = vmatpush.msrb.mxu3 %v3021_v15 }
 0x3d1   :  { %1554 = vmatpush.msra.mxu0 %v3710_v17  ;;  %1593 = vmatpush.msrb.mxu1 %v3711_v52 }
 0x3d2   :  { %1632 = vmatpush.msrb.mxu2 %v3712_v53  ;;  %1653 = vmatpush.msrb.mxu3 %v3713_v1 }
 0x3d3   :  { %1555 = vmatpush.msra.mxu0 %v3714_v54  ;;  %1594 = vmatpush.msrb.mxu1 %v3715_v55 }
 0x3d4   :  { %1633 = vmatpush.msrb.mxu2 %v3716_v56  ;;  %1654 = vmatpush.msrb.mxu3 %v3717_v58 }
 0x3d5   :  { %1556 = vmatpush.msra.mxu0 %v3718_v59  ;;  %1595 = vmatpush.msrb.mxu1 %v3719_v60 }
 0x3d6   :  { %1634 = vmatpush.msrb.mxu2 %v3720_v62  ;;  %1655 = vmatpush.msrb.mxu3 %v3721_v3 }
 0x3d7   :  { %1557 = vmatpush.msra.mxu0 %v3722_v10  ;;  %1596 = vmatpush.msrb.mxu1 %v3723_v5 }
 0x3d8   :  { %1635 = vmatpush.msrb.mxu2 %v3724_v13  ;;  %1656 = vmatpush.msrb.mxu3 %v3725_v23  ;;  %v1378_v13 = vpop.permute.xlu2 %1377 }
 0x3d9   :  { %1558 = vmatpush.msra.mxu0 %v3726_v2  ;;  %1597 = vmatpush.msrb.mxu1 %v3727_v9  ;;  %vm1379_vm4 = vcmp.eq.s32.totalorder %v1378_v13, 1 }
 0x3da   :  { %1636 = vmatpush.msrb.mxu2 %v3728_v21  ;;  %1657 = vmatpush.msrb.mxu3 %v3729_v61 }
 0x3db   :  { %1559 = vmatpush.msra.mxu0 %v3730_v57  ;;  %1598 = vmatpush.msrb.mxu1 %v3731_v0 }
 0x3dc   :  { %1637 = vmatpush.msrb.mxu2 %v3732_v6  ;;  %1658 = vmatpush.msrb.mxu3 %v3733_v63 }
 0x3dd   :  { %1560 = vmatpush.msra.mxu0 %v3734_v18  ;;  %1599 = vmatpush.msrb.mxu1 %v3735_v12 }
 0x3de   :  { %1638 = vmatpush.msrb.mxu2 %v3736_v14  ;;  %1659 = vmatpush.msrb.mxu3 %v3737_v48  ;;  %v3742_v48 = vld [vmem:[#allocation50_spill] sm:$0xff] }
 0x43a   :  { %v1246_v22 = vpop.f32.mrf.mxu0  ;;  %v1285_v4 = vpop.f32.mrf.mxu1 }
 0x43b   :  { %v1247_v16 = vadd.f32 %v1246_v22, %v3738_v7  ;;  %v1286_v8 = vadd.f32 %v1285_v4, %v3739_v35  ;;  %v3743_v4 = vld [vmem:[#allocation71_spill] sm:$0xff] }
 0x43d   :  { %v1859_v11 = vmul.f32 -1.442695, %v1247_v16  ;;  %v1860_v15 = vmul.f32 -1.442695, %v1286_v8  ;;  %v3744_v8 = vld [vmem:[#allocation73_spill] sm:$0xff] }
 0x43f   :  { %1985 = vpow2.f32 %v1859_v11 }
 0x440   :  { %1987 = vpow2.f32 %v1860_v15 }
 0x441   :  { %v1345_v29 = vpop.f32.mrf.mxu3  ;;  %v1324_v26 = vpop.f32.mrf.mxu2 }
 0x442   :  { %v1346_v47 = vadd.f32 %v1345_v29, %v3740_v27  ;;  %v1325_v24 = vadd.f32 %v1324_v26, %v3741_v50  ;;  %v3745_v26 = vld [vmem:[#allocation72_spill] sm:$0xff] }
 0x444   :  { %v1861_v25 = vmul.f32 -1.442695, %v1346_v47 }
 0x445   :  { %v1986_v39 = vpop.eup %1985 }
 0x446   :  { %v1988_v36 = vpop.eup %1987  ;;  %v1252_v43 = vadd.f32 1.0, %v1986_v39  ;;  %1989 = vpow2.f32 %v1861_v25 }
 0x447   :  { %v1291_v37 = vadd.f32 1.0, %v1988_v36 }
 0x448   :  { %1991 = vrcp.f32 %v1252_v43  ;;  %v1264_v46 = vand.u32 2147483648, %v1252_v43  ;;  %v1262_v30 = vand.u32 2147483647, %v1252_v43  ;;  %vm1258_vm14 = vweird.f32 %v1252_v43 }
 0x449   :  { %1993 = vrcp.f32 %v1291_v37  ;;  %v1303_v38 = vand.u32 2147483648, %v1291_v37  ;;  %v1301_v42 = vand.u32 2147483647, %v1291_v37  ;;  %vm1297_vm15 = vweird.f32 %v1291_v37 }
 0x44a   :  { %v1265_v52 = vor.u32 1.1754944e-38, %v1264_v46  ;;  %vm1263_vm2 = vcmp.eq.f32.partialorder %v1262_v30, 8.507059e+37 }
 0x44b   :  { %v1304_v54 = vor.u32 1.1754944e-38, %v1303_v38  ;;  %vm1302_vm3 = vcmp.eq.f32.partialorder %v1301_v42, 8.507059e+37 }
 0x44c   :  { %v1990_v31 = vpop.eup %1989 }
 0x44d   :  { %v1351_v20 = vadd.f32 1.0, %v1990_v31 }
 0x44e   :  { %v1992_v34 = vpop.eup %1991 }
 0x44f   :  { %v1994_v51 = vpop.eup %1993  ;;  %v1254_v19 = vmul.f32 %v1992_v34, %v1252_v43  ;;  %1995 = vrcp.f32 %v1351_v20  ;;  %vm1259_vm12 = vweird.f32 %v1992_v34  ;;  %v1363_v9 = vand.u32 2147483648, %v1351_v20 }
 0x450   :  { %v1293_v28 = vmul.f32 %v1994_v51, %v1291_v37  ;;  %1997 = vtanh.f32 %v1325_v24  ;;  %vm1298_vm13 = vweird.f32 %v1994_v51  ;;  %vm1260_vm0 = vmor %vm1258_vm14, %vm1259_vm12  ;;  %vm1357_vm6 = vweird.f32 %v1351_v20 }
 0x451   :  { %v1255_v33 = vsub.f32 1.0, %v1254_v19  ;;  %vm1299_vm1 = vmor %vm1297_vm15, %vm1298_vm13  ;;  %v1361_v61 = vand.u32 2147483647, %v1351_v20  ;;  %v1364_v0 = vor.u32 1.1754944e-38, %v1363_v9 }
 0x452   :  { %v1294_v45 = vsub.f32 1.0, %v1293_v28 }
 0x453   :  { %v1256_v49 = vmul.f32 %v1992_v34, %v1255_v33  ;;  %vm1362_vm8 = vcmp.eq.f32.partialorder %v1361_v61, 8.507059e+37 }
 0x454   :  { %v1295_v41 = vmul.f32 %v1994_v51, %v1294_v45 }
 0x455   :  { %v1996_v40 = vpop.eup %1995  ;;  %v1257_v17 = vadd.f32 %v1992_v34, %v1256_v49 }
 0x456   :  { %v1296_v53 = vadd.f32 %v1994_v51, %v1295_v41  ;;  %v1353_v1 = vmul.f32 %v1996_v40, %v1351_v20  ;;  %v1998_v56 = vpop.eup %1997  ;;  %vm1358_vm5 = vweird.f32 %v1996_v40 }
 0x457   :  { %v1261_v55 = vsel %vm1260_vm0, %v1992_v34, %v1257_v17  ;;  %vm1359_vm7 = vmor %vm1357_vm6, %vm1358_vm5 }
 0x458   :  { %v1266_v58 = vsel %vm1263_vm2, %v1265_v52, %v1261_v55  ;;  %v1300_v59 = vsel %vm1299_vm1, %v1994_v51, %v1296_v53  ;;  %v1354_v60 = vsub.f32 1.0, %v1353_v1 }
 0x459   :  { %v1305_v62 = vsel %vm1302_vm3, %v1304_v54, %v1300_v59  ;;  %v1368_v3 = vmul.f32 %v1998_v56, %v1266_v58  ;;  %v1536_v59 = vpop.permute.xlu0 %1535 }
 0x45a   :  { %v1367_v10 = vmul.f32 %v1305_v62, %v3281_v44  ;;  %v1355_v5 = vmul.f32 %v1996_v40, %v1354_v60  ;;  %vm1537_vm1 = vcmp.eq.s32.totalorder %v1536_v59, 1 }
 0x45c   :  { %v1369_v23 = vadd.f32 %v1368_v3, %v1367_v10  ;;  %v1356_v2 = vadd.f32 %v1996_v40, %v1355_v5 }
 0x45e   :  { %1999 = vtanh.f32 %v1369_v23  ;;  %v3361_v21 = vsel %vm1379_vm4, %v1369_v23, %v3281_v44  ;;  %v1360_v57 = vsel %vm1359_vm7, %v1996_v40, %v1356_v2 }
 0x45f   :  { %v1365_v63 = vsel %vm1362_vm8, %v1364_v0, %v1360_v57 }
 0x464   :  { %v2000_v6 = vpop.eup %1999 }
 0x465   :  { %v1371_v18 = vmul.f32 %v2000_v6, %v1365_v63  ;;  %v1726_v63 = vld [vmem:[#allocation11 + $0x70] sm:$0xff] }
 0x467   :  { %v3364_v12 = vsel %vm1379_vm4, %v1371_v18, %v3285_v32  ;;  %v1725_v18 = vld [vmem:[#allocation11 + $0x68] sm:$0xff] }
 0x468   :  { %1403 = vmatmul.f32.vlgmr.msrb.gmra.mxu0 %v3364_v12  ;;  %1442 = vmatmul.f32.vlgmr.msra.gmra.mxu1 %v3364_v12 }
 0x469   :  { %1481 = vmatmul.f32.vlgmr.msra.gmra.mxu2 %v3364_v12  ;;  %1502 = vmatmul.f32.vlgmr.msra.gmra.mxu3 %v3364_v12 }
 0x4e5   :  { %v1404_v44 = vpop.f32.mrf.mxu0  ;;  %v1443_v14 = vpop.f32.mrf.mxu1 }
 0x4e6   :  { %v1405_v22 = vadd.f32 %v1404_v44, %v3742_v48  ;;  %v1444_v7 = vadd.f32 %v1443_v14, %v3743_v4  ;;  %v1724_v44 = vld [vmem:[#allocation11 + $0x60] sm:$0xff]  ;;  %v1723_v14 = vld [vmem:[#allocation11 + $0x58] sm:$0xff]  ;;  %v1721_v48 = vld [vmem:[#allocation11 + $0x48] sm:$0xff] }
 0x4e7   :  { %v1719_v4 = vld [vmem:[#allocation11 + $0x38] sm:$0xff] }
 0x4e8   :  { %v1863_v16 = vmul.f32 -1.442695, %v1405_v22  ;;  %v1864_v35 = vmul.f32 -1.442695, %v1444_v7  ;;  %v1720_v22 = vld [vmem:[#allocation11 + $0x40] sm:$0xff] }
 0x4ea   :  { %2001 = vpow2.f32 %v1863_v16 }
 0x4eb   :  { %2003 = vpow2.f32 %v1864_v35  ;;  %v3746_v35 = vld [vmem:[#allocation51_spill] sm:$0xff] }
 0x4ec   :  { %v1503_v32 = vpop.f32.mrf.mxu3  ;;  %v1482_v39 = vpop.f32.mrf.mxu2 }
 0x4ed   :  { %v1504_v11 = vadd.f32 %v1503_v32, %v3744_v8  ;;  %v1483_v31 = vadd.f32 %v1482_v39, %v3745_v26  ;;  %v3747_v8 = vld [vmem:[#allocation74_spill] sm:$0xff] }
 0x4ee   :  { %v1715_v39 = vld [vmem:[#allocation11 + $0x18] sm:$0xff] }
 0x4ef   :  { %v1865_v15 = vmul.f32 -1.442695, %v1504_v11 }
 0x4f0   :  { %v2002_v29 = vpop.eup %2001 }
 0x4f1   :  { %v2004_v27 = vpop.eup %2003  ;;  %v1410_v47 = vadd.f32 1.0, %v2002_v29  ;;  %2005 = vpow2.f32 %v1865_v15  ;;  %v1718_v15 = vld [vmem:[#allocation11 + $0x30] sm:$0xff] }
 0x4f2   :  { %v1449_v25 = vadd.f32 1.0, %v2004_v27 }
 0x4f3   :  { %2007 = vrcp.f32 %v1410_v47  ;;  %v1422_v19 = vand.u32 2147483648, %v1410_v47  ;;  %v1420_v45 = vand.u32 2147483647, %v1410_v47  ;;  %vm1416_vm11 = vweird.f32 %v1410_v47 }
 0x4f4   :  { %2009 = vrcp.f32 %v1449_v25  ;;  %v1461_v28 = vand.u32 2147483648, %v1449_v25  ;;  %v1459_v38 = vand.u32 2147483647, %v1449_v25  ;;  %vm1455_vm12 = vweird.f32 %v1449_v25 }
 0x4f5   :  { %v1423_v41 = vor.u32 1.1754944e-38, %v1422_v19  ;;  %vm1421_vm15 = vcmp.eq.f32.partialorder %v1420_v45, 8.507059e+37 }
 0x4f6   :  { %v1462_v17 = vor.u32 1.1754944e-38, %v1461_v28  ;;  %vm1460_vm0 = vcmp.eq.f32.partialorder %v1459_v38, 8.507059e+37  ;;  %v3749_v38 = vld [vmem:[#allocation75_spill] sm:$0xff] }
 0x4f7   :  { %v2006_v36 = vpop.eup %2005 }
 0x4f8   :  { %v1509_v43 = vadd.f32 1.0, %v2006_v36 }
 0x4f9   :  { %v2008_v37 = vpop.eup %2007 }
 0x4fa   :  { %v2010_v20 = vpop.eup %2009  ;;  %v1412_v34 = vmul.f32 %v2008_v37, %v1410_v47  ;;  %2011 = vrcp.f32 %v1509_v43  ;;  %vm1417_vm9 = vweird.f32 %v2008_v37  ;;  %v1521_v5 = vand.u32 2147483648, %v1509_v43  ;;  %v1717_v47 = vld [vmem:[#allocation11 + $0x28] sm:$0xff] }
 0x4fb   :  { %v1451_v50 = vmul.f32 %v2010_v20, %v1449_v25  ;;  %2013 = vtanh.f32 %v1483_v31  ;;  %vm1456_vm10 = vweird.f32 %v2010_v20  ;;  %vm1418_vm13 = vmor %vm1416_vm11, %vm1417_vm9  ;;  %vm1515_vm3 = vweird.f32 %v1509_v43  ;;  %v1716_v25 = vld [vmem:[#allocation11 + $0x20] sm:$0xff]  ;;  %v1713_v31 = vld [vmem:[#allocation11 + $0x8] sm:$0xff] }
 0x4fc   :  { %v1413_v24 = vsub.f32 1.0, %v1412_v34  ;;  %vm1457_vm14 = vmor %vm1455_vm12, %vm1456_vm10  ;;  %v1519_v23 = vand.u32 2147483647, %v1509_v43  ;;  %v1522_v9 = vor.u32 1.1754944e-38, %v1521_v5 }
 0x4fd   :  { %v1452_v51 = vsub.f32 1.0, %v1451_v50  ;;  %v1712_v50 = vld [vmem:[#allocation11] sm:$0xff] }
 0x4fe   :  { %v1414_v33 = vmul.f32 %v2008_v37, %v1413_v24  ;;  %vm1520_vm5 = vcmp.eq.f32.partialorder %v1519_v23, 8.507059e+37 }
 0x4ff   :  { %v1453_v46 = vmul.f32 %v2010_v20, %v1452_v51 }
 0x500   :  { %v2012_v49 = vpop.eup %2011  ;;  %v1415_v30 = vadd.f32 %v2008_v37, %v1414_v33 }
 0x501   :  { %v1454_v42 = vadd.f32 %v2010_v20, %v1453_v46  ;;  %v1511_v40 = vmul.f32 %v2012_v49, %v1509_v43  ;;  %v2014_v53 = vpop.eup %2013  ;;  %vm1516_vm2 = vweird.f32 %v2012_v49  ;;  %v1714_v43 = vld [vmem:[#allocation11 + $0x10] sm:$0xff] }
 0x502   :  { %v1419_v52 = vsel %vm1418_vm13, %v2008_v37, %v1415_v30  ;;  %vm1517_vm4 = vmor %vm1515_vm3, %vm1516_vm2  ;;  %v3748_v37 = vld [vmem:[#allocation76_spill] sm:$0xff] }
 0x503   :  { %v1424_v1 = vsel %vm1421_vm15, %v1423_v41, %v1419_v52  ;;  %v1458_v54 = vsel %vm1457_vm14, %v2010_v20, %v1454_v42  ;;  %v1512_v55 = vsub.f32 1.0, %v1511_v40 }
 0x504   :  { %v1463_v56 = vsel %vm1460_vm0, %v1462_v17, %v1458_v54  ;;  %v1526_v58 = vmul.f32 %v2014_v53, %v1424_v1 }
 0x505   :  { %v1525_v60 = vmul.f32 %v1463_v56, %v3361_v21  ;;  %v1513_v62 = vmul.f32 %v2012_v49, %v1512_v55 }
 0x507   :  { %v1527_v3 = vadd.f32 %v1526_v58, %v1525_v60  ;;  %v1514_v10 = vadd.f32 %v2012_v49, %v1513_v62 }
 0x509   :  { %2015 = vtanh.f32 %v1527_v3  ;;  %v3376_v13 = vsel %vm1537_vm1, %v1527_v3, %v3361_v21  ;;  %v1518_v2 = vsel %vm1517_vm4, %v2012_v49, %v1514_v10  ;;  %v1727_v21 = vld [vmem:[#allocation11 + $0x78] sm:$0xff] }
 0x50a   :  { %v1523_v57 = vsel %vm1520_vm5, %v1522_v9, %v1518_v2  ;;  %1732 = vmatpush.msrb.mxu0 %v1727_v21  ;;  %v1694_v21 = vpop.permute.xlu1 %1693 }
 0x50b   :  { %vm1695_vm14 = vcmp.eq.s32.totalorder %v1694_v21, 1 }
 0x50c   :  { %1733 = vmatpush.msrb.mxu0 %v1726_v63 }
 0x50e   :  { %1734 = vmatpush.msrb.mxu0 %v1725_v18 }
 0x50f   :  { %v2016_v61 = vpop.eup %2015 }
 0x510   :  { %v1529_v0 = vmul.f32 %v2016_v61, %v1523_v57  ;;  %1735 = vmatpush.msrb.mxu0 %v1724_v44 }
 0x512   :  { %v3379_v6 = vsel %vm1537_vm1, %v1529_v0, %v3364_v12  ;;  %1736 = vmatpush.msrb.mxu0 %v1723_v14  ;;  %v1722_v12 = vld [vmem:[#allocation11 + $0x50] sm:$0xff] }
 0x513   :  { %1561 = vmatmul.f32.vlgmr.msra.gmra.mxu0 %v3379_v6  ;;  %1600 = vmatmul.f32.vlgmr.msrb.gmra.mxu1 %v3379_v6 }
 0x514   :  { %1639 = vmatmul.f32.vlgmr.msrb.gmra.mxu2 %v3379_v6  ;;  %1660 = vmatmul.f32.vlgmr.msrb.gmra.mxu3 %v3379_v6 }
 0x515   :  { %1737 = vmatpush.msrb.mxu0 %v1722_v12 }
 0x517   :  { %1738 = vmatpush.msrb.mxu0 %v1721_v48 }
 0x519   :  { %1739 = vmatpush.msrb.mxu0 %v1720_v22 }
 0x51b   :  { %1740 = vmatpush.msrb.mxu0 %v1719_v4 }
 0x51d   :  { %1741 = vmatpush.msrb.mxu0 %v1718_v15 }
 0x51f   :  { %1742 = vmatpush.msrb.mxu0 %v1717_v47 }
 0x521   :  { %1743 = vmatpush.msrb.mxu0 %v1716_v25 }
 0x523   :  { %1744 = vmatpush.msrb.mxu0 %v1715_v39 }
 0x525   :  { %1745 = vmatpush.msrb.mxu0 %v1714_v43 }
 0x527   :  { %1746 = vmatpush.msrb.mxu0 %v1713_v31 }
 0x529   :  { %1747 = vmatpush.msrb.mxu0 %v1712_v50 }
 0x590   :  { %v1562_v7 = vpop.f32.mrf.mxu0  ;;  %v1601_v16 = vpop.f32.mrf.mxu1 }
 0x591   :  { %v1563_v32 = vadd.f32 %v1562_v7, %v3746_v35  ;;  %v1602_v11 = vadd.f32 %v1601_v16, %v3747_v8  ;;  %v1709_v35 = vpop.permute.xlu2 %1708 }
 0x592   :  { %vm1710_vm3 = vcmp.eq.s32.totalorder %v1709_v35, 1 }
 0x593   :  { %v1867_v29 = vmul.f32 -1.442695, %v1563_v32  ;;  %v1868_v27 = vmul.f32 -1.442695, %v1602_v11 }
 0x595   :  { %2017 = vpow2.f32 %v1867_v29 }
 0x596   :  { %2019 = vpow2.f32 %v1868_v27 }
 0x597   :  { %v1661_v36 = vpop.f32.mrf.mxu3  ;;  %v1640_v28 = vpop.f32.mrf.mxu2 }
 0x598   :  { %v1662_v26 = vadd.f32 %v1661_v36, %v3748_v37  ;;  %v1641_v49 = vadd.f32 %v1640_v28, %v3749_v38 }
 0x59a   :  { %v1869_v20 = vmul.f32 -1.442695, %v1662_v26 }
 0x59b   :  { %v2018_v34 = vpop.eup %2017 }
 0x59c   :  { %v2020_v24 = vpop.eup %2019  ;;  %v1568_v51 = vadd.f32 1.0, %v2018_v34  ;;  %2021 = vpow2.f32 %v1869_v20 }
 0x59d   :  { %v1607_v19 = vadd.f32 1.0, %v2020_v24 }
 0x59e   :  { %2023 = vrcp.f32 %v1568_v51  ;;  %v1580_v52 = vand.u32 2147483648, %v1568_v51  ;;  %v1578_v54 = vand.u32 2147483647, %v1568_v51  ;;  %vm1574_vm8 = vweird.f32 %v1568_v51 }
 0x59f   :  { %2025 = vrcp.f32 %v1607_v19  ;;  %v1619_v53 = vand.u32 2147483648, %v1607_v19  ;;  %v1617_v56 = vand.u32 2147483647, %v1607_v19  ;;  %vm1613_vm9 = vweird.f32 %v1607_v19 }
 0x5a0   :  { %v1581_v60 = vor.u32 1.1754944e-38, %v1580_v52  ;;  %vm1579_vm12 = vcmp.eq.f32.partialorder %v1578_v54, 8.507059e+37 }
 0x5a1   :  { %v1620_v10 = vor.u32 1.1754944e-38, %v1619_v53  ;;  %vm1618_vm13 = vcmp.eq.f32.partialorder %v1617_v56, 8.507059e+37 }
 0x5a2   :  { %v2022_v33 = vpop.eup %2021 }
 0x5a3   :  { %v1667_v45 = vadd.f32 1.0, %v2022_v33 }
 0x5a4   :  { %v2024_v46 = vpop.eup %2023 }
 0x5a5   :  { %v2026_v30 = vpop.eup %2025  ;;  %v1570_v41 = vmul.f32 %v2024_v46, %v1568_v51  ;;  %2027 = vrcp.f32 %v1667_v45  ;;  %vm1575_vm6 = vweird.f32 %v2024_v46  ;;  %v1679_v12 = vand.u32 2147483648, %v1667_v45 }
 0x5a6   :  { %v1609_v42 = vmul.f32 %v2026_v30, %v1607_v19  ;;  %2029 = vtanh.f32 %v1641_v49  ;;  %vm1614_vm7 = vweird.f32 %v2026_v30  ;;  %vm1576_vm10 = vmor %vm1574_vm8, %vm1575_vm6  ;;  %vm1673_vm0 = vweird.f32 %v1667_v45 }
 0x5a7   :  { %v1571_v40 = vsub.f32 1.0, %v1570_v41  ;;  %vm1615_vm11 = vmor %vm1613_vm9, %vm1614_vm7  ;;  %v1677_v22 = vand.u32 2147483647, %v1667_v45  ;;  %v1680_v7 = vor.u32 1.1754944e-38, %v1679_v12 }
 0x5a8   :  { %v1610_v17 = vsub.f32 1.0, %v1609_v42 }
 0x5a9   :  { %v1572_v1 = vmul.f32 %v2024_v46, %v1571_v40  ;;  %vm1678_vm2 = vcmp.eq.f32.partialorder %v1677_v22, 8.507059e+37 }
 0x5aa   :  { %v1611_v55 = vmul.f32 %v2026_v30, %v1610_v17 }
 0x5ab   :  { %v2028_v58 = vpop.eup %2027  ;;  %v1573_v59 = vadd.f32 %v2024_v46, %v1572_v1 }
 0x5ac   :  { %v1612_v62 = vadd.f32 %v2026_v30, %v1611_v55  ;;  %v1669_v3 = vmul.f32 %v2028_v58, %v1667_v45  ;;  %v2030_v23 = vpop.eup %2029  ;;  %vm1674_vm15 = vweird.f32 %v2028_v58 }
 0x5ad   :  { %v1577_v5 = vsel %vm1576_vm10, %v2024_v46, %v1573_v59  ;;  %vm1675_vm1 = vmor %vm1673_vm0, %vm1674_vm15 }
 0x5ae   :  { %v1582_v2 = vsel %vm1579_vm12, %v1581_v60, %v1577_v5  ;;  %v1616_v9 = vsel %vm1615_vm11, %v2026_v30, %v1612_v62  ;;  %v1670_v61 = vsub.f32 1.0, %v1669_v3 }
 0x5af   :  { %v1621_v57 = vsel %vm1618_vm13, %v1620_v10, %v1616_v9  ;;  %v1684_v0 = vmul.f32 %v2030_v23, %v1582_v2 }
 0x5b0   :  { %v1683_v63 = vmul.f32 %v1621_v57, %v3376_v13  ;;  %v1671_v18 = vmul.f32 %v2028_v58, %v1670_v61 }
 0x5b2   :  { %v1685_v44 = vadd.f32 %v1684_v0, %v1683_v63  ;;  %v1672_v14 = vadd.f32 %v2028_v58, %v1671_v18 }
 0x5b4   :  { %2031 = vtanh.f32 %v1685_v44  ;;  %v1697_v48 = vsel %vm1695_vm14, %v1685_v44, %v3376_v13  ;;  %v1676_v4 = vsel %vm1675_vm1, %v2028_v58, %v1672_v14  ;;  %v1904_v13 = vld [vmem:[%s3412_s6] ss:$0 sm:$0xff] }
 0x5b5   :  { %1704 = vst [vmem:[#allocation16] sm:$0xff] %v1697_v48  ;;  %v1681_v32 = vsel %vm1678_vm2, %v1680_v7, %v1676_v4 }
 0x5ba   :  { %v2032_v16 = vpop.eup %2031 }
 0x5bb   :  { %v1687_v8 = vmul.f32 %v2032_v16, %v1681_v32 }
 0x5bd   :  { %v1696_v11 = vsel %vm1695_vm14, %v1687_v8, %v3379_v6 }
 0x5be   :  { %1871 = vmatmul.msk.f32.vlgmr.msrb.gmra.mxu0 %vm1710_vm3, %v1696_v11  ;;  %1703 = vst [vmem:[#allocation14] sm:$0xff] %v1696_v11 }
 0x5bf   :  { %1774 = dma.vmem_to_hbm [thread:$0]  %s1770_s13, 128, %s1772_s16, [#allocation15]  }
 0x5c0   :  { %1785 = dma.vmem_to_hbm [thread:$0]  %s1781_s18, 128, %s1783_s21, [#allocation15]  }
 0x63b   :  { %v1749_v6 = vpop.f32.mrf.mxu0 }
 0x63c   :  { %v1750_v15 = vadd.f32 %v1904_v13, %v1749_v6 }
 0x63e   :  { %1752 = vst [vmem:[#allocation13] sm:$0xff] %v1750_v15 }
 0x63f   :  { %1763 = dma.vmem_to_hbm [thread:$0]  %s1759_s8, 128, %s1761_s26, [#allocation7]  }
 0x640   :  { %2272 = dma.done.wait [#allocation7], 128  }
 0x641   :  { %2273 = vsyncadd [#allocation7], 4294967168 }
 0x642   :  { %2274 = dma.done.wait [#allocation15], 256  }
 0x643   :  { %2275 = vsyncadd [#allocation15], 4294967040 }
 0x644   :  { %1798 = vsyncpa [#allocation6], 1 }
 0x645   :  { %1799 = vsyncpa [#allocation9], 1 }
 0x646   :  { %1800 = vsyncpa [#allocation12], 1 }
 0x647   :  { %1801 = vsyncpa [#allocation7], 1 }
 0x648   :  { %1802 = vsyncpa [#allocation15], 1 }

</bundles_post_ra>
